<compile_context>
chip_gen: v5e
topology: v5e:2x2
jax: 0.10.0
libtpu: 0.0.40
codegen_flags: <defaults>
</compile_context>

<pallas_src>
import functools

import jax
import jax.numpy as jnp
from jax.experimental import pallas as pl
from jax.experimental.pallas import tpu as pltpu


# ----------------------------------------------------------------------------
# Kernel
# ----------------------------------------------------------------------------
def prob_learner_kernel(x_ref, w13_ref, b13_ref,
                        g1_ref, be1_ref, w2_ref, b2_ref,
                        g3_ref, be3_ref, w4_ref, b4_ref,
                        pos_ref, neg_ref, rec2_ref,
                        anchor_ref, recipe1_ref, losses_ref,
                        *, inv_temperature, batch_size, tile_b,
                        ing_dim, ing_pad):
    i = pl.program_id(0)
    f32 = jnp.float32

    # ---- fused first layer: [lat2ingred.0 | lat2recipe.0] -> ReLU -------------
    h12 = jnp.maximum(
        jnp.dot(x_ref[...], w13_ref[...], preferred_element_type=f32)
        + b13_ref[...], 0.0)                                   # (TB, 2*ING_P) f32
    h1 = h12[:, :ing_pad]            # 384-lane aligned split -> no copy
    h2 = h12[:, ing_pad:]

    # lane mask over the padded intermediate dim (1 in true lanes, 0 in padding)
    lane = jax.lax.broadcasted_iota(jnp.int32, (1, ing_pad), 1)
    lane_mask = (lane < ing_dim).astype(f32)
    inv_d = 1.0 / ing_dim

    def layernorm(h, gamma, beta):
        # padded lanes of h are exactly 0, so sums over the padded width equal
        # sums over the true width; divide by the true width explicitly.
        mu = jnp.sum(h, axis=-1, keepdims=True) * inv_d
        d = (h - mu) * lane_mask
        var = jnp.sum(d * d, axis=-1, keepdims=True) * inv_d
        # gamma/beta are 0 in padded lanes -> output padding stays exactly 0.
        return (h - mu) * jax.lax.rsqrt(var + 1e-5) * gamma + beta

    h1n = layernorm(h1, g1_ref[...], be1_ref[...])
    h2n = layernorm(h2, g3_ref[...], be3_ref[...])

    # ---- second layers (true-width outputs: 300 / 600) ------------------------
    anchor = (jnp.dot(h1n.astype(w2_ref.dtype), w2_ref[...],
                      preferred_element_type=f32) + b2_ref[...])     # (TB, 300)
    recipe1 = (jnp.dot(h2n.astype(w4_ref.dtype), w4_ref[...],
                       preferred_element_type=f32) + b4_ref[...])    # (TB, 600)
    anchor_ref[...] = anchor.astype(anchor_ref.dtype)
    recipe1_ref[...] = recipe1.astype(recipe1_ref.dtype)

    # valid-row mask for this batch tile (handles batch padding)
    row = jax.lax.broadcasted_iota(jnp.int32, (tile_b, 1), 0) + i * tile_b
    valid = (row < batch_size).astype(f32)                            # (TB, 1)

    # ---- missing loss: NLL over cosine similarities ('nll_cos') ---------------
    # TODO(synk): NllLossCosine class body was not provided upstream; implemented
    # as the standard InfoNCE -log(exp(cos(a,p)/T) / sum(exp(cos(a,.)/T))).
    eps = 1e-8
    pos = pos_ref[...].astype(f32)                                    # (TB, 300)
    neg = neg_ref[...].astype(f32)                                    # (TB, N, 300)
    a_n = anchor * jax.lax.rsqrt(
        jnp.sum(anchor * anchor, axis=-1, keepdims=True) + eps)
    p_n = pos * jax.lax.rsqrt(jnp.sum(pos * pos, axis=-1, keepdims=True) + eps)
    n_n = neg * jax.lax.rsqrt(jnp.sum(neg * neg, axis=-1, keepdims=True) + eps)

    lp = jnp.sum(a_n * p_n, axis=-1, keepdims=True) * inv_temperature  # (TB, 1)
    # VPU multiply + lane (XLU) reduce; keeps the MXU free (was a q=1 einsum).
    cn = jnp.sum(a_n[:, None, :] * n_n, axis=-1) * inv_temperature     # (TB, N)

    m = jnp.maximum(lp, jnp.max(cn, axis=-1, keepdims=True))           # (TB, 1)
    se = jnp.exp(lp - m) + jnp.sum(jnp.exp(cn - m), axis=-1, keepdims=True)
    nll = m + jnp.log(se) - lp                                         # (TB, 1)
    miss_part = jnp.sum(nll * valid, keepdims=True)                    # (1, 1)

    # ---- recipe loss partial: masked sum of squared errors --------------------
    diff = recipe1 - rec2_ref[...].astype(f32)
    row_sq = jnp.sum(diff * diff, axis=-1, keepdims=True)              # (TB, 1)
    mse_part = jnp.sum(row_sq * valid, keepdims=True)                  # (1, 1)

    # ---- per-tile partial sums, packed into one lane-dense (8, 128) block -----
    lane128 = jax.lax.broadcasted_iota(jnp.int32, (8, 128), 1)
    losses_ref[...] = (miss_part * (lane128 == 0).astype(f32)
                       + mse_part * (lane128 == 1).astype(f32))


# ----------------------------------------------------------------------------
# Wrapper (plain-JAX glue: batch padding, pallas_call, loss reduction, dict I/O)
# ----------------------------------------------------------------------------
def _round_up(n, m):
    return ((n + m - 1) // m) * m


def _pad_axis(a, axis, target):
    if a.shape[axis] == target:
        return a
    pads = [(0, 0)] * a.ndim
    pads[axis] = (0, target - a.shape[axis])
    return jnp.pad(a, pads)


def probability_learner(batch, params, *, add_tags=False,
                        temperature=0.1, recipe_coef=0.5,
                        use_bf16=True, max_tile_b=256,
                        vmem_limit_bytes=None):
    """Forward pass. max_tile_b: 256 recommended on v6e/v7x, 128 on v5e."""
    x = (jnp.concatenate([batch['anchor_vectors'], batch['tags']], axis=1)
         if add_tags else batch['anchor_vectors'])
    x = x.astype(jnp.float32)
    B, H = x.shape
    N = batch['negative_vectors'].shape[1]

    ING = params['w1'].shape[1]          # 300
    REC = params['w4'].shape[1]          # 600
    ING_P = _round_up(ING, 128)          # 384 (intermediate dim only)

    TB = min(max_tile_b, _round_up(B, 8))        # sublane-aligned batch tile
    B_pad = _round_up(B, TB)
    n_tiles = B_pad // TB

    f32 = jnp.float32
    mm_dtype = jnp.bfloat16 if use_bf16 else jnp.float32    # MXU operands
    act_dtype = jnp.bfloat16 if use_bf16 else jnp.float32   # streamed activations

    # ---- weights: pad ONLY the 384-wide intermediate dim; fuse first layer ----
    w1 = _pad_axis(params['w1'].astype(f32), 1, ING_P)
    w3 = _pad_axis(params['w3'].astype(f32), 1, ING_P)
    w13 = jnp.concatenate([w1, w3], axis=1).astype(mm_dtype)          # (H, 2*ING_P)
    b13 = jnp.concatenate([_pad_axis(params['b1'].astype(f32), 1, ING_P),
                           _pad_axis(params['b3'].astype(f32), 1, ING_P)], axis=1)
    g1 = _pad_axis(params['g1'].astype(f32), 1, ING_P)
    be1 = _pad_axis(params['be1'].astype(f32), 1, ING_P)
    g3 = _pad_axis(params['g3'].astype(f32), 1, ING_P)
    be3 = _pad_axis(params['be3'].astype(f32), 1, ING_P)
    w2 = _pad_axis(params['w2'].astype(f32), 0, ING_P).astype(mm_dtype)  # (ING_P, 300)
    b2 = params['b2'].astype(f32)
    w4 = _pad_axis(params['w4'].astype(f32), 0, ING_P).astype(mm_dtype)  # (ING_P, 600)
    b4 = params['b4'].astype(f32)

    # ---- activations: TRUE feature widths (no padded-copy HBM round trip); ----
    # only the batch dim is padded to a tile multiple.  bf16 halves the dominant
    # pos/neg/rec2 DMA streams; the kernel upcasts to f32 for loss math.
    xp = _pad_axis(x.astype(mm_dtype), 0, B_pad)
    posp = _pad_axis(batch['positive_vectors'].astype(act_dtype), 0, B_pad)
    negp = _pad_axis(batch['negative_vectors'].astype(act_dtype), 0, B_pad)
    rec2p = _pad_axis(batch['recipe_vectors2'].astype(act_dtype), 0, B_pad)

    const = lambda shape: pl.BlockSpec(shape, lambda i: (0,) * len(shape))
    in_specs = [
        pl.BlockSpec((TB, H), lambda i: (i, 0)),            # x (batch-tiled)
        const((H, 2 * ING_P)),                              # w13 (fused layer-1)
        const((1, 2 * ING_P)),                              # b13
        const((1, ING_P)), const((1, ING_P)),               # g1, be1
        const((ING_P, ING)), const((1, ING)),               # w2, b2
        const((1, ING_P)), const((1, ING_P)),               # g3, be3
        const((ING_P, REC)), const((1, REC)),               # w4, b4
        pl.BlockSpec((TB, ING), lambda i: (i, 0)),          # positive (true width)
        pl.BlockSpec((TB, N, ING), lambda i: (i, 0, 0)),    # negatives (true width)
        pl.BlockSpec((TB, REC), lambda i: (i, 0)),          # recipe_vectors2
    ]
    out_specs = (
        pl.BlockSpec((TB, ING), lambda i: (i, 0)),          # anchor (true width)
        pl.BlockSpec((TB, REC), lambda i: (i, 0)),          # recipe1 (true width)
        pl.BlockSpec((None, 8, 128), lambda i: (i, 0, 0)),  # per-tile loss partials
    )
    out_shapes = (
        jax.ShapeDtypeStruct((B_pad, ING), jnp.float32),
        jax.ShapeDtypeStruct((B_pad, REC), jnp.float32),
        jax.ShapeDtypeStruct((n_tiles, 8, 128), jnp.float32),
    )

    kernel = functools.partial(
        prob_learner_kernel,
        inv_temperature=float(1.0 / temperature),
        batch_size=B, tile_b=TB, ing_dim=ING, ing_pad=ING_P)

    anchor_p, recipe1_p, partials = pl.pallas_call(
        kernel,
        out_shape=out_shapes,
        grid=(n_tiles,),
        in_specs=in_specs,
        out_specs=out_specs,
        compiler_params=pltpu.CompilerParams(
            dimension_semantics=("parallel",),              # per-tile partials -> both TCs on v7x
            vmem_limit_bytes=vmem_limit_bytes),
    )(xp, w13, b13, g1, be1, w2, b2, g3, be3, w4, b4, posp, negp, rec2p)

    # trivial final reduction / normalization over n_tiles partials
    missing = jnp.sum(partials[:, 0, 0]) / B
    recipe = jnp.sum(partials[:, 0, 1]) / (B * REC)
    total = missing + recipe_coef * recipe

    out = dict(batch)
    out['anchor_vectors'] = anchor_p[:B]
    out['anchor_probs'] = None
    out['recipe_vectors1'] = recipe1_p[:B]
    out['missing_loss'] = missing
    out['recipe_loss'] = recipe
    out['total_loss'] = total
    # TODO(synk): kld_loss branch (when 'mu_vectors' in batch) not implemented —
    # upstream kld_loss body was not provided.
    return out


# ----------------------------------------------------------------------------
# Pure-JAX reference (for correctness check only)
# ----------------------------------------------------------------------------
def _reference(batch, params, temperature=0.1, recipe_coef=0.5):
    x = batch['anchor_vectors']

    def mlp(x, w1, b1, g, be, w2, b2):
        h = jnp.maximum(x @ w1 + b1, 0.0)
        mu = jnp.mean(h, -1, keepdims=True)
        var = jnp.mean((h - mu) ** 2, -1, keepdims=True)
        h = (h - mu) / jnp.sqrt(var + 1e-5) * g + be
        return h @ w2 + b2

    anchor = mlp(x, params['w1'], params['b1'], params['g1'], params['be1'],
                 params['w2'], params['b2'])
    recipe1 = mlp(x, params['w3'], params['b3'], params['g3'], params['be3'],
                  params['w4'], params['b4'])

    def norm(v):
        return v / jnp.sqrt(jnp.sum(v * v, -1, keepdims=True) + 1e-8)

    a_n, p_n = norm(anchor), norm(batch['positive_vectors'])
    n_n = norm(batch['negative_vectors'])
    cos_pos = jnp.sum(a_n * p_n, -1, keepdims=True)
    cos_neg = jnp.sum(a_n[:, None, :] * n_n, -1)
    logits = jnp.concatenate([cos_pos, cos_neg], 1) / temperature
    missing = jnp.mean(jax.scipy.special.logsumexp(logits, axis=1) - logits[:, 0])
    mse = jnp.mean((recipe1 - batch['recipe_vectors2']) ** 2)
    return anchor, recipe1, missing, mse, missing + recipe_coef * mse


# ----------------------------------------------------------------------------
if __name__ == "__main__":
    B, H, N_NEG = 20, 32, 4          # batch, hidden_nodes, #negatives
    key = jax.random.PRNGKey(0)
    ks = jax.random.split(key, 12)

    params = {
        'w1':  jax.random.normal(ks[0], (H, 300),  jnp.float32) * 0.02,
        'b1':  jnp.zeros((1, 300), jnp.float32),
        'g1':  jnp.ones((1, 300), jnp.float32),
        'be1': jnp.zeros((1, 300), jnp.float32),
        'w2':  jax.random.normal(ks[1], (300, 300), jnp.float32) * 0.02,
        'b2':  jnp.zeros((1, 300), jnp.float32),
        'w3':  jax.random.normal(ks[2], (H, 300),  jnp.float32) * 0.02,
        'b3':  jnp.zeros((1, 300), jnp.float32),
        'g3':  jnp.ones((1, 300), jnp.float32),
        'be3': jnp.zeros((1, 300), jnp.float32),
        'w4':  jax.random.normal(ks[3], (300, 600), jnp.float32) * 0.02,
        'b4':  jnp.zeros((1, 600), jnp.float32),
    }

    batch = {
        'anchor_vectors':   jax.random.normal(ks[4], (B, H), jnp.float32),
        'positive_vectors': jax.random.normal(ks[5], (B, 300), jnp.float32),
        'negative_vectors': jax.random.normal(ks[6], (B, N_NEG, 300), jnp.float32),
        'recipe_vectors2':  jax.random.normal(ks[7], (B, 600), jnp.float32),
    }

    ref_anchor, ref_recipe1, ref_missing, ref_mse, ref_total = _reference(batch, params)

    # --- f32 path: tight correctness check (exercises multi-tile grid, batch
    # padding / valid-row masking, and per-tile partial-loss reduction). --------
    out = probability_learner(batch, params, add_tags=False,
                              temperature=0.1, recipe_coef=0.5,
                              use_bf16=False, max_tile_b=8)
    jax.block_until_ready(out['total_loss'])
    assert jnp.allclose(out['anchor_vectors'], ref_anchor, atol=1e-4, rtol=1e-4)
    assert jnp.allclose(out['recipe_vectors1'], ref_recipe1, atol=1e-4, rtol=1e-4)
    assert jnp.allclose(out['missing_loss'], ref_missing, atol=1e-4, rtol=1e-4)
    assert jnp.allclose(out['recipe_loss'], ref_mse, atol=1e-4, rtol=1e-4)
    assert jnp.allclose(out['total_loss'], ref_total, atol=1e-4, rtol=1e-4)
    assert bool(jnp.isfinite(out['total_loss']))

    # --- bf16 path (bandwidth-optimized, review recommendation): loose check. --
    out_bf = probability_learner(batch, params, add_tags=False,
                                 temperature=0.1, recipe_coef=0.5,
                                 use_bf16=True)          # default max_tile_b
    jax.block_until_ready(out_bf['total_loss'])
    assert bool(jnp.isfinite(out_bf['total_loss']))
    assert jnp.allclose(out_bf['missing_loss'], ref_missing, atol=1e-1, rtol=1e-1)
    assert jnp.allclose(out_bf['recipe_loss'], ref_mse, atol=1e-1, rtol=1e-1)
    assert jnp.allclose(out_bf['total_loss'], ref_total, atol=1e-1, rtol=1e-1)

    print("KERNEL_OK")
</pallas_src>

<mosaic_0001>
module attributes {stable_mosaic.version = 11 : i64} {
  func.func @prob_learner_kernel(%arg0: i32, %arg1: memref<8x32xf32, #tpu.memory_space<vmem>>, %arg2: memref<32x768xf32, #tpu.memory_space<vmem>>, %arg3: memref<1x768xf32, #tpu.memory_space<vmem>>, %arg4: memref<1x384xf32, #tpu.memory_space<vmem>>, %arg5: memref<1x384xf32, #tpu.memory_space<vmem>>, %arg6: memref<384x300xf32, #tpu.memory_space<vmem>>, %arg7: memref<1x300xf32, #tpu.memory_space<vmem>>, %arg8: memref<1x384xf32, #tpu.memory_space<vmem>>, %arg9: memref<1x384xf32, #tpu.memory_space<vmem>>, %arg10: memref<384x600xf32, #tpu.memory_space<vmem>>, %arg11: memref<1x600xf32, #tpu.memory_space<vmem>>, %arg12: memref<8x300xf32, #tpu.memory_space<vmem>>, %arg13: memref<8x4x300xf32, #tpu.memory_space<vmem>>, %arg14: memref<8x600xf32, #tpu.memory_space<vmem>>, %arg15: memref<8x300xf32, #tpu.memory_space<vmem>>, %arg16: memref<8x600xf32, #tpu.memory_space<vmem>>, %arg17: memref<1x8x128xf32, #tpu.memory_space<vmem>>) attributes {dimension_semantics = [#tpu.dimension_semantics<parallel>], iteration_bounds = array<i64: 3>, scalar_prefetch = 0 : i64, scratch_operands = 0 : i64, tpu.core_type = #tpu.core_type<tc>, window_params = [{transform_indices = @transform_0, window_bounds = array<i64: 8, 32>}, {pipeline_mode = #tpu.pipeline_mode<synchronous>, transform_indices = @transform_1, window_bounds = array<i64: 32, 768>}, {pipeline_mode = #tpu.pipeline_mode<synchronous>, transform_indices = @transform_2, window_bounds = array<i64: 1, 768>}, {pipeline_mode = #tpu.pipeline_mode<synchronous>, transform_indices = @transform_3, window_bounds = array<i64: 1, 384>}, {pipeline_mode = #tpu.pipeline_mode<synchronous>, transform_indices = @transform_4, window_bounds = array<i64: 1, 384>}, {pipeline_mode = #tpu.pipeline_mode<synchronous>, transform_indices = @transform_5, window_bounds = array<i64: 384, 300>}, {pipeline_mode = #tpu.pipeline_mode<synchronous>, transform_indices = @transform_6, window_bounds = array<i64: 1, 300>}, {pipeline_mode = #tpu.pipeline_mode<synchronous>, transform_indices = @transform_7, window_bounds = array<i64: 1, 384>}, {pipeline_mode = #tpu.pipeline_mode<synchronous>, transform_indices = @transform_8, window_bounds = array<i64: 1, 384>}, {pipeline_mode = #tpu.pipeline_mode<synchronous>, transform_indices = @transform_9, window_bounds = array<i64: 384, 600>}, {pipeline_mode = #tpu.pipeline_mode<synchronous>, transform_indices = @transform_10, window_bounds = array<i64: 1, 600>}, {transform_indices = @transform_11, window_bounds = array<i64: 8, 300>}, {transform_indices = @transform_12, window_bounds = array<i64: 8, 4, 300>}, {transform_indices = @transform_13, window_bounds = array<i64: 8, 600>}, {transform_indices = @transform_14, window_bounds = array<i64: 8, 300>}, {transform_indices = @transform_15, window_bounds = array<i64: 8, 600>}, {transform_indices = @transform_16, window_bounds = array<i64: 1, 8, 128>}]} {
    %c0 = arith.constant 0 : index
    %c0_0 = arith.constant 0 : index
    %0 = vector.load %arg1[%c0, %c0_0] : memref<8x32xf32, #tpu.memory_space<vmem>>, vector<8x32xf32>
    %c0_1 = arith.constant 0 : index
    %c0_2 = arith.constant 0 : index
    %1 = vector.load %arg2[%c0_1, %c0_2] : memref<32x768xf32, #tpu.memory_space<vmem>>, vector<32x768xf32>
    %cst = arith.constant dense<0.000000e+00> : vector<8x768xf32>
    %2 = tpu.matmul %0, %1, %cst {dimension_numbers = #tpu.dot_dimension_numbers<[1], [0], [0], [1], [0, 0, 1, 1], [], []>} : vector<8x32xf32>, vector<32x768xf32>, vector<8x768xf32> -> vector<8x768xf32>
    %c0_3 = arith.constant 0 : index
    %c0_4 = arith.constant 0 : index
    %3 = vector.load %arg3[%c0_3, %c0_4] : memref<1x768xf32, #tpu.memory_space<vmem>>, vector<1x768xf32>
    %4 = vector.broadcast %3 : vector<1x768xf32> to vector<8x768xf32>
    %5 = arith.addf %2, %4 : vector<8x768xf32>
    %cst_5 = arith.constant 0.000000e+00 : f32
    %6 = vector.broadcast %cst_5 : f32 to vector<8x768xf32>
    %7 = arith.maximumf %5, %6 : vector<8x768xf32>
    %8 = vector.extract_strided_slice %7 {offsets = [0, 0], sizes = [8, 384], strides = [1, 1]} : vector<8x768xf32> to vector<8x384xf32>
    %9 = vector.extract_strided_slice %7 {offsets = [0, 384], sizes = [8, 384], strides = [1, 1]} : vector<8x768xf32> to vector<8x384xf32>
    %10 = tpu.iota {dimensions = array<i32: 1>} : vector<1x384xi32>
    %c300_i32 = arith.constant 300 : i32
    %11 = vector.broadcast %c300_i32 : i32 to vector<1x384xi32>
    %12 = arith.cmpi slt, %10, %11 : vector<1x384xi32>
    %13 = arith.extui %12 : vector<1x384xi1> to vector<1x384xi32>
    %14 = arith.sitofp %13 : vector<1x384xi32> to vector<1x384xf32>
    %c0_6 = arith.constant 0 : index
    %c0_7 = arith.constant 0 : index
    %15 = vector.load %arg4[%c0_6, %c0_7] : memref<1x384xf32, #tpu.memory_space<vmem>>, vector<1x384xf32>
    %c0_8 = arith.constant 0 : index
    %c0_9 = arith.constant 0 : index
    %16 = vector.load %arg5[%c0_8, %c0_9] : memref<1x384xf32, #tpu.memory_space<vmem>>, vector<1x384xf32>
    %cst_10 = arith.constant dense<0.000000e+00> : vector<8xf32>
    %17 = vector.multi_reduction <add>, %8, %cst_10 [1] : vector<8x384xf32> to vector<8xf32>
    %18 = vector.shape_cast %17 : vector<8xf32> to vector<8x1xf32>
    %cst_11 = arith.constant 0.00333333341 : f32
    %19 = vector.broadcast %cst_11 : f32 to vector<8x1xf32>
    %20 = arith.mulf %18, %19 : vector<8x1xf32>
    %21 = vector.broadcast %20 : vector<8x1xf32> to vector<8x384xf32>
    %22 = arith.subf %8, %21 : vector<8x384xf32>
    %23 = vector.broadcast %14 : vector<1x384xf32> to vector<8x384xf32>
    %24 = arith.mulf %22, %23 : vector<8x384xf32>
    %25 = arith.mulf %24, %24 : vector<8x384xf32>
    %cst_12 = arith.constant dense<0.000000e+00> : vector<8xf32>
    %26 = vector.multi_reduction <add>, %25, %cst_12 [1] : vector<8x384xf32> to vector<8xf32>
    %27 = vector.shape_cast %26 : vector<8xf32> to vector<8x1xf32>
    %cst_13 = arith.constant 0.00333333341 : f32
    %28 = vector.broadcast %cst_13 : f32 to vector<8x1xf32>
    %29 = arith.mulf %27, %28 : vector<8x1xf32>
    %30 = vector.broadcast %20 : vector<8x1xf32> to vector<8x384xf32>
    %31 = arith.subf %8, %30 : vector<8x384xf32>
    %cst_14 = arith.constant 9.99999974E-6 : f32
    %32 = vector.broadcast %cst_14 : f32 to vector<8x1xf32>
    %33 = arith.addf %29, %32 : vector<8x1xf32>
    %34 = math.rsqrt %33 : vector<8x1xf32>
    %35 = vector.broadcast %34 : vector<8x1xf32> to vector<8x384xf32>
    %36 = arith.mulf %31, %35 : vector<8x384xf32>
    %37 = vector.broadcast %15 : vector<1x384xf32> to vector<8x384xf32>
    %38 = arith.mulf %36, %37 : vector<8x384xf32>
    %39 = vector.broadcast %16 : vector<1x384xf32> to vector<8x384xf32>
    %40 = arith.addf %38, %39 : vector<8x384xf32>
    %c0_15 = arith.constant 0 : index
    %c0_16 = arith.constant 0 : index
    %41 = vector.load %arg8[%c0_15, %c0_16] : memref<1x384xf32, #tpu.memory_space<vmem>>, vector<1x384xf32>
    %c0_17 = arith.constant 0 : index
    %c0_18 = arith.constant 0 : index
    %42 = vector.load %arg9[%c0_17, %c0_18] : memref<1x384xf32, #tpu.memory_space<vmem>>, vector<1x384xf32>
    %cst_19 = arith.constant dense<0.000000e+00> : vector<8xf32>
    %43 = vector.multi_reduction <add>, %9, %cst_19 [1] : vector<8x384xf32> to vector<8xf32>
    %44 = vector.shape_cast %43 : vector<8xf32> to vector<8x1xf32>
    %cst_20 = arith.constant 0.00333333341 : f32
    %45 = vector.broadcast %cst_20 : f32 to vector<8x1xf32>
    %46 = arith.mulf %44, %45 : vector<8x1xf32>
    %47 = vector.broadcast %46 : vector<8x1xf32> to vector<8x384xf32>
    %48 = arith.subf %9, %47 : vector<8x384xf32>
    %49 = vector.broadcast %14 : vector<1x384xf32> to vector<8x384xf32>
    %50 = arith.mulf %48, %49 : vector<8x384xf32>
    %51 = arith.mulf %50, %50 : vector<8x384xf32>
    %cst_21 = arith.constant dense<0.000000e+00> : vector<8xf32>
    %52 = vector.multi_reduction <add>, %51, %cst_21 [1] : vector<8x384xf32> to vector<8xf32>
    %53 = vector.shape_cast %52 : vector<8xf32> to vector<8x1xf32>
    %cst_22 = arith.constant 0.00333333341 : f32
    %54 = vector.broadcast %cst_22 : f32 to vector<8x1xf32>
    %55 = arith.mulf %53, %54 : vector<8x1xf32>
    %56 = vector.broadcast %46 : vector<8x1xf32> to vector<8x384xf32>
    %57 = arith.subf %9, %56 : vector<8x384xf32>
    %cst_23 = arith.constant 9.99999974E-6 : f32
    %58 = vector.broadcast %cst_23 : f32 to vector<8x1xf32>
    %59 = arith.addf %55, %58 : vector<8x1xf32>
    %60 = math.rsqrt %59 : vector<8x1xf32>
    %61 = vector.broadcast %60 : vector<8x1xf32> to vector<8x384xf32>
    %62 = arith.mulf %57, %61 : vector<8x384xf32>
    %63 = vector.broadcast %41 : vector<1x384xf32> to vector<8x384xf32>
    %64 = arith.mulf %62, %63 : vector<8x384xf32>
    %65 = vector.broadcast %42 : vector<1x384xf32> to vector<8x384xf32>
    %66 = arith.addf %64, %65 : vector<8x384xf32>
    %c0_24 = arith.constant 0 : index
    %c0_25 = arith.constant 0 : index
    %67 = vector.load %arg6[%c0_24, %c0_25] : memref<384x300xf32, #tpu.memory_space<vmem>>, vector<384x300xf32>
    %cst_26 = arith.constant dense<0.000000e+00> : vector<8x300xf32>
    %68 = tpu.matmul %40, %67, %cst_26 {dimension_numbers = #tpu.dot_dimension_numbers<[1], [0], [0], [1], [0, 0, 1, 1], [], []>} : vector<8x384xf32>, vector<384x300xf32>, vector<8x300xf32> -> vector<8x300xf32>
    %c0_27 = arith.constant 0 : index
    %c0_28 = arith.constant 0 : index
    %69 = vector.load %arg7[%c0_27, %c0_28] : memref<1x300xf32, #tpu.memory_space<vmem>>, vector<1x300xf32>
    %70 = vector.broadcast %69 : vector<1x300xf32> to vector<8x300xf32>
    %71 = arith.addf %68, %70 : vector<8x300xf32>
    %c0_29 = arith.constant 0 : index
    %c0_30 = arith.constant 0 : index
    %72 = vector.load %arg10[%c0_29, %c0_30] : memref<384x600xf32, #tpu.memory_space<vmem>>, vector<384x600xf32>
    %cst_31 = arith.constant dense<0.000000e+00> : vector<8x600xf32>
    %73 = tpu.matmul %66, %72, %cst_31 {dimension_numbers = #tpu.dot_dimension_numbers<[1], [0], [0], [1], [0, 0, 1, 1], [], []>} : vector<8x384xf32>, vector<384x600xf32>, vector<8x600xf32> -> vector<8x600xf32>
    %c0_32 = arith.constant 0 : index
    %c0_33 = arith.constant 0 : index
    %74 = vector.load %arg11[%c0_32, %c0_33] : memref<1x600xf32, #tpu.memory_space<vmem>>, vector<1x600xf32>
    %75 = vector.broadcast %74 : vector<1x600xf32> to vector<8x600xf32>
    %76 = arith.addf %73, %75 : vector<8x600xf32>
    %c0_34 = arith.constant 0 : index
    %c0_35 = arith.constant 0 : index
    %77 = vector.load %arg15[%c0_34, %c0_35] : memref<8x300xf32, #tpu.memory_space<vmem>>, vector<8x300xf32>
    tpu.vector_store %arg15[%c0_34, %c0_35], %71 {strides = array<i32>} : memref<8x300xf32, #tpu.memory_space<vmem>>, vector<8x300xf32>,
    %c0_36 = arith.constant 0 : index
    %c0_37 = arith.constant 0 : index
    %78 = vector.load %arg16[%c0_36, %c0_37] : memref<8x600xf32, #tpu.memory_space<vmem>>, vector<8x600xf32>
    tpu.vector_store %arg16[%c0_36, %c0_37], %76 {strides = array<i32>} : memref<8x600xf32, #tpu.memory_space<vmem>>, vector<8x600xf32>,
    %79 = tpu.iota {dimensions = array<i32: 0>} : vector<8x1xi32>
    %c8_i32 = arith.constant 8 : i32
    %80 = arith.muli %arg0, %c8_i32 : i32
    %81 = vector.broadcast %80 : i32 to vector<8x1xi32>
    %82 = arith.addi %79, %81 : vector<8x1xi32>
    %c20_i32 = arith.constant 20 : i32
    %83 = vector.broadcast %c20_i32 : i32 to vector<8x1xi32>
    %84 = arith.cmpi slt, %82, %83 : vector<8x1xi32>
    %85 = arith.extui %84 : vector<8x1xi1> to vector<8x1xi32>
    %86 = arith.sitofp %85 : vector<8x1xi32> to vector<8x1xf32>
    %c0_38 = arith.constant 0 : index
    %c0_39 = arith.constant 0 : index
    %87 = vector.load %arg12[%c0_38, %c0_39] : memref<8x300xf32, #tpu.memory_space<vmem>>, vector<8x300xf32>
    %c0_40 = arith.constant 0 : index
    %c0_41 = arith.constant 0 : index
    %c0_42 = arith.constant 0 : index
    %88 = vector.load %arg13[%c0_40, %c0_41, %c0_42] : memref<8x4x300xf32, #tpu.memory_space<vmem>>, vector<8x4x300xf32>
    %89 = arith.mulf %71, %71 : vector<8x300xf32>
    %cst_43 = arith.constant dense<0.000000e+00> : vector<8xf32>
    %90 = vector.multi_reduction <add>, %89, %cst_43 [1] : vector<8x300xf32> to vector<8xf32>
    %91 = vector.shape_cast %90 : vector<8xf32> to vector<8x1xf32>
    %cst_44 = arith.constant 9.99999993E-9 : f32
    %92 = vector.broadcast %cst_44 : f32 to vector<8x1xf32>
    %93 = arith.addf %91, %92 : vector<8x1xf32>
    %94 = math.rsqrt %93 : vector<8x1xf32>
    %95 = vector.broadcast %94 : vector<8x1xf32> to vector<8x300xf32>
    %96 = arith.mulf %71, %95 : vector<8x300xf32>
    %97 = arith.mulf %87, %87 : vector<8x300xf32>
    %cst_45 = arith.constant dense<0.000000e+00> : vector<8xf32>
    %98 = vector.multi_reduction <add>, %97, %cst_45 [1] : vector<8x300xf32> to vector<8xf32>
    %99 = vector.shape_cast %98 : vector<8xf32> to vector<8x1xf32>
    %cst_46 = arith.constant 9.99999993E-9 : f32
    %100 = vector.broadcast %cst_46 : f32 to vector<8x1xf32>
    %101 = arith.addf %99, %100 : vector<8x1xf32>
    %102 = math.rsqrt %101 : vector<8x1xf32>
    %103 = vector.broadcast %102 : vector<8x1xf32> to vector<8x300xf32>
    %104 = arith.mulf %87, %103 : vector<8x300xf32>
    %105 = arith.mulf %88, %88 : vector<8x4x300xf32>
    %cst_47 = arith.constant dense<0.000000e+00> : vector<8x4xf32>
    %106 = vector.multi_reduction <add>, %105, %cst_47 [2] : vector<8x4x300xf32> to vector<8x4xf32>
    %107 = vector.shape_cast %106 : vector<8x4xf32> to vector<8x4x1xf32>
    %cst_48 = arith.constant 9.99999993E-9 : f32
    %108 = vector.broadcast %cst_48 : f32 to vector<8x4x1xf32>
    %109 = arith.addf %107, %108 : vector<8x4x1xf32>
    %110 = math.rsqrt %109 : vector<8x4x1xf32>
    %111 = vector.broadcast %110 : vector<8x4x1xf32> to vector<8x4x300xf32>
    %112 = arith.mulf %88, %111 : vector<8x4x300xf32>
    %113 = arith.mulf %96, %104 : vector<8x300xf32>
    %cst_49 = arith.constant dense<0.000000e+00> : vector<8xf32>
    %114 = vector.multi_reduction <add>, %113, %cst_49 [1] : vector<8x300xf32> to vector<8xf32>
    %115 = vector.shape_cast %114 : vector<8xf32> to vector<8x1xf32>
    %cst_50 = arith.constant 1.000000e+01 : f32
    %116 = vector.broadcast %cst_50 : f32 to vector<8x1xf32>
    %117 = arith.mulf %115, %116 : vector<8x1xf32>
    %118 = vector.shape_cast %96 : vector<8x300xf32> to vector<8x1x300xf32>
    %119 = vector.broadcast %118 : vector<8x1x300xf32> to vector<8x4x300xf32>
    %120 = arith.mulf %119, %112 : vector<8x4x300xf32>
    %cst_51 = arith.constant dense<0.000000e+00> : vector<8x4xf32>
    %121 = vector.multi_reduction <add>, %120, %cst_51 [2] : vector<8x4x300xf32> to vector<8x4xf32>
    %cst_52 = arith.constant 1.000000e+01 : f32
    %122 = vector.broadcast %cst_52 : f32 to vector<8x4xf32>
    %123 = arith.mulf %121, %122 : vector<8x4xf32>
    %cst_53 = arith.constant dense<0xFF800000> : vector<8xf32>
    %124 = vector.multi_reduction <maximumf>, %123, %cst_53 [1] : vector<8x4xf32> to vector<8xf32>
    %125 = vector.shape_cast %124 : vector<8xf32> to vector<8x1xf32>
    %126 = arith.maximumf %117, %125 : vector<8x1xf32>
    %127 = arith.subf %117, %126 : vector<8x1xf32>
    %128 = math.exp %127 : vector<8x1xf32>
    %129 = vector.broadcast %126 : vector<8x1xf32> to vector<8x4xf32>
    %130 = arith.subf %123, %129 : vector<8x4xf32>
    %131 = math.exp %130 : vector<8x4xf32>
    %cst_54 = arith.constant dense<0.000000e+00> : vector<8xf32>
    %132 = vector.multi_reduction <add>, %131, %cst_54 [1] : vector<8x4xf32> to vector<8xf32>
    %133 = vector.shape_cast %132 : vector<8xf32> to vector<8x1xf32>
    %134 = arith.addf %128, %133 : vector<8x1xf32>
    %135 = math.log %134 : vector<8x1xf32>
    %136 = arith.addf %126, %135 : vector<8x1xf32>
    %137 = arith.subf %136, %117 : vector<8x1xf32>
    %138 = arith.mulf %137, %86 : vector<8x1xf32>
    %139 = vector.shape_cast %138 : vector<8x1xf32> to vector<1x8x1xf32>
    %cst_55 = arith.constant dense<0.000000e+00> : vector<1xf32>
    %140 = vector.multi_reduction <add>, %139, %cst_55 [1, 2] : vector<1x8x1xf32> to vector<1xf32>
    %141 = vector.shape_cast %140 : vector<1xf32> to vector<1x1x1xf32>
    %142 = vector.extract %141[0, 0, 0] : f32 from vector<1x1x1xf32>
    %143 = vector.broadcast %142 : f32 to vector<1x1xf32>
    %c0_56 = arith.constant 0 : index
    %c0_57 = arith.constant 0 : index
    %144 = vector.load %arg14[%c0_56, %c0_57] : memref<8x600xf32, #tpu.memory_space<vmem>>, vector<8x600xf32>
    %145 = arith.subf %76, %144 : vector<8x600xf32>
    %146 = arith.mulf %145, %145 : vector<8x600xf32>
    %cst_58 = arith.constant dense<0.000000e+00> : vector<8xf32>
    %147 = vector.multi_reduction <add>, %146, %cst_58 [1] : vector<8x600xf32> to vector<8xf32>
    %148 = vector.shape_cast %147 : vector<8xf32> to vector<8x1xf32>
    %149 = arith.mulf %148, %86 : vector<8x1xf32>
    %150 = vector.shape_cast %149 : vector<8x1xf32> to vector<1x8x1xf32>
    %cst_59 = arith.constant dense<0.000000e+00> : vector<1xf32>
    %151 = vector.multi_reduction <add>, %150, %cst_59 [1, 2] : vector<1x8x1xf32> to vector<1xf32>
    %152 = vector.shape_cast %151 : vector<1xf32> to vector<1x1x1xf32>
    %153 = vector.extract %152[0, 0, 0] : f32 from vector<1x1x1xf32>
    %154 = vector.broadcast %153 : f32 to vector<1x1xf32>
    %155 = tpu.iota {dimensions = array<i32: 1>} : vector<8x128xi32>
    %c0_i32 = arith.constant 0 : i32
    %156 = vector.broadcast %c0_i32 : i32 to vector<8x128xi32>
    %157 = arith.cmpi eq, %155, %156 : vector<8x128xi32>
    %158 = arith.extui %157 : vector<8x128xi1> to vector<8x128xi32>
    %159 = arith.sitofp %158 : vector<8x128xi32> to vector<8x128xf32>
    %160 = vector.broadcast %143 : vector<1x1xf32> to vector<8x128xf32>
    %161 = arith.mulf %160, %159 : vector<8x128xf32>
    %c1_i32 = arith.constant 1 : i32
    %162 = vector.broadcast %c1_i32 : i32 to vector<8x128xi32>
    %163 = arith.cmpi eq, %155, %162 : vector<8x128xi32>
    %164 = arith.extui %163 : vector<8x128xi1> to vector<8x128xi32>
    %165 = arith.sitofp %164 : vector<8x128xi32> to vector<8x128xf32>
    %166 = vector.broadcast %154 : vector<1x1xf32> to vector<8x128xf32>
    %167 = arith.mulf %166, %165 : vector<8x128xf32>
    %168 = arith.addf %161, %167 : vector<8x128xf32>
    %c0_60 = arith.constant 0 : index
    %c0_61 = arith.constant 0 : index
    %c0_62 = arith.constant 0 : index
    %169 = vector.load %arg17[%c0_60, %c0_61, %c0_62] : memref<1x8x128xf32, #tpu.memory_space<vmem>>, vector<1x8x128xf32>
    %170 = vector.shape_cast %169 : vector<1x8x128xf32> to vector<8x128xf32>
    %171 = vector.shape_cast %168 : vector<8x128xf32> to vector<1x8x128xf32>
    tpu.vector_store %arg17[%c0_60, %c0_61, %c0_62], %171 {strides = array<i32>} : memref<1x8x128xf32, #tpu.memory_space<vmem>>, vector<1x8x128xf32>,
    return
  }
  func.func @transform_0(%arg0: i32) -> (i32, i32) {
    %c0_i32 = arith.constant 0 : i32
    %c0_i32_0 = arith.constant 0 : i32
    return %arg0, %c0_i32 : i32, i32
  }
  func.func @transform_1(%arg0: i32) -> (i32, i32) {
    %c0_i32 = arith.constant 0 : i32
    %c0_i32_0 = arith.constant 0 : i32
    %c0_i32_1 = arith.constant 0 : i32
    return %c0_i32, %c0_i32_0 : i32, i32
  }
  func.func @transform_2(%arg0: i32) -> (i32, i32) {
    %c0_i32 = arith.constant 0 : i32
    %c0_i32_0 = arith.constant 0 : i32
    %c0_i32_1 = arith.constant 0 : i32
    return %c0_i32, %c0_i32_0 : i32, i32
  }
  func.func @transform_3(%arg0: i32) -> (i32, i32) {
    %c0_i32 = arith.constant 0 : i32
    %c0_i32_0 = arith.constant 0 : i32
    %c0_i32_1 = arith.constant 0 : i32
    return %c0_i32, %c0_i32_0 : i32, i32
  }
  func.func @transform_4(%arg0: i32) -> (i32, i32) {
    %c0_i32 = arith.constant 0 : i32
    %c0_i32_0 = arith.constant 0 : i32
    %c0_i32_1 = arith.constant 0 : i32
    return %c0_i32, %c0_i32_0 : i32, i32
  }
  func.func @transform_5(%arg0: i32) -> (i32, i32) {
    %c0_i32 = arith.constant 0 : i32
    %c0_i32_0 = arith.constant 0 : i32
    %c0_i32_1 = arith.constant 0 : i32
    return %c0_i32, %c0_i32_0 : i32, i32
  }
  func.func @transform_6(%arg0: i32) -> (i32, i32) {
    %c0_i32 = arith.constant 0 : i32
    %c0_i32_0 = arith.constant 0 : i32
    %c0_i32_1 = arith.constant 0 : i32
    return %c0_i32, %c0_i32_0 : i32, i32
  }
  func.func @transform_7(%arg0: i32) -> (i32, i32) {
    %c0_i32 = arith.constant 0 : i32
    %c0_i32_0 = arith.constant 0 : i32
    %c0_i32_1 = arith.constant 0 : i32
    return %c0_i32, %c0_i32_0 : i32, i32
  }
  func.func @transform_8(%arg0: i32) -> (i32, i32) {
    %c0_i32 = arith.constant 0 : i32
    %c0_i32_0 = arith.constant 0 : i32
    %c0_i32_1 = arith.constant 0 : i32
    return %c0_i32, %c0_i32_0 : i32, i32
  }
  func.func @transform_9(%arg0: i32) -> (i32, i32) {
    %c0_i32 = arith.constant 0 : i32
    %c0_i32_0 = arith.constant 0 : i32
    %c0_i32_1 = arith.constant 0 : i32
    return %c0_i32, %c0_i32_0 : i32, i32
  }
  func.func @transform_10(%arg0: i32) -> (i32, i32) {
    %c0_i32 = arith.constant 0 : i32
    %c0_i32_0 = arith.constant 0 : i32
    %c0_i32_1 = arith.constant 0 : i32
    return %c0_i32, %c0_i32_0 : i32, i32
  }
  func.func @transform_11(%arg0: i32) -> (i32, i32) {
    %c0_i32 = arith.constant 0 : i32
    %c0_i32_0 = arith.constant 0 : i32
    return %arg0, %c0_i32 : i32, i32
  }
  func.func @transform_12(%arg0: i32) -> (i32, i32, i32) {
    %c0_i32 = arith.constant 0 : i32
    %c0_i32_0 = arith.constant 0 : i32
    %c0_i32_1 = arith.constant 0 : i32
    return %arg0, %c0_i32, %c0_i32_0 : i32, i32, i32
  }
  func.func @transform_13(%arg0: i32) -> (i32, i32) {
    %c0_i32 = arith.constant 0 : i32
    %c0_i32_0 = arith.constant 0 : i32
    return %arg0, %c0_i32 : i32, i32
  }
  func.func @transform_14(%arg0: i32) -> (i32, i32) {
    %c0_i32 = arith.constant 0 : i32
    %c0_i32_0 = arith.constant 0 : i32
    return %arg0, %c0_i32 : i32, i32
  }
  func.func @transform_15(%arg0: i32) -> (i32, i32) {
    %c0_i32 = arith.constant 0 : i32
    %c0_i32_0 = arith.constant 0 : i32
    return %arg0, %c0_i32 : i32, i32
  }
  func.func @transform_16(%arg0: i32) -> (i32, i32, i32) {
    %c0_i32 = arith.constant 0 : i32
    %c0_i32_0 = arith.constant 0 : i32
    %c0_i32_1 = arith.constant 0 : i32
    return %arg0, %c0_i32, %c0_i32_0 : i32, i32, i32
  }
}

</mosaic_0001>

<bundles_post_ra>
// kernel: tpu_custom_call.1
= control target key start
LH: loop header
LB: loop body
LE: loop exit
PB: predicated region body
PF: predicated region fallthrough
CT: control target
= control target key end

     0   :  { %s5244_s0 = inlined_call_operand.vmem [shape: f32[24,32], index: 0, kind: input, shape index: {}]   ;;  %s5245_s1 = inlined_call_operand.vmem [shape: f32[32,768], index: 1, kind: input, shape index: {}]   ;;  %s5246_s2 = inlined_call_operand.vmem [shape: f32[1,768], index: 2, kind: input, shape index: {}]   ;;  %s5247_s3 = inlined_call_operand.vmem [shape: f32[1,384], index: 3, kind: input, shape index: {}]   ;;  %s5248_s4 = inlined_call_operand.vmem [shape: f32[1,384], index: 4, kind: input, shape index: {}]   ;;  %s5249_s5 = inlined_call_operand.vmem [shape: f32[384,300], index: 5, kind: input, shape index: {}]   ;;  %s5250_s6 = inlined_call_operand.vmem [shape: f32[1,300], index: 6, kind: input, shape index: {}]   ;;  %s5251_s7 = inlined_call_operand.vmem [shape: f32[1,384], index: 7, kind: input, shape index: {}]   ;;  %s5252_s8 = inlined_call_operand.vmem [shape: f32[1,384], index: 8, kind: input, shape index: {}]   ;;  %s5253_s9 = inlined_call_operand.vmem [shape: f32[384,600], index: 9, kind: input, shape index: {}]   ;;  %s5254_s10 = inlined_call_operand.vmem [shape: f32[1,600], index: 10, kind: input, shape index: {}]   ;;  %s5255_s11 = inlined_call_operand.vmem [shape: f32[24,300], index: 11, kind: input, shape index: {}]   ;;  %s5256_s12 = inlined_call_operand.vmem [shape: f32[24,4,300], index: 12, kind: input, shape index: {}]   ;;  %s5257_s13 = inlined_call_operand.vmem [shape: f32[24,600], index: 13, kind: input, shape index: {}]   ;;  %s5258_s14 = inlined_call_operand.hbm [shape: f32[24,300], index: 14, kind: output, shape index: {0}]   ;;  %s5259_s15 = inlined_call_operand.hbm [shape: f32[24,600], index: 15, kind: output, shape index: {1}]   ;;  %s5260_s16 = inlined_call_operand.hbm [shape: f32[3,8,128], index: 16, kind: output, shape index: {2}]  }
   0x1   :  { %5271 = sst [smem:[#allocation15_spill]] %s5244_s0 }
   0x2   :  { %5272 = sst [smem:[#allocation16_spill]] %s5245_s1 }
   0x3   :  { %5273 = sst [smem:[#allocation17_spill]] %s5246_s2 }
   0x4   :  { %5274 = sst [smem:[#allocation18_spill]] %s5247_s3 }
   0x5   :  { %5275 = sst [smem:[#allocation19_spill]] %s5248_s4 }
   0x6   :  { %5276 = sst [smem:[#allocation20_spill]] %s5258_s14 }
   0x7   :  { %5277 = sst [smem:[#allocation21_spill]] %s5260_s16 }
   0x8   :  { %22 = vsyncpa [#allocation3], 0 }
   0x9   :  { %24 = vsyncpa [#allocation3 + $0x1], 0 }
   0xa   :  { %25 = vsyncpa [#allocation5], 0 }
   0xb   :  { %27 = vsyncpa [#allocation5 + $0x1], 0  ;;  %s3197_s21 = smov 0   ;;  %s3199_s22 = smov 0  }
   0xc   :  { %s3201_s23 = smov 0   ;;  %s3203_s24 = smov 0  }
   0xd LB: > { %5278 = sst [smem:[#allocation9_spill]] %s3095_s21  ;;  %s3218_s25 = sadd.s32 4294967295, %s3107_s24   ;;  %s3107_s24 = sphi %s3203_s24, %s5307_s24   ;;  %s3103_s23 = sphi %s3201_s23, %s5309_s23   ;;  %s3099_s22 = sphi %s3199_s22, %s5311_s22   ;;  %s3095_s21 = sphi %s3197_s21, %s5310_s21  }
   0xe   : > { %5279 = sst [smem:[#allocation10_spill]] %s3103_s23  ;;  %s5261_s26 = sadd.s32 4294967294, %s3107_s24  }
   0xf   : > { %5280 = sst [smem:[#allocation11_spill]] %s3107_s24  ;;  %s3222_s27 = sadd.s32 1, %s3107_s24  }
  0x10   : > { %5281 = sst [smem:[#allocation12_spill]] %s3222_s27  ;;  %s354_s28 = sadd.s32 1, %s3103_s23 }
  0x11   : > { %s351_s29 = ssub.s32 %s3107_s24, %s3222_s27  ;;  %p364_p0 = scmp.ne.s32.totalorder %s3103_s23, %s3099_s22 }
  0x12   : > { %p352_p1 = scmp.eq.s32.totalorder %s351_s29, 0  ;;  %p365_p2 = scmp.eq.s32.totalorder %s3218_s25, 2 }
  0x13   : > { %p370_p3 = scmp.ne.s32.totalorder %s3099_s22, %s3095_s21  ;;  %p371_p4 = scmp.eq.s32.totalorder %s5261_s26, 2 }
  0x14   : > { %s3235_s30 = scalar_select %p352_p1, %s3103_s23, %s354_s28  }
  0x15   : > { %p3237_p5 = por %p365_p2, %p364_p0  ;;  %p3241_p6 = por %p371_p4, %p370_p3 }
  0x16   : > { %5282 = sst [smem:[#allocation13_spill]] %s3235_s30  ;;  %p2842_p7 = scmp.ge.s32.totalorder %s3107_s24, 1 }
  0x17   : > { %s5284_s17 = scalar_select %p3241_p6, 1, 0 }
  0x18   : > { %p504_p8 = scmp.lt.s32.totalorder %s3107_s24, 4 }
  0x19   : > { %5285 = sst [smem:[#allocation14_spill]] %s5284_s17 }
  0x1a   : > { %p505_p9 = pnand %p2842_p7, %p504_p8 }
  0x1b   : > { %s5286_s1 = sld [smem:[#allocation16_spill]] (!%p505_p9)  ;;  %p579_p10 = scmp.lt.s32.totalorder (!%p505_p9), %s3218_s25, 2 }
  0x1c   : > { %508 = sbr.rel (%p505_p9) target bundleno = 1514 (0x5ea), region = 76  ;;  %s5287_s16 = sld [smem:[#allocation15_spill]] (!%p505_p9) }
  0x1d   : > { %s5288_s2 = sld [smem:[#allocation17_spill]] (!%p505_p9)  ;;  %s4719_s19 = sand.u32 (!%p505_p9), 1, %s3099_s22  }
  0x1e   : > { %s5289_s3 = sld [smem:[#allocation18_spill]] (!%p505_p9)  ;;  %s2867_s17 = smul.u32 (!%p505_p9), 40, %s4719_s19 }
  0x1f   : > { %s5290_s4 = sld [smem:[#allocation19_spill]] (!%p505_p9) }
  0x21   : > { %v621_v0 = vld [vmem:[%s5286_s1 + $0xa0] sm:$0xff]  ;;  %v615_v1 = vld [vmem:[%s5286_s1 + $0x70] sm:$0xff]  ;;  %v620_v3 = vld [vmem:[%s5286_s1 + $0x98] sm:$0xff]  ;;  %s3270_s26 = scalar_select %p579_p10, %s3218_s25, 2  ;;  %vm639_vm0 = vcmask 261120   ;;  %v769_v62 = vlaneseq  ;;  %vm1956_vm1 = vcmask 1043456  }
  0x22   : > { %v619_v2 = vld [vmem:[%s5286_s1 + $0x90] sm:$0xff]  ;;  %695 = vmatpush.msra.mxu2 %v621_v0  ;;  %v613_v4 = vld [vmem:[%s5286_s1 + $0x60] sm:$0xff]  ;;  %675 = vmatpush.msra.mxu1 %v620_v3  ;;  %v614_v6 = vld [vmem:[%s5286_s1 + $0x68] sm:$0xff]  ;;  %vm1960_vm2 = vcmask 355328   ;;  %vm1778_vm13 = vcmask 359424  }
  0x23   : > { %655 = vmatpush.msra.mxu0 %v619_v2  ;;  %v609_v5 = vld [vmem:[%s5286_s1 + $0x40] sm:$0xff]  ;;  %v607_v7 = vld [vmem:[%s5286_s1 + $0x30] sm:$0xff]  ;;  %v608_v8 = vld [vmem:[%s5286_s1 + $0x38] sm:$0xff]  ;;  %s2844_s18 = sshll.u32 %s3270_s26, 3  ;;  %s2870_s24 = smul.u32 40, %s3270_s26 }
  0x24   : > { %696 = vmatpush.msra.mxu2 %v615_v1  ;;  %676 = vmatpush.msra.mxu1 %v614_v6  ;;  %v603_v9 = vld [vmem:[%s5286_s1 + $0x10] sm:$0xff]  ;;  %v601_v10 = vld [vmem:[%s5286_s1] sm:$0xff]  ;;  %v622_v11 = vld [vmem:[%s5286_s1 + $0xa8] sm:$0xff]  ;;  %s582_s23 = scalar_lea.vmem %s5287_s16, %s2844_s18  ;;  %s4844_s16 = scalar_lea.vmem [#allocation4], %s2867_s17 }
  0x25   : > { %656 = vmatpush.msra.mxu0 %v613_v4  ;;  %v602_v12 = vld [vmem:[%s5286_s1 + $0x8] sm:$0xff]  ;;  %v600_v13 = vld [vmem:[%s582_s23] sm:$0xff]  ;;  %715 = vmatpush.msra.mxu3 %v622_v11  ;;  %v616_v14 = vld [vmem:[%s5286_s1 + $0x78] sm:$0xff]  ;;  %s3367_s23 = sshll.u32 %s3218_s25, 3  ;;  %v3385_v4 = vand.u32 127, %v769_v62  ;;  %s4852_s28 = scalar_lea.vmem %s5257_s13, %s2870_s24 }
  0x26   : > { %697 = vmatpush.msra.mxu2 %v609_v5  ;;  %677 = vmatpush.msra.mxu1 %v608_v8  ;;  %v623_v15 = vld [vmem:[%s5286_s1 + $0xb0] sm:$0xff]  ;;  %v624_v16 = vld [vmem:[%s5286_s1 + $0xb8] sm:$0xff]  ;;  %v610_v17 = vld [vmem:[%s5286_s1 + $0x48] sm:$0xff]  ;;  %p589_p11 = scmp.lt.s32.totalorder %s3367_s23, 23 }
  0x27   : > { %657 = vmatpush.msra.mxu0 %v607_v7  ;;  %v617_v18 = vld [vmem:[%s5286_s1 + $0x80] sm:$0xff]  ;;  %716 = vmatpush.msra.mxu3 %v616_v14  ;;  %v618_v19 = vld [vmem:[%s5286_s1 + $0x88] sm:$0xff]  ;;  %v604_v20 = vld [vmem:[%s5286_s1 + $0x18] sm:$0xff] }
  0x28   : > { %698 = vmatpush.msra.mxu2 %v603_v9  ;;  %678 = vmatpush.msra.mxu1 %v602_v12  ;;  %v611_v21 = vld [vmem:[%s5286_s1 + $0x50] sm:$0xff]  ;;  %v612_v22 = vld [vmem:[%s5286_s1 + $0x58] sm:$0xff]  ;;  %v605_v23 = vld [vmem:[%s5286_s1 + $0x20] sm:$0xff]  ;;  %s590_s27 = scalar_select %p589_p11, %s3367_s23, 23 }
  0x29   : > { %658 = vmatpush.msra.mxu0 %v601_v10  ;;  %2851 = vmatmul.msk.f32.vlgmr.msra.gmra.mxu2 %vm639_vm0, %v600_v13  ;;  %v606_v24 = vld [vmem:[%s5286_s1 + $0x28] sm:$0xff]  ;;  %v625_v25 = vld [vmem:[%s5288_s2] sm:$0x3f] }
  0x2a   : > { %2849 = vmatmul.msk.f32.vlgmr.msra.gmra.mxu0 %vm639_vm0, %v600_v13  ;;  %2850 = vmatmul.msk.f32.vlgmr.msra.gmra.mxu1 %vm639_vm0, %v600_v13  ;;  %v627_v26 = vperm.slane %v625_v25, 0  ;;  %v628_v27 = vperm.slane %v625_v25, 1  ;;  %v629_v32 = vperm.slane %v625_v25, 2  ;;  %v631_v36 = vperm.slane %v625_v25, 4  ;;  %s2869_s30 = smul.u32 12, %s590_s27  ;;  %v937_v6 = vld [vmem:[%s5249_s5 + $0x168] sm:$0xff] }
  0x2b   : > { %735 = vmatpush.msrb.mxu0 %v623_v15  ;;  %755 = vmatpush.msrb.mxu1 %v624_v16  ;;  %v632_v39 = vperm.slane %v625_v25, 5  ;;  %v630_v42 = vperm.slane %v625_v25, 3  ;;  %v985_v7 = vld [vmem:[%s5249_s5 + $0x2e8] sm:$0xff]  ;;  %v938_v16 = vld [vmem:[%s5249_s5 + $0x170] sm:$0xff] }
  0x2c   : > { %717 = vmatpush.msra.mxu3 %v610_v17  ;;  %s3374_s20 = scalar_lea.vmem %s5256_s12, %s2869_s30  ;;  %v1033_v8 = vld [vmem:[%s5249_s5 + $0x468] sm:$0xff]  ;;  %1044 = vmatpush.msrb.mxu2 %v937_v6  ;;  %v982_v25 = vld [vmem:[%s5249_s5 + $0x2d0] sm:$0xff]  ;;  %v919_v6 = vld [vmem:[%s5249_s5 + $0xd8] sm:$0xff]  ;;  %s2866_s30 = smul.u32 24, %s4719_s19 }
  0x2d   : > { %736 = vmatpush.msrb.mxu0 %v617_v18  ;;  %756 = vmatpush.msrb.mxu1 %v618_v19  ;;  %v1799_v54 = vld [vmem:[%s3374_s20 + $0xc] sm:$0xff]  ;;  %v1800_v55 = vld [vmem:[%s3374_s20 + $0x14] sm:$0xf]  ;;  %v1797_v58 = vld [vmem:[%s3374_s20] sm:$0xff] }
  0x2e   : > { %718 = vmatpush.msra.mxu3 %v604_v20  ;;  %v1859_v56 = vmul.f32 %v1799_v54, %v1799_v54  ;;  %v1860_v57 = vmul.f32 %v1800_v55, %v1800_v55  ;;  %v1798_v59 = vld [vmem:[%s3374_s20 + $0x8] sm:$0xf]  ;;  %v1857_v60 = vmul.f32 %v1797_v58, %v1797_v58  ;;  %v1804_v63 = vld [vmem:[%s3374_s20 + $0x2c] sm:$0xf]  ;;  %v1801_v1 = vld [vmem:[%s3374_s20 + $0x18] sm:$0xff]  ;;  %s4787_s14 = scalar_lea.vmem [#allocation2], %s2866_s30 }
  0x2f   : > { %737 = vmatpush.msrb.mxu0 %v611_v21  ;;  %2852 = vmatmul.msk.f32.vlgmr.msra.gmra.mxu3 %vm639_vm0, %v600_v13  ;;  %v1858_v61 = vmul.f32 %v1798_v59, %v1798_v59  ;;  %v1803_v0 = vld [vmem:[%s3374_s20 + $0x24] sm:$0xff]  ;;  %v1864_v2 = vmul.f32 %v1804_v63, %v1804_v63  ;;  %v1802_v3 = vld [vmem:[%s3374_s20 + $0x20] sm:$0xf]  ;;  %v1861_v11 = vmul.f32 %v1801_v1, %v1801_v1  ;;  %v934_v21 = vld [vmem:[%s5249_s5 + $0x150] sm:$0xff]  ;;  %v3109_v1 = vmov 0.0   ;;  %s2868_s30 = smul.u32 24, %s3270_s26 }
  0x30   : > { %757 = vmatpush.msrb.mxu1 %v612_v22  ;;  %1896 = vst [vmem:[#allocation1 + $0x20] ss:$2 sm:$0xff] %v1859_v56  ;;  %v1863_v5 = vmul.f32 %v1803_v0, %v1803_v0  ;;  %1064 = vmatpush.msrb.mxu3 %v985_v7  ;;  %v1862_v15 = vmul.f32 %v1802_v3, %v1802_v3  ;;  %v922_v54 = vld [vmem:[%s5249_s5 + $0xf0] sm:$0xff]  ;;  %s2630_s26 = sand.u32 1, %s3218_s25  }
  0x31   : > { %738 = vmatpush.msrb.mxu0 %v605_v23  ;;  %1898 = vst [vmem:[#allocation1 + $0x30] ss:$2 sm:$0xff] %v1860_v57  ;;  %v1805_v23 = vld [vmem:[%s3374_s20 + $0x30] sm:$0xff]  ;;  %1045 = vmatpush.msrb.mxu2 %v934_v21  ;;  %v923_v57 = vld [vmem:[%s5249_s5 + $0xf8] sm:$0xff]  ;;  %v961_v21 = vld [vmem:[%s5249_s5 + $0x228] sm:$0xff]  ;;  %s587_s21 = scalar_lea.vmem %s5255_s11, %s2868_s30  ;;  %s2875_s30 = smul.u32 24, %s3218_s25 }
  0x32   : > { %2853 = vmatmul.msk.f32.vlgmr.msrb.gmra.mxu0 %vm639_vm0, %v600_v13  ;;  %758 = vmatpush.msrb.mxu1 %v606_v24  ;;  %1889 = vst [vmem:[#allocation1] ss:$2 sm:$0xff] %v1857_v60  ;;  %v970_v55 = vld [vmem:[%s5249_s5 + $0x270] sm:$0xff]  ;;  %s5177_s18 = scalar_lea.sflag [#allocation5], %s2630_s26 }
  0x33   : > { %2854 = vmatmul.msk.f32.vlgmr.msrb.gmra.mxu1 %vm639_vm0, %v600_v13  ;;  %1891 = vst [vmem:[#allocation1 + $0x10] ss:$2 sm:$0xff] %v1858_v61  ;;  %1084 = vmatpush.msra.mxu0 %v1033_v8  ;;  %v1018_v56 = vld [vmem:[%s5249_s5 + $0x3f0] sm:$0xff] }
  0x34   : > { %1104 = vmatpush.msra.mxu1 %v938_v16  ;;  %1065 = vmatpush.msrb.mxu3 %v982_v25 }
  0x37   : > { %v1899_v9 = vld.sshfl [vmem:[#allocation1 + $0x20] sm:$0xff pattern:$0x75316420]  ;;  %v1900_v10 = vld.sshfl [vmem:[#allocation1 + $0x28] sm:$0xff pattern:$0x75316420] }
  0x38   : > { %v1901_v12 = vld.sshfl [vmem:[#allocation1 + $0x30] sm:$0xff pattern:$0x75316420]  ;;  %v1965_v13 = vsel %vm1956_vm1, %v1899_v9, 0.0  ;;  %v1966_v14 = vsel %vm1956_vm1, %v1900_v10, 0.0 }
  0x39   : > { %1908 = vst [vmem:[#allocation1 + $0x30] ss:$2 sm:$0xff] %v1864_v2  ;;  %v1967_v17 = vadd.f32 %v1966_v14, %v1965_v13  ;;  %v1968_v18 = vsel %vm1960_vm2, %v1901_v12, 0.0  ;;  %v3402_v19 = vld.sshfl [vmem:[#allocation1] sm:$0xff pattern:$0x75316420] }
  0x3a   : > { %1907 = vst [vmem:[#allocation1 + $0x20] ss:$2 sm:$0xff] %v1863_v5  ;;  %v3404_v20 = vld.sshfl [vmem:[#allocation1 + $0x8] sm:$0xff pattern:$0x75316420]  ;;  %v916_v12 = vld [vmem:[%s5249_s5 + $0xc0] sm:$0xff] }
  0x3b   : > { %v1969_v22 = vadd.f32 %v1968_v18, %v1967_v17  ;;  %v3410_v24 = vld.sshfl [vmem:[#allocation1 + $0x10] sm:$0xff pattern:$0x75316420]  ;;  %1902 = vst [vmem:[#allocation1] ss:$2 sm:$0xff] %v1861_v11  ;;  %v967_v11 = vld [vmem:[%s5249_s5 + $0x258] sm:$0xff] }
  0x3c   : > { %1903 = vst [vmem:[#allocation1 + $0x10] ss:$2 sm:$0xff] %v1862_v15  ;;  %v964_v13 = vld [vmem:[%s5249_s5 + $0x240] sm:$0xff]  ;;  %v917_v15 = vld [vmem:[%s5249_s5 + $0xc8] sm:$0xff] }
  0x3d   : > { %1970 = vadd.xlane.f32.xlu2 %v1969_v22  ;;  %v1012_v14 = vld [vmem:[%s5249_s5 + $0x3c0] sm:$0xff]  ;;  %v913_v18 = vld [vmem:[%s5249_s5 + $0xa8] sm:$0xff] }
  0x3e   : > { %v1009_v22 = vld [vmem:[%s5249_s5 + $0x3a8] sm:$0xff] }
  0x42   : > { %v1904_v59 = vld.sshfl [vmem:[#allocation1] sm:$0xff pattern:$0x75316420]  ;;  %v1905_v60 = vld.sshfl [vmem:[#allocation1 + $0x8] sm:$0xff pattern:$0x75316420] }
  0x43   : > { %v1906_v63 = vld.sshfl [vmem:[#allocation1 + $0x10] sm:$0xff pattern:$0x75316420]  ;;  %v1972_v0 = vsel %vm1956_vm1, %v1904_v59, 0.0  ;;  %v1973_v3 = vsel %vm1956_vm1, %v1905_v60, 0.0 }
  0x44   : > { %v1975_v5 = vsel %vm1960_vm2, %v1906_v63, 0.0  ;;  %v1974_v10 = vadd.f32 %v1973_v3, %v1972_v0  ;;  %v898_v59 = vld [vmem:[%s5249_s5 + $0x30] sm:$0xff]  ;;  %v899_v63 = vld [vmem:[%s5249_s5 + $0x38] sm:$0xff] }
  0x45   : > { %v946_v60 = vld [vmem:[%s5249_s5 + $0x1b0] sm:$0xff]  ;;  %v895_v0 = vld [vmem:[%s5249_s5 + $0x18] sm:$0xff] }
  0x46   : > { %v991_v3 = vld [vmem:[%s5249_s5 + $0x318] sm:$0xff] }
  0xa7   : > { %v660_v28 = vpop.f32.mrf.mxu0  ;;  %v680_v29 = vpop.f32.mrf.mxu1 }
  0xa8   : > { %v3336_v30 = vadd.f32 %v660_v28, %v627_v26  ;;  %v3338_v31 = vadd.f32 %v680_v29, %v628_v27  ;;  %v1030_v26 = vld [vmem:[%s5249_s5 + $0x450] sm:$0xff]  ;;  %v935_v27 = vld [vmem:[%s5249_s5 + $0x158] sm:$0xff]  ;;  %v772_v29 = vadd.s32 256, %v3385_v4 }
  0xa9   : > { %v931_v28 = vld [vmem:[%s5249_s5 + $0x138] sm:$0xff]  ;;  %1085 = vmatpush.msra.mxu0 %v1030_v26  ;;  %1105 = vmatpush.msra.mxu1 %v935_v27  ;;  %v914_v26 = vld [vmem:[%s5249_s5 + $0xb0] sm:$0xff] }
  0xaa   : > { %v763_v33 = vmax.f32 %v3336_v30, 0.0  ;;  %v764_v34 = vmax.f32 %v3338_v31, 0.0  ;;  %1046 = vmatpush.msrb.mxu2 %v931_v28  ;;  %vm775_vm3 = vcmp.lt.s32.totalorder %v772_v29, 300  ;;  %v1015_v30 = vld [vmem:[%s5249_s5 + $0x3d8] sm:$0xff]  ;;  %v920_v31 = vld [vmem:[%s5249_s5 + $0xe0] sm:$0xff]  ;;  %v910_v27 = vld [vmem:[%s5249_s5 + $0x90] sm:$0xff] }
  0xab   : > { %v3473_v2 = vsel %vm775_vm3, 1.0, %v3109_v1  ;;  %v958_v29 = vld [vmem:[%s5249_s5 + $0x210] sm:$0xff] }
  0xac   : > { %v700_v35 = vpop.f32.mrf.mxu2  ;;  %v784_v38 = vadd.f32 %v764_v34, %v763_v33 }
  0xad   : > { %v3342_v37 = vadd.f32 %v700_v35, %v629_v32  ;;  %v979_v32 = vld [vmem:[%s5249_s5 + $0x2b8] sm:$0xff] }
  0xae   : > { %v1027_v35 = vld [vmem:[%s5249_s5 + $0x438] sm:$0xff]  ;;  %1066 = vmatpush.msrb.mxu3 %v979_v32  ;;  %v1006_v32 = vld [vmem:[%s5249_s5 + $0x390] sm:$0xff] }
  0xaf   : > { %v765_v40 = vmax.f32 %v3342_v37, 0.0  ;;  %v740_v41 = vpop.f32.mrf.mxu0  ;;  %1086 = vmatpush.msra.mxu0 %v1027_v35  ;;  %v911_v35 = vld [vmem:[%s5249_s5 + $0x98] sm:$0xff] }
  0xb0   : > { %v3349_v43 = vadd.f32 %v740_v41, %v631_v36  ;;  %v760_v44 = vpop.f32.mrf.mxu1  ;;  %v932_v36 = vld [vmem:[%s5249_s5 + $0x140] sm:$0xff] }
  0xb1   : > { %v785_v45 = vadd.f32 %v784_v38, %v765_v40  ;;  %v3353_v46 = vadd.f32 %v760_v44, %v632_v39  ;;  %v928_v38 = vld [vmem:[%s5249_s5 + $0x120] sm:$0xff]  ;;  %v925_v44 = vld [vmem:[%s5249_s5 + $0x108] sm:$0xff]  ;;  %1106 = vmatpush.msra.mxu1 %v932_v36  ;;  %v907_v36 = vld [vmem:[%s5249_s5 + $0x78] sm:$0xff] }
  0xb2   : > { %v720_v47 = vpop.f32.mrf.mxu3  ;;  %v767_v49 = vmax.f32 %v3349_v43, 0.0  ;;  %v976_v39 = vld [vmem:[%s5249_s5 + $0x2a0] sm:$0xff]  ;;  %1047 = vmatpush.msrb.mxu2 %v928_v38 }
  0xb3   : > { %786 = vadd.xlane.f32.xlu0 %v785_v45  ;;  %v3355_v48 = vadd.f32 %v720_v47, %v630_v42  ;;  %v768_v51 = vmax.f32 %v3353_v46, 0.0  ;;  %v1024_v41 = vld [vmem:[%s5249_s5 + $0x420] sm:$0xff]  ;;  %v929_v42 = vld [vmem:[%s5249_s5 + $0x128] sm:$0xff]  ;;  %v1865_v47 = vmul.f32 %v1805_v23, %v1805_v23  ;;  %1067 = vmatpush.msrb.mxu3 %v976_v39 }
  0xb4   : > { %v973_v45 = vld [vmem:[%s5249_s5 + $0x288] sm:$0xff]  ;;  %1087 = vmatpush.msra.mxu0 %v1024_v41  ;;  %1107 = vmatpush.msra.mxu1 %v929_v42  ;;  %v955_v42 = vld [vmem:[%s5249_s5 + $0x1f8] sm:$0xff]  ;;  %v908_v43 = vld [vmem:[%s5249_s5 + $0x80] sm:$0xff] }
  0xb5   : > { %v766_v50 = vmax.f32 %v3355_v48, 0.0  ;;  %1048 = vmatpush.msrb.mxu2 %v925_v44  ;;  %1068 = vmatpush.msrb.mxu3 %v973_v45  ;;  %1912 = vst [vmem:[#allocation1] ss:$2 sm:$0xff] %v1865_v47  ;;  %v1003_v48 = vld [vmem:[%s5249_s5 + $0x378] sm:$0xff]  ;;  %v904_v46 = vld [vmem:[%s5249_s5 + $0x60] sm:$0xff]  ;;  %v905_v47 = vld [vmem:[%s5249_s5 + $0x68] sm:$0xff] }
  0xb6   : > { %v952_v44 = vld [vmem:[%s5249_s5 + $0x1e0] sm:$0xff] }
  0xb7   : > { %v839_v52 = vadd.f32 %v767_v49, %v766_v50  ;;  %1049 = vmatpush.msrb.mxu2 %v922_v54  ;;  %1069 = vmatpush.msrb.mxu3 %v970_v55  ;;  %v1000_v45 = vld [vmem:[%s5249_s5 + $0x360] sm:$0xff]  ;;  %v949_v55 = vld [vmem:[%s5249_s5 + $0x1c8] sm:$0xff] }
  0xb9   : > { %v840_v53 = vadd.f32 %v839_v52, %v768_v51  ;;  %v1021_v52 = vld [vmem:[%s5249_s5 + $0x408] sm:$0xff]  ;;  %1050 = vmatpush.msrb.mxu2 %v919_v6  ;;  %1070 = vmatpush.msrb.mxu3 %v967_v11  ;;  %v892_v6 = vld [vmem:[%s5249_s5] sm:$0xff] }
  0xba   : > { %1088 = vmatpush.msra.mxu0 %v1021_v52  ;;  %v901_v52 = vld [vmem:[%s5249_s5 + $0x48] sm:$0xff]  ;;  %v988_v11 = vld [vmem:[%s5249_s5 + $0x300] sm:$0xff] }
  0xbb   : > { %841 = vadd.xlane.f32.xlu1 %v840_v53  ;;  %v926_v53 = vld [vmem:[%s5249_s5 + $0x110] sm:$0xff]  ;;  %1051 = vmatpush.msrb.mxu2 %v916_v12  ;;  %v1031_v12 = vld [vmem:[%s5249_s5 + $0x458] sm:$0xff] }
  0xbc   : > { %1108 = vmatpush.msra.mxu1 %v926_v53  ;;  %1089 = vmatpush.msra.mxu0 %v1018_v56  ;;  %v997_v56 = vld [vmem:[%s5249_s5 + $0x348] sm:$0xff] }
  0xbd   : > { %1071 = vmatpush.msrb.mxu3 %v964_v13  ;;  %1052 = vmatpush.msrb.mxu2 %v913_v18  ;;  %v936_v13 = vld [vmem:[%s5249_s5 + $0x160] sm:$0xff]  ;;  %v981_v18 = vld [vmem:[%s5249_s5 + $0x2c8] sm:$0xff] }
  0xbe   : > { %1109 = vmatpush.msra.mxu1 %v923_v57  ;;  %1090 = vmatpush.msra.mxu0 %v1015_v30  ;;  %v902_v57 = vld [vmem:[%s5249_s5 + $0x50] sm:$0xff]  ;;  %v893_v30 = vld [vmem:[%s5249_s5 + $0x8] sm:$0xff] }
  0xbf   : > { %1072 = vmatpush.msrb.mxu3 %v961_v21  ;;  %1053 = vmatpush.msrb.mxu2 %v910_v27  ;;  %v977_v21 = vld [vmem:[%s5249_s5 + $0x2a8] sm:$0xff]  ;;  %v1022_v27 = vld [vmem:[%s5249_s5 + $0x410] sm:$0xff] }
  0xc0   : > { %1110 = vmatpush.msra.mxu1 %v920_v31  ;;  %1091 = vmatpush.msra.mxu0 %v1012_v14  ;;  %v986_v31 = vld [vmem:[%s5249_s5 + $0x2f0] sm:$0xff]  ;;  %v984_v14 = vld [vmem:[%s5249_s5 + $0x2e0] sm:$0xff] }
  0xc1   : > { %1073 = vmatpush.msrb.mxu3 %v958_v29  ;;  %1054 = vmatpush.msrb.mxu2 %v907_v36  ;;  %v975_v29 = vld [vmem:[%s5249_s5 + $0x298] sm:$0xff]  ;;  %v924_v36 = vld [vmem:[%s5249_s5 + $0x100] sm:$0xff] }
  0xc2   : > { %1111 = vmatpush.msra.mxu1 %v917_v15  ;;  %1092 = vmatpush.msra.mxu0 %v1009_v22  ;;  %v980_v15 = vld [vmem:[%s5249_s5 + $0x2c0] sm:$0xff]  ;;  %v1025_v22 = vld [vmem:[%s5249_s5 + $0x428] sm:$0xff] }
  0xc3   : > { %1074 = vmatpush.msrb.mxu3 %v955_v42  ;;  %1055 = vmatpush.msrb.mxu2 %v904_v46  ;;  %v972_v42 = vld [vmem:[%s5249_s5 + $0x280] sm:$0xff]  ;;  %v921_v46 = vld [vmem:[%s5249_s5 + $0xe8] sm:$0xff] }
  0xc4   : > { %1112 = vmatpush.msra.mxu1 %v914_v26  ;;  %1093 = vmatpush.msra.mxu0 %v1006_v32  ;;  %v974_v26 = vld [vmem:[%s5249_s5 + $0x290] sm:$0xff]  ;;  %v971_v32 = vld [vmem:[%s5249_s5 + $0x278] sm:$0xff] }
  0xc5   : > { %1075 = vmatpush.msrb.mxu3 %v952_v44  ;;  %1056 = vmatpush.msrb.mxu2 %v901_v52  ;;  %v918_v44 = vld [vmem:[%s5249_s5 + $0xd0] sm:$0xff] }
  0xc6   : > { %1113 = vmatpush.msra.mxu1 %v911_v35  ;;  %1094 = vmatpush.msra.mxu0 %v1003_v48  ;;  %v1019_v35 = vld [vmem:[%s5249_s5 + $0x3f8] sm:$0xff]  ;;  %v968_v48 = vld [vmem:[%s5249_s5 + $0x260] sm:$0xff]  ;;  %v1010_v52 = vld [vmem:[%s5249_s5 + $0x3b0] sm:$0xff] }
  0xc7   : > { %1076 = vmatpush.msrb.mxu3 %v949_v55  ;;  %1057 = vmatpush.msrb.mxu2 %v898_v59  ;;  %v959_v55 = vld [vmem:[%s5249_s5 + $0x218] sm:$0xff]  ;;  %v956_v59 = vld [vmem:[%s5249_s5 + $0x200] sm:$0xff] }
  0xc8   : > { %1114 = vmatpush.msra.mxu1 %v908_v43  ;;  %1095 = vmatpush.msra.mxu0 %v1000_v45  ;;  %v1016_v43 = vld [vmem:[%s5249_s5 + $0x3e0] sm:$0xff]  ;;  %v966_v45 = vld [vmem:[%s5249_s5 + $0x250] sm:$0xff] }
  0xc9   : > { %1077 = vmatpush.msrb.mxu3 %v946_v60  ;;  %1058 = vmatpush.msrb.mxu2 %v895_v0  ;;  %v1004_v60 = vld [vmem:[%s5249_s5 + $0x380] sm:$0xff]  ;;  %v953_v0 = vld [vmem:[%s5249_s5 + $0x1e8] sm:$0xff] }
  0xca   : > { %1115 = vmatpush.msra.mxu1 %v905_v47  ;;  %1096 = vmatpush.msra.mxu0 %v997_v56  ;;  %v962_v47 = vld [vmem:[%s5249_s5 + $0x230] sm:$0xff]  ;;  %v1007_v56 = vld [vmem:[%s5249_s5 + $0x398] sm:$0xff] }
  0xcb   : > { %1059 = vmatpush.msrb.mxu2 %v892_v6  ;;  %v950_v6 = vld [vmem:[%s5249_s5 + $0x1d0] sm:$0xff] }
  0xcc   : > { %1116 = vmatpush.msra.mxu1 %v902_v57  ;;  %v912_v57 = vld [vmem:[%s5249_s5 + $0xa0] sm:$0xff] }
  0xcd   : > { %1124 = vmatpush.msra.mxu2 %v986_v31  ;;  %v947_v31 = vld [vmem:[%s5249_s5 + $0x1b8] sm:$0xff] }
  0xce   : > { %1117 = vmatpush.msra.mxu1 %v899_v63  ;;  %v957_v63 = vld [vmem:[%s5249_s5 + $0x208] sm:$0xff] }
 0x126   : > { %v787_v58 = vpop.xlane.xlu0 %786 }
 0x127   : > { %v788_v61 = vmul.f32 0.0033333334, %v787_v58 }
 0x129   : > { %v3482_v7 = vsub.f32 %v763_v33, %v788_v61  ;;  %v3486_v8 = vsub.f32 %v764_v34, %v788_v61  ;;  %v3490_v9 = vsub.f32 %v765_v40, %v788_v61  ;;  %v1976_v40 = vadd.f32 %v1975_v5, %v1974_v10  ;;  %v994_v61 = vld [vmem:[%s5249_s5 + $0x330] sm:$0xff]  ;;  %v896_v5 = vld [vmem:[%s5249_s5 + $0x20] sm:$0xff] }
 0x12a   : > { %1097 = vmatpush.msra.mxu0 %v994_v61  ;;  %v940_v10 = vld [vmem:[%s5249_s5 + $0x180] sm:$0xff]  ;;  %1118 = vmatpush.msra.mxu1 %v896_v5  ;;  %v909_v61 = vld [vmem:[%s5249_s5 + $0x88] sm:$0xff]  ;;  %v954_v5 = vld [vmem:[%s5249_s5 + $0x1f0] sm:$0xff] }
 0x12b   : > { %v794_v33 = vmul.f32 %v3473_v2, %v3490_v9  ;;  %v795_v34 = vmul.f32 %v3482_v7, %v3482_v7  ;;  %v796_v37 = vmul.f32 %v3486_v8, %v3486_v8  ;;  %1977 = vadd.xlane.f32.xlu2 %v1976_v40  ;;  %v983_v40 = vld [vmem:[%s5249_s5 + $0x2d8] sm:$0xff] }
 0x12c   : > { %1098 = vmatpush.msra.mxu0 %v991_v3  ;;  %1119 = vmatpush.msra.mxu1 %v893_v30  ;;  %v906_v3 = vld [vmem:[%s5249_s5 + $0x70] sm:$0xff]  ;;  %v951_v30 = vld [vmem:[%s5249_s5 + $0x1d8] sm:$0xff] }
 0x12d   : > { %v797_v16 = vmul.f32 %v794_v33, %v794_v33  ;;  %v798_v17 = vadd.f32 %v796_v37, %v795_v34  ;;  %v1034_v33 = vld [vmem:[%s5249_s5 + $0x470] sm:$0xff]  ;;  %v939_v34 = vld [vmem:[%s5249_s5 + $0x178] sm:$0xff]  ;;  %1125 = vmatpush.msra.mxu2 %v983_v40  ;;  %v944_v40 = vld [vmem:[%s5249_s5 + $0x1a0] sm:$0xff] }
 0x12e   : > { %v842_v25 = vpop.xlane.xlu1 %841  ;;  %v987_v37 = vld [vmem:[%s5249_s5 + $0x2f8] sm:$0xff]  ;;  %1099 = vmatpush.msra.mxu0 %v988_v11 }
 0x12f   : > { %v799_v23 = vadd.f32 %v798_v17, %v797_v16  ;;  %v843_v28 = vmul.f32 0.0033333334, %v842_v25  ;;  %1184 = vmatpush.msrb.mxu1 %v987_v37  ;;  %v1028_v16 = vld [vmem:[%s5249_s5 + $0x440] sm:$0xff]  ;;  %v933_v17 = vld [vmem:[%s5249_s5 + $0x148] sm:$0xff]  ;;  %1126 = vmatpush.msra.mxu2 %v980_v15  ;;  %v978_v25 = vld [vmem:[%s5249_s5 + $0x2b0] sm:$0xff] }
 0x130   : > { %1164 = vmatpush.msrb.mxu0 %v939_v34  ;;  %v903_v11 = vld [vmem:[%s5249_s5 + $0x58] sm:$0xff]  ;;  %v900_v34 = vld [vmem:[%s5249_s5 + $0x40] sm:$0xff]  ;;  %v941_v15 = vld [vmem:[%s5249_s5 + $0x188] sm:$0xff] }
 0x131   : > { %800 = vadd.xlane.f32.xlu0 %v799_v23  ;;  %v3548_v38 = vsub.f32 %v766_v50, %v843_v28  ;;  %v3552_v39 = vsub.f32 %v767_v49, %v843_v28  ;;  %v3556_v41 = vsub.f32 %v768_v51, %v843_v28  ;;  %1185 = vmatpush.msrb.mxu1 %v984_v14  ;;  %v930_v23 = vld [vmem:[%s5249_s5 + $0x130] sm:$0xff]  ;;  %v927_v28 = vld [vmem:[%s5249_s5 + $0x118] sm:$0xff]  ;;  %v948_v37 = vld [vmem:[%s5249_s5 + $0x1c0] sm:$0xff] }
 0x132   : > { %1165 = vmatpush.msrb.mxu0 %v936_v13  ;;  %1127 = vmatpush.msra.mxu2 %v977_v21  ;;  %v897_v13 = vld [vmem:[%s5249_s5 + $0x28] sm:$0xff] }
 0x133   : > { %v849_v49 = vmul.f32 %v3473_v2, %v3556_v41  ;;  %v850_v50 = vmul.f32 %v3548_v38, %v3548_v38  ;;  %v851_v51 = vmul.f32 %v3552_v39, %v3552_v39  ;;  %v943_v2 = vld [vmem:[%s5249_s5 + $0x198] sm:$0xff]  ;;  %1186 = vmatpush.msrb.mxu1 %v981_v18  ;;  %v945_v14 = vld [vmem:[%s5249_s5 + $0x1a8] sm:$0xff]  ;;  %v942_v18 = vld [vmem:[%s5249_s5 + $0x190] sm:$0xff] }
 0x134   : > { %1078 = vmatpush.msrb.mxu3 %v943_v2  ;;  %1166 = vmatpush.msrb.mxu0 %v933_v17  ;;  %v1001_v2 = vld [vmem:[%s5249_s5 + $0x368] sm:$0xff]  ;;  %v894_v17 = vld [vmem:[%s5249_s5 + $0x10] sm:$0xff] }
 0x135   : > { %v852_v53 = vmul.f32 %v849_v49, %v849_v49  ;;  %v853_v54 = vadd.f32 %v851_v51, %v850_v50  ;;  %1187 = vmatpush.msrb.mxu1 %v978_v25  ;;  %1128 = vmatpush.msra.mxu2 %v974_v26  ;;  %v969_v49 = vld [vmem:[%s5249_s5 + $0x268] sm:$0xff]  ;;  %v3825_v25 = vpop.xlane.xlu2 %1970 }
 0x136   : > { %1079 = vmatpush.msrb.mxu3 %v940_v10  ;;  %1167 = vmatpush.msrb.mxu0 %v930_v23  ;;  %v965_v50 = vld [vmem:[%s5249_s5 + $0x248] sm:$0xff]  ;;  %v998_v10 = vld [vmem:[%s5249_s5 + $0x350] sm:$0xff] }
 0x137   : > { %v854_v58 = vadd.f32 %v853_v54, %v852_v53  ;;  %1188 = vmatpush.msrb.mxu1 %v975_v29  ;;  %1129 = vmatpush.msra.mxu2 %v971_v32  ;;  %v1013_v51 = vld [vmem:[%s5249_s5 + $0x3c8] sm:$0xff]  ;;  %v915_v53 = vld [vmem:[%s5249_s5 + $0xb8] sm:$0xff] }
 0x138   : > { %1144 = vmatpush.msra.mxu3 %v1034_v33  ;;  %1168 = vmatpush.msrb.mxu0 %v927_v28  ;;  %v963_v54 = vld [vmem:[%s5249_s5 + $0x238] sm:$0xff] }
 0x139   : > { %855 = vadd.xlane.f32.xlu2 %v854_v58  ;;  %1189 = vmatpush.msrb.mxu1 %v972_v42  ;;  %v960_v58 = vld [vmem:[%s5249_s5 + $0x220] sm:$0xff]  ;;  %v995_v33 = vld [vmem:[%s5249_s5 + $0x338] sm:$0xff] }
 0x13a   : > { %1145 = vmatpush.msra.mxu3 %v1031_v12  ;;  %1169 = vmatpush.msrb.mxu0 %v924_v36  ;;  %v992_v12 = vld [vmem:[%s5249_s5 + $0x320] sm:$0xff] }
 0x13b   : > { %1130 = vmatpush.msra.mxu2 %v968_v48  ;;  %1190 = vmatpush.msrb.mxu1 %v969_v49  ;;  %v782_v36 = vld [vmem:[%s5289_s3] sm:$0x7] }
 0x13c   : > { %1146 = vmatpush.msra.mxu3 %v1028_v16  ;;  %1170 = vmatpush.msrb.mxu0 %v921_v46  ;;  %v989_v16 = vld [vmem:[%s5249_s5 + $0x308] sm:$0xff]  ;;  %v783_v42 = vld [vmem:[%s5290_s4] sm:$0x7]  ;;  %v819_v46 = vperm.slane %v782_v36, 1  ;;  %v820_v49 = vperm.slane %v782_v36, 2 }
 0x13d   : > { %1131 = vmatpush.msra.mxu2 %v965_v50  ;;  %1191 = vmatpush.msrb.mxu1 %v966_v45 }
 0x13e   : > { %1147 = vmatpush.msra.mxu3 %v1025_v22  ;;  %1171 = vmatpush.msrb.mxu0 %v918_v44  ;;  %v829_v44 = vperm.slane %v783_v42, 1 }
 0x13f   : > { %1132 = vmatpush.msra.mxu2 %v962_v47  ;;  %1192 = vmatpush.msrb.mxu1 %v963_v54 }
 0x140   : > { %1148 = vmatpush.msra.mxu3 %v1022_v27  ;;  %1172 = vmatpush.msrb.mxu0 %v915_v53  ;;  %v830_v53 = vperm.slane %v783_v42, 2 }
 0x141   : > { %1133 = vmatpush.msra.mxu2 %v959_v55  ;;  %1193 = vmatpush.msrb.mxu1 %v960_v58 }
 0x142   : > { %1149 = vmatpush.msra.mxu3 %v1019_v35  ;;  %1173 = vmatpush.msrb.mxu0 %v912_v57 }
 0x143   : > { %1134 = vmatpush.msra.mxu2 %v956_v59  ;;  %1194 = vmatpush.msrb.mxu1 %v957_v63  ;;  %v1035_v63 = vld [vmem:[%s5249_s5 + $0x478] sm:$0xff] }
 0x144   : > { %1150 = vmatpush.msra.mxu3 %v1016_v43  ;;  %1174 = vmatpush.msrb.mxu0 %v909_v61  ;;  %v818_v43 = vperm.slane %v782_v36, 0 }
 0x145   : > { %1135 = vmatpush.msra.mxu2 %v953_v0  ;;  %1195 = vmatpush.msrb.mxu1 %v954_v5  ;;  %v1032_v0 = vld [vmem:[%s5249_s5 + $0x460] sm:$0xff]  ;;  %v1454_v5 = vld [vmem:[%s5253_s9 + $0x730] sm:$0xff] }
 0x146   : > { %1151 = vmatpush.msra.mxu3 %v1013_v51  ;;  %1175 = vmatpush.msrb.mxu0 %v906_v3  ;;  %v828_v51 = vperm.slane %v783_v42, 0  ;;  %v1374_v3 = vld [vmem:[%s5253_s9 + $0x4b0] sm:$0xff]  ;;  %v1344_v42 = vld [vmem:[%s5253_s9 + $0x3c0] sm:$0xff] }
 0x147   : > { %1136 = vmatpush.msra.mxu2 %v950_v6  ;;  %1196 = vmatpush.msrb.mxu1 %v951_v30  ;;  %v1369_v30 = vld [vmem:[%s5253_s9 + $0x488] sm:$0xff] }
 0x148   : > { %1152 = vmatpush.msra.mxu3 %v1010_v52  ;;  %1176 = vmatpush.msrb.mxu0 %v903_v11  ;;  %v1289_v11 = vld [vmem:[%s5253_s9 + $0x208] sm:$0xff] }
 0x149   : > { %1137 = vmatpush.msra.mxu2 %v947_v31  ;;  %1197 = vmatpush.msrb.mxu1 %v948_v37  ;;  %v1449_v31 = vld [vmem:[%s5253_s9 + $0x708] sm:$0xff]  ;;  %v1364_v37 = vld [vmem:[%s5253_s9 + $0x460] sm:$0xff] }
 0x14a   : > { %1153 = vmatpush.msra.mxu3 %v1007_v56  ;;  %1177 = vmatpush.msrb.mxu0 %v900_v34  ;;  %v1284_v34 = vld [vmem:[%s5253_s9 + $0x1e0] sm:$0xff] }
 0x14b   : > { %1138 = vmatpush.msra.mxu2 %v944_v40  ;;  %1198 = vmatpush.msrb.mxu1 %v945_v14  ;;  %v1444_v40 = vld [vmem:[%s5253_s9 + $0x6e0] sm:$0xff]  ;;  %v1359_v14 = vld [vmem:[%s5253_s9 + $0x438] sm:$0xff] }
 0x14c   : > { %1154 = vmatpush.msra.mxu3 %v1004_v60  ;;  %1178 = vmatpush.msrb.mxu0 %v897_v13  ;;  %v1279_v13 = vld [vmem:[%s5253_s9 + $0x1b8] sm:$0xff] }
 0x14d   : > { %1139 = vmatpush.msra.mxu2 %v941_v15  ;;  %1199 = vmatpush.msrb.mxu1 %v942_v18  ;;  %v1439_v15 = vld [vmem:[%s5253_s9 + $0x6b8] sm:$0xff] }
 0x14e   : > { %1155 = vmatpush.msra.mxu3 %v1001_v2  ;;  %1179 = vmatpush.msrb.mxu0 %v894_v17  ;;  %v1294_v2 = vld [vmem:[%s5253_s9 + $0x230] sm:$0xff] }
 0x14f   : > { %v1274_v17 = vld [vmem:[%s5253_s9 + $0x190] sm:$0xff] }
 0x150   : > { %1156 = vmatpush.msra.mxu3 %v998_v10  ;;  %v1029_v10 = vld [vmem:[%s5249_s5 + $0x448] sm:$0xff] }
 0x152   : > { %1157 = vmatpush.msra.mxu3 %v995_v33  ;;  %v1026_v33 = vld [vmem:[%s5249_s5 + $0x430] sm:$0xff] }
 0x154   : > { %1158 = vmatpush.msra.mxu3 %v992_v12  ;;  %v1023_v12 = vld [vmem:[%s5249_s5 + $0x418] sm:$0xff] }
 0x156   : > { %1159 = vmatpush.msra.mxu3 %v989_v16  ;;  %v1020_v16 = vld [vmem:[%s5249_s5 + $0x400] sm:$0xff] }
 0x19e   : > { %v3827_v29 = vpop.xlane.xlu2 %1977 }
 0x1a4   : > { %v801_v21 = vpop.xlane.xlu0 %800 }
 0x1a5   : > { %v802_v22 = vmul.f32 0.0033333334, %v801_v21  ;;  %v1354_v21 = vld [vmem:[%s5253_s9 + $0x410] sm:$0xff] }
 0x1a7   : > { %v803_v23 = vadd.f32 1e-05, %v802_v22  ;;  %v1434_v22 = vld [vmem:[%s5253_s9 + $0x690] sm:$0xff] }
 0x1a9   : > { %2932 = vrsqrt.f32 %v803_v23  ;;  %vm810_vm5 = vweird.f32 %v803_v23 }
 0x1ac   : > { %v856_v54 = vpop.xlane.xlu2 %855 }
 0x1ad   : > { %v857_v61 = vmul.f32 0.0033333334, %v856_v54  ;;  %v1249_v54 = vld [vmem:[%s5253_s9 + $0xc8] sm:$0xff] }
 0x1af   : > { %v2933_v26 = vpop.eup %2932  ;;  %v3865_v6 = vadd.f32 1e-05, %v857_v61  ;;  %v1324_v61 = vld [vmem:[%s5253_s9 + $0x320] sm:$0xff] }
 0x1b0   : > { %v805_v27 = vmul.f32 %v2933_v26, %v803_v23  ;;  %vm811_vm4 = vweird.f32 %v2933_v26  ;;  %v1017_v23 = vld [vmem:[%s5249_s5 + $0x3e8] sm:$0xff] }
 0x1b1   : > { %vm812_vm6 = vmor %vm810_vm5, %vm811_vm4  ;;  %2934 = vrsqrt.f32 %v3865_v6  ;;  %vm865_vm7 = vweird.f32 %v3865_v6 }
 0x1b2   : > { %v806_v28 = vmul.f32 %v2933_v26, %v805_v27  ;;  %v1349_v27 = vld [vmem:[%s5253_s9 + $0x3e8] sm:$0xff] }
 0x1b4   : > { %v807_v32 = vmul.f32 0.5, %v806_v28  ;;  %v1429_v28 = vld [vmem:[%s5253_s9 + $0x668] sm:$0xff] }
 0x1b6   : > { %v808_v35 = vsub.f32 1.5, %v807_v32  ;;  %v1014_v32 = vld [vmem:[%s5249_s5 + $0x3d0] sm:$0xff] }
 0x1b7   : > { %v3911_v18 = vpop.eup %2934 }
 0x1b8   : > { %v809_v48 = vmul.f32 %v2933_v26, %v808_v35  ;;  %v1264_v35 = vld [vmem:[%s5253_s9 + $0x140] sm:$0xff]  ;;  %v860_v36 = vmul.f32 %v3911_v18, %v3865_v6  ;;  %vm866_vm8 = vweird.f32 %v3911_v18 }
 0x1b9   : > { %vm867_vm9 = vmor %vm865_vm7, %vm866_vm8  ;;  %v1300_v6 = vld [vmem:[%s5253_s9 + $0x260] sm:$0xff] }
 0x1ba   : > { %v813_v50 = vsel %vm812_vm6, %v2933_v26, %v809_v48  ;;  %v1269_v26 = vld [vmem:[%s5253_s9 + $0x168] sm:$0xff]  ;;  %v1424_v48 = vld [vmem:[%s5253_s9 + $0x640] sm:$0xff] }
 0x1bb   : > { %v816_v45 = vmul.f32 %v813_v50, %v3490_v9  ;;  %v814_v47 = vmul.f32 %v813_v50, %v3482_v7  ;;  %v815_v52 = vmul.f32 %v813_v50, %v3486_v8  ;;  %v1299_v7 = vld [vmem:[%s5253_s9 + $0x258] sm:$0xff] }
 0x1bc   : > { %v1379_v8 = vld [vmem:[%s5253_s9 + $0x4d8] sm:$0xff] }
 0x1bd   : > { %v824_v55 = vmul.f32 %v818_v43, %v814_v47  ;;  %v825_v56 = vmul.f32 %v819_v46, %v815_v52  ;;  %v826_v57 = vmul.f32 %v820_v49, %v816_v45  ;;  %v1459_v9 = vld [vmem:[%s5253_s9 + $0x758] sm:$0xff]  ;;  %v1254_v45 = vld [vmem:[%s5253_s9 + $0xf0] sm:$0xff] }
 0x1be   : > { %v1011_v43 = vld [vmem:[%s5249_s5 + $0x3b8] sm:$0xff]  ;;  %v1334_v47 = vld [vmem:[%s5253_s9 + $0x370] sm:$0xff] }
 0x1bf   : > { %v834_v58 = vadd.f32 %v828_v51, %v824_v55  ;;  %v835_v59 = vadd.f32 %v829_v44, %v825_v56  ;;  %v3838_v60 = vadd.f32 %v830_v53, %v826_v57  ;;  %v1259_v46 = vld [vmem:[%s5253_s9 + $0x118] sm:$0xff]  ;;  %v861_v51 = vmul.f32 %v3911_v18, %v860_v36  ;;  %v1008_v44 = vld [vmem:[%s5249_s5 + $0x3a0] sm:$0xff]  ;;  %v1414_v52 = vld [vmem:[%s5253_s9 + $0x5f0] sm:$0xff] }
 0x1c0   : > { %v1339_v49 = vld [vmem:[%s5253_s9 + $0x398] sm:$0xff]  ;;  %v1005_v53 = vld [vmem:[%s5249_s5 + $0x388] sm:$0xff]  ;;  %v1450_v36 = vld [vmem:[%s5253_s9 + $0x710] sm:$0xff] }
 0x1c1   : > { %1060 = vmatmul.f32.vlgmr.msrb.gmra.mxu2 %v834_v58  ;;  %1080 = vmatmul.f32.vlgmr.msrb.gmra.mxu3 %v835_v59  ;;  %v1419_v50 = vld [vmem:[%s5253_s9 + $0x618] sm:$0xff]  ;;  %v1329_v55 = vld [vmem:[%s5253_s9 + $0x348] sm:$0xff]  ;;  %v862_v57 = vmul.f32 0.5, %v861_v51 }
 0x1c2   : > { %1100 = vmatmul.f32.vlgmr.msra.gmra.mxu0 %v3838_v60  ;;  %1120 = vmatmul.f32.vlgmr.msra.gmra.mxu1 %v834_v58  ;;  %v1409_v56 = vld [vmem:[%s5253_s9 + $0x5c8] sm:$0xff] }
 0x1c3   : > { %1204 = vmatpush.msrb.mxu2 %v1035_v63  ;;  %1476 = vmatpush.msrb.mxu3 %v1299_v7  ;;  %v1404_v63 = vld [vmem:[%s5253_s9 + $0x5a0] sm:$0xff]  ;;  %v999_v7 = vld [vmem:[%s5249_s5 + $0x358] sm:$0xff] }
 0x1c4   : > { %1496 = vmatpush.msra.mxu0 %v1379_v8  ;;  %1516 = vmatpush.msra.mxu1 %v1459_v9  ;;  %v1239_v8 = vld [vmem:[%s5253_s9 + $0x78] sm:$0xff] }
 0x1c5   : > { %1205 = vmatpush.msrb.mxu2 %v1032_v0  ;;  %1477 = vmatpush.msrb.mxu3 %v1294_v2  ;;  %v1319_v9 = vld [vmem:[%s5253_s9 + $0x2f8] sm:$0xff]  ;;  %v863_v2 = vsub.f32 1.5, %v862_v57  ;;  %v1350_v57 = vld [vmem:[%s5253_s9 + $0x3f0] sm:$0xff] }
 0x1c6   : > { %1497 = vmatpush.msra.mxu0 %v1374_v3  ;;  %1517 = vmatpush.msra.mxu1 %v1454_v5  ;;  %v1399_v0 = vld [vmem:[%s5253_s9 + $0x578] sm:$0xff]  ;;  %v996_v3 = vld [vmem:[%s5249_s5 + $0x340] sm:$0xff]  ;;  %v1234_v5 = vld [vmem:[%s5253_s9 + $0x50] sm:$0xff] }
 0x1c7   : > { %1206 = vmatpush.msrb.mxu2 %v1029_v10  ;;  %1478 = vmatpush.msrb.mxu3 %v1289_v11  ;;  %v1314_v10 = vld [vmem:[%s5253_s9 + $0x2d0] sm:$0xff] }
 0x1c8   : > { %1498 = vmatpush.msra.mxu0 %v1369_v30  ;;  %1518 = vmatpush.msra.mxu1 %v1449_v31  ;;  %v1394_v11 = vld [vmem:[%s5253_s9 + $0x550] sm:$0xff]  ;;  %v993_v30 = vld [vmem:[%s5249_s5 + $0x328] sm:$0xff] }
 0x1c9   : > { %1207 = vmatpush.msrb.mxu2 %v1026_v33  ;;  %1479 = vmatpush.msrb.mxu3 %v1284_v34  ;;  %v1229_v31 = vld [vmem:[%s5253_s9 + $0x28] sm:$0xff] }
 0x1ca   : > { %1499 = vmatpush.msra.mxu0 %v1364_v37  ;;  %1519 = vmatpush.msra.mxu1 %v1444_v40  ;;  %v1309_v33 = vld [vmem:[%s5253_s9 + $0x2a8] sm:$0xff]  ;;  %v864_v37 = vmul.f32 %v3911_v18, %v863_v2  ;;  %v990_v40 = vld [vmem:[%s5249_s5 + $0x310] sm:$0xff] }
 0x1cb   : > { %1140 = vmatmul.f32.vlgmr.msra.gmra.mxu2 %v835_v59  ;;  %1160 = vmatmul.f32.vlgmr.msra.gmra.mxu3 %v3838_v60  ;;  %v1389_v34 = vld [vmem:[%s5253_s9 + $0x528] sm:$0xff]  ;;  %v1266_v2 = vld [vmem:[%s5253_s9 + $0x150] sm:$0xff] }
 0x1cc   : > { %1180 = vmatmul.f32.vlgmr.msrb.gmra.mxu0 %v834_v58  ;;  %1200 = vmatmul.f32.vlgmr.msrb.gmra.mxu1 %v835_v59  ;;  %v1002_v58 = vld [vmem:[%s5249_s5 + $0x370] sm:$0xff]  ;;  %v1244_v59 = vld [vmem:[%s5253_s9 + $0xa0] sm:$0xff] }
 0x1cd   : > { %1208 = vmatpush.msrb.mxu2 %v1023_v12  ;;  %1480 = vmatpush.msrb.mxu3 %v1279_v13  ;;  %v1224_v12 = vld [vmem:[%s5253_s9] sm:$0xff] }
 0x1ce   : > { %1500 = vmatpush.msra.mxu0 %v1359_v14  ;;  %1520 = vmatpush.msra.mxu1 %v1439_v15  ;;  %v1304_v13 = vld [vmem:[%s5253_s9 + $0x280] sm:$0xff] }
 0x1cf   : > { %1209 = vmatpush.msrb.mxu2 %v1020_v16  ;;  %1481 = vmatpush.msrb.mxu3 %v1274_v17  ;;  %v1384_v14 = vld [vmem:[%s5253_s9 + $0x500] sm:$0xff] }
 0x1d0   : > { %1501 = vmatpush.msra.mxu0 %v1354_v21  ;;  %1521 = vmatpush.msra.mxu1 %v1434_v22  ;;  %v1380_v15 = vld [vmem:[%s5253_s9 + $0x4e0] sm:$0xff]  ;;  %v4062_v21 = vsel %vm867_vm9, %v3911_v18, %v864_v37  ;;  %v1301_v22 = vld [vmem:[%s5253_s9 + $0x268] sm:$0xff]  ;;  %v1455_v18 = vld [vmem:[%s5253_s9 + $0x738] sm:$0xff]  ;;  %vm1784_vm9 = vcmask 719872  }
 0x1d1   : > { %1210 = vmatpush.msrb.mxu2 %v1017_v23  ;;  %1482 = vmatpush.msrb.mxu3 %v1269_v26  ;;  %v1460_v16 = vld [vmem:[%s5253_s9 + $0x760] sm:$0xff]  ;;  %v1375_v23 = vld [vmem:[%s5253_s9 + $0x4b8] sm:$0xff] }
 0x1d2   : > { %1502 = vmatpush.msra.mxu0 %v1349_v27  ;;  %1522 = vmatpush.msra.mxu1 %v1429_v28  ;;  %v4059_v17 = vld [vmem:[%s5251_s7] sm:$0x7]  ;;  %v1295_v26 = vld [vmem:[%s5253_s9 + $0x238] sm:$0xff]  ;;  %v1370_v28 = vld [vmem:[%s5253_s9 + $0x490] sm:$0xff] }
 0x1d3   : > { %1211 = vmatpush.msrb.mxu2 %v1014_v32  ;;  %1483 = vmatpush.msrb.mxu3 %v1264_v35  ;;  %v1296_v27 = vld [vmem:[%s5253_s9 + $0x240] sm:$0xff]  ;;  %v869_v32 = vmul.f32 %v4062_v21, %v3548_v38  ;;  %v1290_v35 = vld [vmem:[%s5253_s9 + $0x210] sm:$0xff]  ;;  %v1365_v38 = vld [vmem:[%s5253_s9 + $0x468] sm:$0xff] }
 0x1d4   : > { %1503 = vmatpush.msra.mxu0 %v1344_v42  ;;  %1523 = vmatpush.msra.mxu1 %v1424_v48  ;;  %v1291_v42 = vld [vmem:[%s5253_s9 + $0x218] sm:$0xff]  ;;  %v4101_v48 = vld [vmem:[%s5252_s8] sm:$0x7] }
 0x1d5   : > { %1212 = vmatpush.msrb.mxu2 %v1011_v43  ;;  %1484 = vmatpush.msrb.mxu3 %v1259_v46  ;;  %v1285_v43 = vld [vmem:[%s5253_s9 + $0x1e8] sm:$0xff]  ;;  %v1335_v37 = vld [vmem:[%s5253_s9 + $0x378] sm:$0xff] }
 0x1d6   : > { %1504 = vmatpush.msra.mxu0 %v1339_v49  ;;  %1524 = vmatpush.msra.mxu1 %v1419_v50  ;;  %v1445_v46 = vld [vmem:[%s5253_s9 + $0x6e8] sm:$0xff]  ;;  %v1286_v49 = vld [vmem:[%s5253_s9 + $0x1f0] sm:$0xff]  ;;  %v1360_v50 = vld [vmem:[%s5253_s9 + $0x440] sm:$0xff] }
 0x1d7   : > { %1213 = vmatpush.msrb.mxu2 %v1008_v44  ;;  %1485 = vmatpush.msrb.mxu3 %v1254_v45  ;;  %v1280_v44 = vld [vmem:[%s5253_s9 + $0x1c0] sm:$0xff] }
 0x1d8   : > { %1505 = vmatpush.msra.mxu0 %v1334_v47  ;;  %1525 = vmatpush.msra.mxu1 %v1414_v52  ;;  %v1440_v45 = vld [vmem:[%s5253_s9 + $0x6c0] sm:$0xff]  ;;  %v883_v47 = vperm.slane %v4101_v48, 0  ;;  %v1281_v52 = vld [vmem:[%s5253_s9 + $0x1c8] sm:$0xff] }
 0x1d9   : > { %1214 = vmatpush.msrb.mxu2 %v1005_v53  ;;  %1486 = vmatpush.msrb.mxu3 %v1249_v54  ;;  %v1355_v53 = vld [vmem:[%s5253_s9 + $0x418] sm:$0xff] }
 0x1da   : > { %1506 = vmatpush.msra.mxu0 %v1329_v55  ;;  %1526 = vmatpush.msra.mxu1 %v1409_v56  ;;  %v1275_v54 = vld [vmem:[%s5253_s9 + $0x198] sm:$0xff]  ;;  %v1276_v56 = vld [vmem:[%s5253_s9 + $0x1a0] sm:$0xff] }
 0x1db   : > { %1215 = vmatpush.msrb.mxu2 %v1002_v58  ;;  %1487 = vmatpush.msrb.mxu3 %v1244_v59  ;;  %v1435_v55 = vld [vmem:[%s5253_s9 + $0x698] sm:$0xff]  ;;  %v1270_v58 = vld [vmem:[%s5253_s9 + $0x170] sm:$0xff] }
 0x1dc   : > { %1507 = vmatpush.msra.mxu0 %v1324_v61  ;;  %1527 = vmatpush.msra.mxu1 %v1404_v63  ;;  %v1430_v59 = vld [vmem:[%s5253_s9 + $0x670] sm:$0xff]  ;;  %v874_v63 = vperm.slane %v4059_v17, 1 }
 0x1dd   : > { %1216 = vmatpush.msrb.mxu2 %v999_v7  ;;  %1488 = vmatpush.msrb.mxu3 %v1239_v8  ;;  %v870_v7 = vmul.f32 %v4062_v21, %v3552_v39  ;;  %v1271_v8 = vld [vmem:[%s5253_s9 + $0x178] sm:$0xff]  ;;  %v1425_v39 = vld [vmem:[%s5253_s9 + $0x648] sm:$0xff] }
 0x1de   : > { %1508 = vmatpush.msra.mxu0 %v1319_v9  ;;  %1528 = vmatpush.msra.mxu1 %v1399_v0  ;;  %v1265_v9 = vld [vmem:[%s5253_s9 + $0x148] sm:$0xff] }
 0x1df   : > { %1217 = vmatpush.msrb.mxu2 %v996_v3  ;;  %1489 = vmatpush.msrb.mxu3 %v1234_v5  ;;  %v1345_v0 = vld [vmem:[%s5253_s9 + $0x3c8] sm:$0xff]  ;;  %v875_v3 = vperm.slane %v4059_v17, 2  ;;  %v871_v5 = vmul.f32 %v4062_v21, %v3556_v41 }
 0x1e0   : > { %1509 = vmatpush.msra.mxu0 %v1314_v10  ;;  %1529 = vmatpush.msra.mxu1 %v1394_v11  ;;  %v1260_v10 = vld [vmem:[%s5253_s9 + $0x120] sm:$0xff]  ;;  %v1261_v41 = vld [vmem:[%s5253_s9 + $0x128] sm:$0xff] }
 0x1e1   : > { %1218 = vmatpush.msrb.mxu2 %v993_v30  ;;  %1490 = vmatpush.msrb.mxu3 %v1229_v31  ;;  %v1340_v11 = vld [vmem:[%s5253_s9 + $0x3a0] sm:$0xff]  ;;  %v880_v30 = vmul.f32 %v874_v63, %v870_v7  ;;  %v1371_v63 = vld [vmem:[%s5253_s9 + $0x498] sm:$0xff] }
 0x1e2   : > { %1510 = vmatpush.msra.mxu0 %v1309_v33  ;;  %1530 = vmatpush.msra.mxu1 %v1389_v34  ;;  %v1420_v31 = vld [vmem:[%s5253_s9 + $0x620] sm:$0xff]  ;;  %v884_v33 = vperm.slane %v4101_v48, 1  ;;  %v1255_v34 = vld [vmem:[%s5253_s9 + $0xf8] sm:$0xff] }
 0x1e3   : > { %1219 = vmatpush.msrb.mxu2 %v990_v40  ;;  %1491 = vmatpush.msrb.mxu3 %v1224_v12  ;;  %v1415_v40 = vld [vmem:[%s5253_s9 + $0x5f8] sm:$0xff]  ;;  %v1256_v12 = vld [vmem:[%s5253_s9 + $0x100] sm:$0xff] }
 0x1e4   : > { %1511 = vmatpush.msra.mxu0 %v1304_v13  ;;  %1531 = vmatpush.msra.mxu1 %v1384_v14  ;;  %v881_v13 = vmul.f32 %v875_v3, %v871_v5  ;;  %v1250_v14 = vld [vmem:[%s5253_s9 + $0xd0] sm:$0xff]  ;;  %v4208_v21 = vadd.f32 %v884_v33, %v880_v30  ;;  %v1451_v7 = vld [vmem:[%s5253_s9 + $0x718] sm:$0xff]  ;;  %v1361_v5 = vld [vmem:[%s5253_s9 + $0x448] sm:$0xff] }
 0x1e5   : > { %1220 = vmatmul.f32.vlgmr.msrb.gmra.mxu2 %v3838_v60  ;;  %1556 = vmatpush.msra.mxu3 %v1380_v15  ;;  %v873_v60 = vperm.slane %v4059_v17, 0  ;;  %v1330_v15 = vld [vmem:[%s5253_s9 + $0x350] sm:$0xff]  ;;  %v1251_v17 = vld [vmem:[%s5253_s9 + $0xd8] sm:$0xff]  ;;  %v1277_v33 = vld [vmem:[%s5253_s9 + $0x1a8] sm:$0xff] }
 0x1e6   : > { %1536 = vmatpush.msra.mxu2 %v1300_v6  ;;  %1576 = vmatpush.msrb.mxu0 %v1460_v16  ;;  %v885_v6 = vperm.slane %v4101_v48, 2  ;;  %v1410_v16 = vld [vmem:[%s5253_s9 + $0x5d0] sm:$0xff]  ;;  %v1236_v48 = vld [vmem:[%s5253_s9 + $0x60] sm:$0xff]  ;;  %v1367_v3 = vld [vmem:[%s5253_s9 + $0x478] sm:$0xff] }
 0x1e7   : > { %1596 = vmatpush.msrb.mxu1 %v1301_v22  ;;  %1557 = vmatpush.msra.mxu3 %v1375_v23  ;;  %v879_v51 = vmul.f32 %v873_v60, %v869_v32  ;;  %v1245_v22 = vld [vmem:[%s5253_s9 + $0xa8] sm:$0xff]  ;;  %v1320_v60 = vld [vmem:[%s5253_s9 + $0x300] sm:$0xff]  ;;  %v1362_v30 = vld [vmem:[%s5253_s9 + $0x450] sm:$0xff] }
 0x1e8   : > { %1537 = vmatpush.msra.mxu2 %v1295_v26  ;;  %1577 = vmatpush.msrb.mxu0 %v1455_v18  ;;  %v1325_v23 = vld [vmem:[%s5253_s9 + $0x328] sm:$0xff]  ;;  %v1246_v18 = vld [vmem:[%s5253_s9 + $0xb0] sm:$0xff]  ;;  %v1400_v32 = vld [vmem:[%s5253_s9 + $0x580] sm:$0xff] }
 0x1e9   : > { %1597 = vmatpush.msrb.mxu1 %v1296_v27  ;;  %1558 = vmatpush.msra.mxu3 %v1370_v28  ;;  %v4146_v61 = vadd.f32 %v883_v47, %v879_v51  ;;  %v1405_v26 = vld [vmem:[%s5253_s9 + $0x5a8] sm:$0xff]  ;;  %v4222_v27 = vadd.f32 %v885_v6, %v881_v13  ;;  %v1240_v28 = vld [vmem:[%s5253_s9 + $0x80] sm:$0xff]  ;;  %v1226_v47 = vld [vmem:[%s5253_s9 + $0x10] sm:$0xff] }
 0x1ea   : > { %1538 = vmatpush.msra.mxu2 %v1290_v35  ;;  %1578 = vmatpush.msrb.mxu0 %v1450_v36  ;;  %v1241_v35 = vld [vmem:[%s5253_s9 + $0x88] sm:$0xff]  ;;  %v1235_v36 = vld [vmem:[%s5253_s9 + $0x58] sm:$0xff]  ;;  %v1352_v13 = vld [vmem:[%s5253_s9 + $0x400] sm:$0xff] }
 0x1eb   : > { %1598 = vmatpush.msrb.mxu1 %v1291_v42  ;;  %1559 = vmatpush.msra.mxu3 %v1365_v38  ;;  %v1315_v42 = vld [vmem:[%s5253_s9 + $0x2d8] sm:$0xff]  ;;  %v1225_v51 = vld [vmem:[%s5253_s9 + $0x8] sm:$0xff] }
 0x1ec   : > { %1539 = vmatpush.msra.mxu2 %v1285_v43  ;;  %1579 = vmatpush.msrb.mxu0 %v1445_v46  ;;  %v1395_v38 = vld [vmem:[%s5253_s9 + $0x558] sm:$0xff]  ;;  %v1230_v43 = vld [vmem:[%s5253_s9 + $0x30] sm:$0xff] }
 0x1ed   : > { %1599 = vmatpush.msrb.mxu1 %v1286_v49  ;;  %1560 = vmatpush.msra.mxu3 %v1360_v50  ;;  %v1310_v46 = vld [vmem:[%s5253_s9 + $0x2b0] sm:$0xff]  ;;  %v1231_v50 = vld [vmem:[%s5253_s9 + $0x38] sm:$0xff] }
 0x1ee   : > { %1540 = vmatpush.msra.mxu2 %v1280_v44  ;;  %1580 = vmatpush.msrb.mxu0 %v1440_v45  ;;  %v1390_v49 = vld [vmem:[%s5253_s9 + $0x530] sm:$0xff]  ;;  %v1305_v44 = vld [vmem:[%s5253_s9 + $0x288] sm:$0xff]  ;;  %v1267_v6 = vld [vmem:[%s5253_s9 + $0x158] sm:$0xff] }
 0x1ef   : > { %1600 = vmatpush.msrb.mxu1 %v1281_v52  ;;  %1561 = vmatpush.msra.mxu3 %v1355_v53  ;;  %v1385_v45 = vld [vmem:[%s5253_s9 + $0x508] sm:$0xff] }
 0x1f0   : > { %1541 = vmatpush.msra.mxu2 %v1275_v54  ;;  %1581 = vmatpush.msrb.mxu0 %v1435_v55  ;;  %v1381_v52 = vld [vmem:[%s5253_s9 + $0x4e8] sm:$0xff]  ;;  %v1302_v54 = vld [vmem:[%s5253_s9 + $0x270] sm:$0xff] }
 0x1f1   : > { %1601 = vmatpush.msrb.mxu1 %v1276_v56  ;;  %1562 = vmatpush.msra.mxu3 %v1350_v57  ;;  %v1461_v53 = vld [vmem:[%s5253_s9 + $0x768] sm:$0xff]  ;;  %v1382_v55 = vld [vmem:[%s5253_s9 + $0x4f0] sm:$0xff]  ;;  %v1376_v56 = vld [vmem:[%s5253_s9 + $0x4c0] sm:$0xff] }
 0x1f2   : > { %1542 = vmatpush.msra.mxu2 %v1270_v58  ;;  %1582 = vmatpush.msrb.mxu0 %v1430_v59  ;;  %v1456_v57 = vld [vmem:[%s5253_s9 + $0x740] sm:$0xff]  ;;  %v1297_v58 = vld [vmem:[%s5253_s9 + $0x248] sm:$0xff] }
 0x1f3   : > { %1602 = vmatpush.msrb.mxu1 %v1271_v8  ;;  %1492 = vmatmul.f32.vlgmr.msrb.gmra.mxu3 %v4146_v61  ;;  %v1377_v59 = vld [vmem:[%s5253_s9 + $0x4c8] sm:$0xff]  ;;  %v1292_v8 = vld [vmem:[%s5253_s9 + $0x220] sm:$0xff] }
 0x1f4   : > { %1543 = vmatpush.msra.mxu2 %v1265_v9  ;;  %1563 = vmatpush.msra.mxu3 %v1345_v0  ;;  %v1372_v9 = vld [vmem:[%s5253_s9 + $0x4a0] sm:$0xff]  ;;  %v1366_v0 = vld [vmem:[%s5253_s9 + $0x470] sm:$0xff] }
 0x1f5   : > { %1583 = vmatpush.msrb.mxu0 %v1425_v39  ;;  %1603 = vmatpush.msrb.mxu1 %v1266_v2  ;;  %v1446_v39 = vld [vmem:[%s5253_s9 + $0x6f0] sm:$0xff]  ;;  %v1287_v2 = vld [vmem:[%s5253_s9 + $0x1f8] sm:$0xff] }
 0x1f6   : > { %1544 = vmatpush.msra.mxu2 %v1260_v10  ;;  %1564 = vmatpush.msra.mxu3 %v1340_v11  ;;  %v1441_v10 = vld [vmem:[%s5253_s9 + $0x6c8] sm:$0xff]  ;;  %v1282_v11 = vld [vmem:[%s5253_s9 + $0x1d0] sm:$0xff] }
 0x1f7   : > { %1584 = vmatpush.msrb.mxu0 %v1420_v31  ;;  %1604 = vmatpush.msrb.mxu1 %v1261_v41  ;;  %v1356_v31 = vld [vmem:[%s5253_s9 + $0x420] sm:$0xff] }
 0x1f8   : > { %1545 = vmatpush.msra.mxu2 %v1255_v34  ;;  %1565 = vmatpush.msra.mxu3 %v1335_v37  ;;  %v1436_v41 = vld [vmem:[%s5253_s9 + $0x6a0] sm:$0xff]  ;;  %v1357_v34 = vld [vmem:[%s5253_s9 + $0x428] sm:$0xff]  ;;  %v1351_v37 = vld [vmem:[%s5253_s9 + $0x3f8] sm:$0xff] }
 0x1f9   : > { %1585 = vmatpush.msrb.mxu0 %v1415_v40  ;;  %1605 = vmatpush.msrb.mxu1 %v1256_v12  ;;  %v1431_v40 = vld [vmem:[%s5253_s9 + $0x678] sm:$0xff]  ;;  %v1272_v12 = vld [vmem:[%s5253_s9 + $0x180] sm:$0xff] }
 0x1fa   : > { %1546 = vmatpush.msra.mxu2 %v1250_v14  ;;  %1566 = vmatpush.msra.mxu3 %v1330_v15  ;;  %v1346_v14 = vld [vmem:[%s5253_s9 + $0x3d0] sm:$0xff] }
 0x1fb   : > { %1586 = vmatpush.msrb.mxu0 %v1410_v16  ;;  %1606 = vmatpush.msrb.mxu1 %v1251_v17  ;;  %v1426_v15 = vld [vmem:[%s5253_s9 + $0x650] sm:$0xff]  ;;  %v1347_v16 = vld [vmem:[%s5253_s9 + $0x3d8] sm:$0xff]  ;;  %v1341_v17 = vld [vmem:[%s5253_s9 + $0x3a8] sm:$0xff] }
 0x1fc   : > { %1512 = vmatmul.f32.vlgmr.msra.gmra.mxu0 %v4208_v21  ;;  %1547 = vmatpush.msra.mxu2 %v1245_v22  ;;  %v1421_v22 = vld [vmem:[%s5253_s9 + $0x628] sm:$0xff] }
 0x1fd   : > { %1567 = vmatpush.msra.mxu3 %v1325_v23  ;;  %1587 = vmatpush.msrb.mxu0 %v1405_v26  ;;  %v1262_v23 = vld [vmem:[%s5253_s9 + $0x130] sm:$0xff] }
 0x1fe   : > { %1607 = vmatpush.msrb.mxu1 %v1246_v18  ;;  %1548 = vmatpush.msra.mxu2 %v1240_v28  ;;  %v1342_v26 = vld [vmem:[%s5253_s9 + $0x3b0] sm:$0xff]  ;;  %v1336_v18 = vld [vmem:[%s5253_s9 + $0x380] sm:$0xff] }
 0x1ff   : > { %1532 = vmatmul.f32.vlgmr.msra.gmra.mxu1 %v4222_v27  ;;  %1568 = vmatpush.msra.mxu3 %v1320_v60  ;;  %v1416_v28 = vld [vmem:[%s5253_s9 + $0x600] sm:$0xff]  ;;  %v1257_v60 = vld [vmem:[%s5253_s9 + $0x108] sm:$0xff] }
 0x200   : > { %1588 = vmatpush.msrb.mxu0 %v1400_v32  ;;  %1608 = vmatpush.msrb.mxu1 %v1241_v35  ;;  %v1337_v32 = vld [vmem:[%s5253_s9 + $0x388] sm:$0xff]  ;;  %v1331_v35 = vld [vmem:[%s5253_s9 + $0x358] sm:$0xff] }
 0x201   : > { %1549 = vmatpush.msra.mxu2 %v1235_v36  ;;  %1569 = vmatpush.msra.mxu3 %v1315_v42  ;;  %v1411_v36 = vld [vmem:[%s5253_s9 + $0x5d8] sm:$0xff]  ;;  %v1252_v42 = vld [vmem:[%s5253_s9 + $0xe0] sm:$0xff] }
 0x202   : > { %1589 = vmatpush.msrb.mxu0 %v1395_v38  ;;  %1609 = vmatpush.msrb.mxu1 %v1236_v48  ;;  %v1332_v38 = vld [vmem:[%s5253_s9 + $0x360] sm:$0xff]  ;;  %v1326_v48 = vld [vmem:[%s5253_s9 + $0x330] sm:$0xff] }
 0x203   : > { %1550 = vmatpush.msra.mxu2 %v1230_v43  ;;  %1570 = vmatpush.msra.mxu3 %v1310_v46  ;;  %v1406_v43 = vld [vmem:[%s5253_s9 + $0x5b0] sm:$0xff]  ;;  %v1247_v46 = vld [vmem:[%s5253_s9 + $0xb8] sm:$0xff] }
 0x204   : > { %1590 = vmatpush.msrb.mxu0 %v1390_v49  ;;  %1610 = vmatpush.msrb.mxu1 %v1231_v50  ;;  %v1327_v49 = vld [vmem:[%s5253_s9 + $0x338] sm:$0xff]  ;;  %v4423_v50 = vadd.f32 1e-08, %v3825_v25  ;;  %v1322_v25 = vld [vmem:[%s5253_s9 + $0x310] sm:$0xff] }
 0x205   : > { %1551 = vmatpush.msra.mxu2 %v1225_v51  ;;  %1571 = vmatpush.msra.mxu3 %v1305_v44  ;;  %v1321_v51 = vld [vmem:[%s5253_s9 + $0x308] sm:$0xff] }
 0x206   : > { %1591 = vmatpush.msrb.mxu0 %v1385_v45  ;;  %1611 = vmatpush.msrb.mxu1 %v1226_v47  ;;  %v1401_v44 = vld [vmem:[%s5253_s9 + $0x588] sm:$0xff]  ;;  %v1242_v45 = vld [vmem:[%s5253_s9 + $0x90] sm:$0xff]  ;;  %v1316_v47 = vld [vmem:[%s5253_s9 + $0x2e0] sm:$0xff]  ;;  %2936 = vrsqrt.f32 %v4423_v50  ;;  %vm2038_vm10 = vweird.f32 %v4423_v50 }
 0x207   : > { %1552 = vmatmul.f32.vlgmr.msra.gmra.mxu2 %v4146_v61  ;;  %1572 = vmatmul.f32.vlgmr.msra.gmra.mxu3 %v4208_v21 }
 0x208   : > { %1592 = vmatmul.f32.vlgmr.msrb.gmra.mxu0 %v4222_v27  ;;  %1612 = vmatmul.f32.vlgmr.msrb.gmra.mxu1 %v4146_v61 }
 0x209   : > { %1616 = vmatpush.msrb.mxu2 %v1381_v52  ;;  %1636 = vmatpush.msrb.mxu3 %v1461_v53  ;;  %v1396_v52 = vld [vmem:[%s5253_s9 + $0x560] sm:$0xff]  ;;  %v1237_v53 = vld [vmem:[%s5253_s9 + $0x68] sm:$0xff] }
 0x20a   : > { %1656 = vmatpush.msra.mxu0 %v1302_v54  ;;  %1676 = vmatpush.msra.mxu1 %v1382_v55  ;;  %v1317_v54 = vld [vmem:[%s5253_s9 + $0x2e8] sm:$0xff]  ;;  %v1311_v55 = vld [vmem:[%s5253_s9 + $0x2b8] sm:$0xff] }
 0x20b   : > { %1617 = vmatpush.msrb.mxu2 %v1376_v56  ;;  %1637 = vmatpush.msrb.mxu3 %v1456_v57  ;;  %v1391_v56 = vld [vmem:[%s5253_s9 + $0x538] sm:$0xff]  ;;  %v1232_v57 = vld [vmem:[%s5253_s9 + $0x40] sm:$0xff] }
 0x20c   : > { %1657 = vmatpush.msra.mxu0 %v1297_v58  ;;  %1677 = vmatpush.msra.mxu1 %v1377_v59  ;;  %v1312_v58 = vld [vmem:[%s5253_s9 + $0x2c0] sm:$0xff]  ;;  %v1306_v59 = vld [vmem:[%s5253_s9 + $0x290] sm:$0xff] }
 0x20d   : > { %1618 = vmatpush.msrb.mxu2 %v1371_v63  ;;  %1638 = vmatpush.msrb.mxu3 %v1451_v7  ;;  %v1386_v63 = vld [vmem:[%s5253_s9 + $0x510] sm:$0xff]  ;;  %v1227_v7 = vld [vmem:[%s5253_s9 + $0x18] sm:$0xff] }
 0x20e   : > { %1658 = vmatpush.msra.mxu0 %v1292_v8  ;;  %1678 = vmatpush.msra.mxu1 %v1372_v9  ;;  %v1307_v8 = vld [vmem:[%s5253_s9 + $0x298] sm:$0xff]  ;;  %v4474_v9 = vpop.eup %2936 }
 0x20f   : > { %1619 = vmatpush.msrb.mxu2 %v1366_v0  ;;  %1639 = vmatpush.msrb.mxu3 %v1446_v39  ;;  %v1462_v0 = vld [vmem:[%s5253_s9 + $0x770] sm:$0xff]  ;;  %v1303_v39 = vld [vmem:[%s5253_s9 + $0x278] sm:$0xff]  ;;  %vm2039_vm11 = vweird.f32 %v4474_v9 }
 0x210   : > { %1659 = vmatpush.msra.mxu0 %v1287_v2  ;;  %1679 = vmatpush.msra.mxu1 %v1367_v3  ;;  %v1383_v2 = vld [vmem:[%s5253_s9 + $0x4f8] sm:$0xff]  ;;  %vm4684_vm12 = vmor %vm2038_vm10, %vm2039_vm11 }
 0x211   : > { %1620 = vmatpush.msrb.mxu2 %v1361_v5  ;;  %1640 = vmatpush.msrb.mxu3 %v1441_v10  ;;  %v1463_v3 = vld [vmem:[%s5253_s9 + $0x778] sm:$0xff]  ;;  %v1457_v5 = vld [vmem:[%s5253_s9 + $0x748] sm:$0xff]  ;;  %v1298_v10 = vld [vmem:[%s5253_s9 + $0x250] sm:$0xff] }
 0x212   : > { %1660 = vmatpush.msra.mxu0 %v1282_v11  ;;  %1680 = vmatpush.msra.mxu1 %v1362_v30  ;;  %v2033_v11 = vmul.f32 %v4474_v9, %v4423_v50  ;;  %v1378_v30 = vld [vmem:[%s5253_s9 + $0x4d0] sm:$0xff]  ;;  %v1243_v50 = vld [vmem:[%s5253_s9 + $0x98] sm:$0xff] }
 0x213   : > { %1621 = vmatpush.msrb.mxu2 %v1356_v31  ;;  %1641 = vmatpush.msrb.mxu3 %v1436_v41  ;;  %v1458_v31 = vld [vmem:[%s5253_s9 + $0x750] sm:$0xff]  ;;  %v1452_v41 = vld [vmem:[%s5253_s9 + $0x720] sm:$0xff] }
 0x214   : > { %1661 = vmatpush.msra.mxu0 %v1277_v33  ;;  %1681 = vmatpush.msra.mxu1 %v1357_v34  ;;  %v1293_v33 = vld [vmem:[%s5253_s9 + $0x228] sm:$0xff] }
 0x215   : > { %1622 = vmatpush.msrb.mxu2 %v1351_v37  ;;  %1642 = vmatpush.msrb.mxu3 %v1431_v40  ;;  %v1373_v34 = vld [vmem:[%s5253_s9 + $0x4a8] sm:$0xff]  ;;  %v1447_v40 = vld [vmem:[%s5253_s9 + $0x6f8] sm:$0xff] }
 0x216   : > { %1662 = vmatpush.msra.mxu0 %v1272_v12  ;;  %1682 = vmatpush.msra.mxu1 %v1352_v13  ;;  %v1453_v37 = vld [vmem:[%s5253_s9 + $0x728] sm:$0xff]  ;;  %v1288_v12 = vld [vmem:[%s5253_s9 + $0x200] sm:$0xff]  ;;  %v2034_v13 = vmul.f32 %v4474_v9, %v2033_v11  ;;  %v1418_v11 = vld [vmem:[%s5253_s9 + $0x610] sm:$0xff] }
 0x217   : > { %1623 = vmatpush.msrb.mxu2 %v1346_v14  ;;  %1643 = vmatpush.msrb.mxu3 %v1426_v15  ;;  %v1368_v14 = vld [vmem:[%s5253_s9 + $0x480] sm:$0xff] }
 0x218   : > { %1663 = vmatpush.msra.mxu0 %v1267_v6  ;;  %1683 = vmatpush.msra.mxu1 %v1347_v16  ;;  %v1448_v15 = vld [vmem:[%s5253_s9 + $0x700] sm:$0xff]  ;;  %v1442_v6 = vld [vmem:[%s5253_s9 + $0x6d0] sm:$0xff]  ;;  %v1283_v16 = vld [vmem:[%s5253_s9 + $0x1d8] sm:$0xff] }
 0x219   : > { %1624 = vmatpush.msrb.mxu2 %v1341_v17  ;;  %1644 = vmatpush.msrb.mxu3 %v1421_v22  ;;  %v1363_v17 = vld [vmem:[%s5253_s9 + $0x458] sm:$0xff] }
 0x21a   : > { %1664 = vmatpush.msra.mxu0 %v1262_v23  ;;  %1684 = vmatpush.msra.mxu1 %v1342_v26  ;;  %v1443_v22 = vld [vmem:[%s5253_s9 + $0x6d8] sm:$0xff]  ;;  %v1437_v23 = vld [vmem:[%s5253_s9 + $0x6a8] sm:$0xff]  ;;  %v1278_v26 = vld [vmem:[%s5253_s9 + $0x1b0] sm:$0xff] }
 0x21b   : > { %1625 = vmatpush.msrb.mxu2 %v1336_v18  ;;  %1645 = vmatpush.msrb.mxu3 %v1416_v28  ;;  %v1358_v18 = vld [vmem:[%s5253_s9 + $0x430] sm:$0xff] }
 0x21c   : > { %1665 = vmatpush.msra.mxu0 %v1257_v60  ;;  %1685 = vmatpush.msra.mxu1 %v1337_v32  ;;  %v1438_v28 = vld [vmem:[%s5253_s9 + $0x6b0] sm:$0xff]  ;;  %v1432_v60 = vld [vmem:[%s5253_s9 + $0x680] sm:$0xff]  ;;  %v1273_v32 = vld [vmem:[%s5253_s9 + $0x188] sm:$0xff] }
 0x21d   : > { %1626 = vmatpush.msrb.mxu2 %v1331_v35  ;;  %1646 = vmatpush.msrb.mxu3 %v1411_v36  ;;  %v4561_v35 = vmul.f32 0.5, %v2034_v13  ;;  %v1353_v36 = vld [vmem:[%s5253_s9 + $0x408] sm:$0xff]  ;;  %v1248_v13 = vld [vmem:[%s5253_s9 + $0xc0] sm:$0xff] }
 0x21e   : > { %1666 = vmatpush.msra.mxu0 %v1252_v42  ;;  %1686 = vmatpush.msra.mxu1 %v1332_v38  ;;  %v1433_v42 = vld [vmem:[%s5253_s9 + $0x688] sm:$0xff]  ;;  %v4570_v38 = vld [vmem:[%s3374_s20 + $0x38] sm:$0xf] }
 0x21f   : > { %1627 = vmatpush.msrb.mxu2 %v1326_v48  ;;  %1647 = vmatpush.msrb.mxu3 %v1406_v43  ;;  %v4573_v48 = vld [vmem:[%s3374_s20 + $0x48] sm:$0xff]  ;;  %v1427_v43 = vld [vmem:[%s5253_s9 + $0x658] sm:$0xff] }
 0x220   : > { %1667 = vmatpush.msra.mxu0 %v1247_v46  ;;  %1687 = vmatpush.msra.mxu1 %v1327_v49  ;;  %v1268_v46 = vld [vmem:[%s5253_s9 + $0x160] sm:$0xff]  ;;  %v1866_v49 = vmul.f32 %v4570_v38, %v4570_v38 }
 0x221   : > { %1628 = vmatpush.msrb.mxu2 %v1321_v51  ;;  %1648 = vmatpush.msrb.mxu3 %v1401_v44  ;;  %v1869_v51 = vmul.f32 %v4573_v48, %v4573_v48  ;;  %v4585_v44 = vld.sshfl [vmem:[#allocation1] sm:$0xff pattern:$0x75316420] }
 0x222   : > { %1668 = vmatpush.msra.mxu0 %v1242_v45  ;;  %1688 = vmatpush.msra.mxu1 %v1322_v25  ;;  %v4587_v45 = vld.sshfl [vmem:[#allocation1 + $0x8] sm:$0xff pattern:$0x75316420]  ;;  %v4590_v25 = vld [vmem:[%s3374_s20 + $0x50] sm:$0xf] }
 0x223   : > { %1629 = vmatpush.msrb.mxu2 %v1316_v47  ;;  %1649 = vmatpush.msrb.mxu3 %v1396_v52  ;;  %v4593_v47 = vld [vmem:[%s3374_s20 + $0x3c] sm:$0xff]  ;;  %1913 = vst [vmem:[#allocation1 + $0x10] ss:$2 sm:$0xff] %v1866_v49 }
 0x224   : > { %1669 = vmatpush.msra.mxu0 %v1237_v53  ;;  %1689 = vmatpush.msra.mxu1 %v1317_v54  ;;  %v4595_v52 = vld.sshfl [vmem:[#allocation1 + $0x20] sm:$0xff pattern:$0x75316420]  ;;  %v1867_v54 = vmul.f32 %v4593_v47, %v4593_v47  ;;  %1922 = vst [vmem:[#allocation1] ss:$2 sm:$0xff] %v1869_v51  ;;  %v1958_v51 = vsel %vm1956_vm1, %v3404_v20, 0.0 }
 0x225   : > { %1630 = vmatpush.msrb.mxu2 %v1311_v55  ;;  %1650 = vmatpush.msrb.mxu3 %v1391_v56  ;;  %v1348_v53 = vld [vmem:[%s5253_s9 + $0x3e0] sm:$0xff]  ;;  %v4602_v55 = vld.sshfl [vmem:[#allocation1 + $0x28] sm:$0xff pattern:$0x75316420] }
 0x226   : > { %1670 = vmatpush.msra.mxu0 %v1232_v57  ;;  %1690 = vmatpush.msra.mxu1 %v1312_v58  ;;  %v1428_v56 = vld [vmem:[%s5253_s9 + $0x660] sm:$0xff]  ;;  %v4607_v57 = vld.sshfl [vmem:[#allocation1 + $0x30] sm:$0xff pattern:$0x75316420]  ;;  %1917 = vst [vmem:[#allocation1 + $0x20] ss:$2 sm:$0xff] %v1867_v54 }
 0x227   : > { %1631 = vmatpush.msrb.mxu2 %v1306_v59  ;;  %1651 = vmatpush.msrb.mxu3 %v1386_v63  ;;  %v1422_v58 = vld [vmem:[%s5253_s9 + $0x630] sm:$0xff]  ;;  %v1263_v59 = vld [vmem:[%s5253_s9 + $0x138] sm:$0xff]  ;;  %v4616_v63 = vld [vmem:[%s3374_s20 + $0x44] sm:$0xf]  ;;  %v1980_v54 = vsel %vm1956_vm1, %v4602_v55, 0.0 }
 0x228   : > { %1671 = vmatpush.msra.mxu0 %v1227_v7  ;;  %1691 = vmatpush.msra.mxu1 %v1307_v8  ;;  %v1343_v7 = vld [vmem:[%s5253_s9 + $0x3b8] sm:$0xff]  ;;  %v1233_v55 = vld [vmem:[%s5253_s9 + $0x48] sm:$0xff] }
 0x229   : > { %1632 = vmatmul.f32.vlgmr.msrb.gmra.mxu2 %v4208_v21  ;;  %1652 = vmatmul.f32.vlgmr.msrb.gmra.mxu3 %v4222_v27  ;;  %v1423_v8 = vld [vmem:[%s5253_s9 + $0x638] sm:$0xff] }
 0x22a   : > { %1672 = vmatmul.f32.vlgmr.msra.gmra.mxu0 %v4146_v61  ;;  %1692 = vmatmul.f32.vlgmr.msra.gmra.mxu1 %v4208_v21 }
 0x22b   : > { %1696 = vmatpush.msra.mxu2 %v1462_v0  ;;  %1716 = vmatpush.msra.mxu3 %v1303_v39  ;;  %v4625_v0 = vld [vmem:[%s3374_s20 + $0x54] sm:$0xff]  ;;  %v1868_v39 = vmul.f32 %v4616_v63, %v4616_v63 }
 0x22c   : > { %1736 = vmatpush.msrb.mxu0 %v1383_v2  ;;  %1756 = vmatpush.msrb.mxu1 %v1463_v3  ;;  %v1417_v2 = vld [vmem:[%s5253_s9 + $0x608] sm:$0xff]  ;;  %v1258_v3 = vld [vmem:[%s5253_s9 + $0x110] sm:$0xff] }
 0x22d   : > { %1697 = vmatpush.msra.mxu2 %v1457_v5  ;;  %1717 = vmatpush.msra.mxu3 %v1298_v10  ;;  %v1338_v5 = vld [vmem:[%s5253_s9 + $0x390] sm:$0xff]  ;;  %v1870_v10 = vmul.f32 %v4590_v25, %v4590_v25  ;;  %1918 = vst [vmem:[#allocation1 + $0x30] ss:$2 sm:$0xff] %v1868_v39 }
 0x22e   : > { %1737 = vmatpush.msrb.mxu0 %v1378_v30  ;;  %1757 = vmatpush.msrb.mxu1 %v1458_v31  ;;  %v1412_v30 = vld [vmem:[%s5253_s9 + $0x5e0] sm:$0xff]  ;;  %v1253_v31 = vld [vmem:[%s5253_s9 + $0xe8] sm:$0xff] }
 0x22f   : > { %1698 = vmatpush.msra.mxu2 %v1452_v41  ;;  %1718 = vmatpush.msra.mxu3 %v1293_v33  ;;  %v2036_v41 = vsub.f32 1.5, %v4561_v35  ;;  %v1333_v33 = vld [vmem:[%s5253_s9 + $0x368] sm:$0xff] }
 0x230   : > { %1738 = vmatpush.msrb.mxu0 %v1373_v34  ;;  %1758 = vmatpush.msrb.mxu1 %v1453_v37  ;;  %v1413_v34 = vld [vmem:[%s5253_s9 + $0x5e8] sm:$0xff]  ;;  %v4659_v37 = vld [vmem:[%s3374_s20 + $0x5c] sm:$0xf] }
 0x231   : > { %1699 = vmatpush.msra.mxu2 %v1447_v40  ;;  %1719 = vmatpush.msra.mxu3 %v1288_v12  ;;  %v1871_v40 = vmul.f32 %v4625_v0, %v4625_v0  ;;  %v1407_v12 = vld [vmem:[%s5253_s9 + $0x5b8] sm:$0xff] }
 0x232   : > { %1739 = vmatpush.msrb.mxu0 %v1368_v14  ;;  %1759 = vmatpush.msrb.mxu1 %v1448_v15  ;;  %v4669_v14 = vld.sshfl [vmem:[#allocation1 + $0x10] sm:$0xff pattern:$0x75316420]  ;;  %v1328_v15 = vld [vmem:[%s5253_s9 + $0x340] sm:$0xff] }
 0x233   : > { %1700 = vmatpush.msra.mxu2 %v1442_v6  ;;  %1720 = vmatpush.msra.mxu3 %v1283_v16  ;;  %v1408_v6 = vld [vmem:[%s5253_s9 + $0x5c0] sm:$0xff]  ;;  %v1402_v16 = vld [vmem:[%s5253_s9 + $0x590] sm:$0xff]  ;;  %1923 = vst [vmem:[#allocation1 + $0x10] ss:$2 sm:$0xff] %v1870_v10 }
 0x234   : > { %1740 = vmatpush.msrb.mxu0 %v1363_v17  ;;  %1760 = vmatpush.msrb.mxu1 %v1443_v22  ;;  %v1872_v22 = vmul.f32 %v4659_v37, %v4659_v37  ;;  %v1228_v10 = vld [vmem:[%s5253_s9 + $0x20] sm:$0xff] }
 0x235   : > { %1701 = vmatpush.msra.mxu2 %v1437_v23  ;;  %1721 = vmatpush.msra.mxu3 %v1278_v26  ;;  %v4690_v23 = vld.sshfl [vmem:[#allocation1 + $0x20] sm:$0xff pattern:$0x75316420]  ;;  %v4692_v26 = vld.sshfl [vmem:[#allocation1 + $0x28] sm:$0xff pattern:$0x75316420] }
 0x236   : > { %1741 = vmatpush.msrb.mxu0 %v1358_v18  ;;  %1761 = vmatpush.msrb.mxu1 %v1438_v28  ;;  %v2037_v18 = vmul.f32 %v4474_v9, %v2036_v41  ;;  %v1323_v28 = vld [vmem:[%s5253_s9 + $0x318] sm:$0xff]  ;;  %1927 = vst [vmem:[#allocation1 + $0x20] ss:$2 sm:$0xff] %v1871_v40 }
 0x237   : > { %1702 = vmatpush.msra.mxu2 %v1432_v60  ;;  %1722 = vmatpush.msra.mxu3 %v1273_v32  ;;  %v4704_v60 = vld [vmem:[%s5250_s6] sm:$0x7]  ;;  %v3110_v32 = vmov 839922192  }
 0x238   : > { %1742 = vmatpush.msrb.mxu0 %v1353_v36  ;;  %1762 = vmatpush.msrb.mxu1 %v1433_v42  ;;  %v2111_v35 = vunpack.c.l.s4 %v3110_v32  ;;  %v1403_v36 = vld [vmem:[%s5253_s9 + $0x598] sm:$0xff]  ;;  %v1397_v42 = vld [vmem:[%s5253_s9 + $0x568] sm:$0xff]  ;;  %v1038_v49 = vperm.slane %v4704_v60, 0  ;;  %v2041_v20 = vsel %vm4684_vm12, %v4474_v9, %v2037_v18  ;;  %v1994_v18 = vsel %vm1956_vm1, %v4692_v26, 0.0 }
 0x239   : > { %1703 = vmatpush.msra.mxu2 %v1427_v43  ;;  %1723 = vmatpush.msra.mxu3 %v1268_v46  ;;  %v1238_v43 = vld [vmem:[%s5253_s9 + $0x70] sm:$0xff]  ;;  %v1957_v46 = vsel %vm1956_vm1, %v3402_v19, 0.0  ;;  %v1313_v9 = vld [vmem:[%s5253_s9 + $0x2c8] sm:$0xff] }
 0x23a   : > { %1743 = vmatpush.msrb.mxu0 %v1348_v53  ;;  %1763 = vmatpush.msrb.mxu1 %v1428_v56  ;;  %v1979_v53 = vsel %vm1956_vm1, %v4595_v52, 0.0  ;;  %v4727_v56 = vld.sshfl [vmem:[#allocation1 + $0x30] sm:$0xff pattern:$0x75316420]  ;;  %v1392_v52 = vld [vmem:[%s5253_s9 + $0x540] sm:$0xff]  ;;  %v1959_v39 = vadd.f32 %v1958_v51, %v1957_v46 }
 0x23b   : > { %1704 = vmatpush.msra.mxu2 %v1422_v58  ;;  %1724 = vmatpush.msra.mxu3 %v1263_v59  ;;  %v1318_v19 = vld [vmem:[%s5253_s9 + $0x2f0] sm:$0xff]  ;;  %1928 = vst [vmem:[#allocation1 + $0x30] ss:$2 sm:$0xff] %v1872_v22  ;;  %v1993_v22 = vsel %vm1956_vm1, %v4690_v23, 0.0 }
 0x23c   : > { %1744 = vmatpush.msrb.mxu0 %v1343_v7  ;;  %1764 = vmatpush.msrb.mxu1 %v1423_v8  ;;  %v1398_v58 = vld [vmem:[%s5253_s9 + $0x570] sm:$0xff]  ;;  %v4745_v7 = vunpack.c.0.s8 %v2111_v35  ;;  %v1393_v8 = vld [vmem:[%s5253_s9 + $0x548] sm:$0xff]  ;;  %v1924_v35 = vld.sshfl [vmem:[#allocation1] sm:$0xff pattern:$0x75316420]  ;;  %v1995_v46 = vadd.f32 %v1994_v18, %v1993_v22 }
 0x23d   : > { %1705 = vmatpush.msra.mxu2 %v1417_v2  ;;  %1725 = vmatpush.msra.mxu3 %v1258_v3  ;;  %v1981_v3 = vadd.f32 %v1980_v54, %v1979_v53  ;;  %v1925_v23 = vld.sshfl [vmem:[#allocation1 + $0x8] sm:$0xff pattern:$0x75316420]  ;;  %v1929_v53 = vld.sshfl [vmem:[#allocation1 + $0x20] sm:$0xff pattern:$0x75316420] }
 0x23e   : > { %1745 = vmatpush.msrb.mxu0 %v1338_v5  ;;  %1765 = vmatpush.msrb.mxu1 %v1418_v11  ;;  %v1387_v5 = vld [vmem:[%s5253_s9 + $0x518] sm:$0xff]  ;;  %v1961_v11 = vsel %vm1960_vm2, %v3410_v24, 0.0  ;;  %v2117_v41 = vperm.slane %v2041_v20, %v4745_v7  ;;  %v1930_v54 = vld.sshfl [vmem:[#allocation1 + $0x28] sm:$0xff pattern:$0x75316420] }
 0x23f   : > { %1706 = vmatpush.msra.mxu2 %v1412_v30  ;;  %1726 = vmatpush.msra.mxu3 %v1253_v31  ;;  %v1982_v31 = vsel %vm1960_vm2, %v4607_v57, 0.0  ;;  %v1101_v24 = vpop.f32.mrf.mxu0  ;;  %v1039_v57 = vperm.slane %v4704_v60, 1  ;;  %v4839_v18 = vld [vmem:[%s5254_s10] sm:$0x1f] }
 0x240   : > { %1746 = vmatpush.msrb.mxu0 %v1333_v33  ;;  %1766 = vmatpush.msrb.mxu1 %v1413_v34  ;;  %v1308_v33 = vld [vmem:[%s5253_s9 + $0x2a0] sm:$0xff]  ;;  %v1983_v17 = vadd.f32 %v1982_v31, %v1981_v3  ;;  %v1040_v3 = vperm.slane %v4704_v60, 2 }
 0x241   : > { %1707 = vmatpush.msra.mxu2 %v1407_v12  ;;  %1727 = vmatpush.msra.mxu3 %v1248_v13  ;;  %v1388_v34 = vld [vmem:[%s5253_s9 + $0x520] sm:$0xff]  ;;  %v1986_v12 = vsel %vm1956_vm1, %v4585_v44, 0.0  ;;  %v1987_v13 = vsel %vm1956_vm1, %v4587_v45, 0.0  ;;  %v2976_v44 = vld [vmem:[%s3374_s20 + $0xc] sm:$0xff] }
 0x242   : > { %1747 = vmatpush.msrb.mxu0 %v1328_v15  ;;  %1767 = vmatpush.msrb.mxu1 %v1408_v6  ;;  %v1121_v15 = vpop.f32.mrf.mxu1  ;;  %v1962_v6 = vadd.f32 %v1961_v11, %v1959_v39  ;;  %v1988_v32 = vadd.f32 %v1987_v13, %v1986_v12 }
 0x243   : > { %1708 = vmatpush.msra.mxu2 %v1402_v16  ;;  %1728 = vmatpush.msra.mxu3 %v1243_v50  ;;  %v2152_v50 = vmul.f32 %v2976_v44, %v2117_v41  ;;  %v1122_v26 = vadd.f32 %v1121_v15, %v1039_v57 }
 0x244   : > { %1748 = vmatpush.msrb.mxu0 %v1323_v28  ;;  %1768 = vmatpush.msrb.mxu1 %v1403_v36  ;;  %v1061_v59 = vpop.f32.mrf.mxu2  ;;  %v1081_v30 = vpop.f32.mrf.mxu3  ;;  %v2977_v28 = vld [vmem:[%s3374_s20 + $0x14] sm:$0xf]  ;;  %v1989_v36 = vsel %vm1960_vm2, %v4669_v14, 0.0 }
 0x245   : > { %1709 = vmatpush.msra.mxu2 %v1397_v42  ;;  %1729 = vmatpush.msra.mxu3 %v1238_v43  ;;  %v1062_v2 = vadd.f32 %v1061_v59, %v1038_v49  ;;  %v2153_v45 = vmul.f32 %v2977_v28, %v2117_v41  ;;  %v1926_v42 = vld.sshfl [vmem:[#allocation1 + $0x10] sm:$0xff pattern:$0x75316420]  ;;  %v2001_v43 = vsel %vm1956_vm1, %v1925_v23, 0.0  ;;  %v1996_v49 = vsel %vm1960_vm2, %v4727_v56, 0.0 }
 0x246   : > { %1749 = vmatpush.msrb.mxu0 %v1318_v19  ;;  %1769 = vmatpush.msrb.mxu1 %v1398_v58  ;;  %v1931_v58 = vld.sshfl [vmem:[#allocation1 + $0x30] sm:$0xff pattern:$0x75316420]  ;;  %2290 = vst [vmem:[#allocation1 + $0x20] ss:$2 sm:$0xff] %v2152_v50  ;;  %v1997_v59 = vadd.f32 %v1996_v49, %v1995_v46  ;;  %v2007_v56 = vsel %vm1956_vm1, %v1929_v53, 0.0 }
 0x247   : > { %1710 = vmatpush.msra.mxu2 %v1392_v52  ;;  %1730 = vmatpush.msra.mxu3 %v1233_v55  ;;  %v1082_v40 = vadd.f32 %v1081_v30, %v1062_v2  ;;  %2292 = vst [vmem:[#allocation1 + $0x30] ss:$2 sm:$0xff] %v2153_v45  ;;  %v1990_v55 = vadd.f32 %v1989_v36, %v1988_v32  ;;  %v2010_v39 = vsel %vm1960_vm2, %v1931_v58, 0.0  ;;  %v1466_v28 = vperm.slane %v4839_v18, 0  ;;  %v2580_v49 = vld [vmem:[%s4852_s28] sm:$0xff]  ;;  %v2581_v53 = vld [vmem:[%s4852_s28 + $0x8] sm:$0xff] }
 0x248   : > { %1750 = vmatpush.msrb.mxu0 %v1313_v9  ;;  %1770 = vmatpush.msrb.mxu1 %v1393_v8  ;;  %v2008_v9 = vsel %vm1956_vm1, %v1930_v54, 0.0 }
 0x249   : > { %1711 = vmatpush.msra.mxu2 %v1387_v5  ;;  %1731 = vmatpush.msra.mxu3 %v1228_v10  ;;  %v4775_v16 = vadd.f32 %v1101_v24, %v1082_v40  ;;  %v2009_v8 = vadd.f32 %v2008_v9, %v2007_v56  ;;  %v1181_v5 = vpop.f32.mrf.mxu0  ;;  %v4818_v40 = vld [vmem:[%s587_s21 + $0x8] sm:$0xff]  ;;  %v4822_v24 = vld [vmem:[%s587_s21 + $0x10] sm:$0xff] }
 0x24a   : > { %1751 = vmatpush.msrb.mxu0 %v1308_v33  ;;  %1771 = vmatpush.msrb.mxu1 %v1388_v34  ;;  %v1182_v10 = vadd.f32 %v1181_v5, %v1040_v3  ;;  %v1201_v11 = vpop.f32.mrf.mxu1  ;;  %v4816_v34 = vld [vmem:[%s587_s21] sm:$0xff]  ;;  %v1836_v15 = vmul.f32 %v4818_v40, %v4818_v40  ;;  %v2582_v3 = vld [vmem:[%s4852_s28 + $0x10] sm:$0xff]  ;;  %v2016_v5 = vadd.f32 1e-08, %v3827_v29  ;;  %s2664_s21 = sshll.u32 %s4844_s16, 4  ;;  %s2665_s21 = int_to_ptr.vmem [resolvable:$true] %s2664_s21 }
 0x24b   : > { %1712 = vmatmul.f32.vlgmr.msra.gmra.mxu2 %v4222_v27  ;;  %1732 = vmatmul.f32.vlgmr.msra.gmra.mxu3 %v4146_v61  ;;  %1776 = vst [vmem:[%s4787_s14] sm:$0xff] %v4775_v16  ;;  %v2000_v61 = vsel %vm1956_vm1, %v1924_v35, 0.0  ;;  %v2011_v2 = vadd.f32 %v2010_v39, %v2009_v8  ;;  %v1813_v60 = vmul.f32 %v4775_v16, %v4775_v16 }
 0x24c   : > { %1752 = vmatmul.f32.vlgmr.msrb.gmra.mxu0 %v4208_v21  ;;  %1772 = vmatmul.f32.vlgmr.msrb.gmra.mxu1 %v4222_v27  ;;  %v2002_v51 = vadd.f32 %v2001_v43, %v2000_v61  ;;  %v2003_v21 = vsel %vm1960_vm2, %v1926_v42, 0.0  ;;  %v1202_v30 = vadd.f32 %v1201_v11, %v1182_v10  ;;  %v1835_v13 = vmul.f32 %v4816_v34, %v4816_v34 }
 0x24d   : > { %1963 = vadd.xlane.f32.xlu1 %v1962_v6  ;;  %1984 = vadd.xlane.f32.xlu0 %v1983_v17  ;;  %v1837_v17 = vmul.f32 %v4822_v24, %v4822_v24  ;;  %v1467_v61 = vperm.slane %v4839_v18, 1  ;;  %2938 = vrsqrt.f32 %v2016_v5  ;;  %vm2048_vm14 = vweird.f32 %v2016_v5 }
 0x24e   : > { %v1141_v27 = vpop.f32.mrf.mxu2  ;;  %v2004_v14 = vadd.f32 %v2003_v21, %v2002_v51  ;;  %v1161_v20 = vpop.f32.mrf.mxu3  ;;  %v1838_v44 = vadd.f32 %v1836_v15, %v1835_v13 }
 0x24f   : > { %v1142_v19 = vadd.f32 %v1141_v27, %v1122_v26  ;;  %v1839_v50 = vsel %vm1778_vm13, %v1837_v17, 0.0 }
 0x250   : > { %2005 = vadd.xlane.f32.xlu2 %v2004_v14  ;;  %v1840_v45 = vadd.f32 %v1839_v50, %v1838_v44 }
 0x251   : > { %v4800_v52 = vadd.f32 %v1161_v20, %v1142_v19 }
 0x253   : > { %1777 = vst [vmem:[%s4787_s14 + $0x8] sm:$0xff] %v4800_v52  ;;  %v1814_v31 = vmul.f32 %v4800_v52, %v4800_v52 }
 0x255   : > { %1991 = vadd.xlane.f32.xlu1 %v1990_v55  ;;  %1998 = vadd.xlane.f32.xlu0 %v1997_v59  ;;  %v1816_v12 = vadd.f32 %v1814_v31, %v1813_v60  ;;  %v1468_v59 = vperm.slane %v4839_v18, 2 }
 0x25d   : > { %2012 = vadd.xlane.f32.xlu0 %v2011_v2 }
 0x268   : > { %v1221_v41 = vpop.f32.mrf.mxu2 }
 0x269   : > { %v4814_v33 = vadd.f32 %v1221_v41, %v1202_v30  ;;  %v4863_v41 = vpop.eup %2938 }
 0x26a   : > { %v2043_v60 = vmul.f32 %v4863_v41, %v2016_v5  ;;  %vm2049_vm15 = vweird.f32 %v4863_v41 }
 0x26b   : > { %1779 = vst.msk [vmem:[%s4787_s14 + $0x10] sm:$0xff] %vm1778_vm13, %v4814_v33  ;;  %v1815_v57 = vmul.f32 %v4814_v33, %v4814_v33  ;;  %vm4888_vm6 = vmor %vm2048_vm14, %vm2049_vm15 }
 0x26d   : > { %v1817_v6 = vsel %vm1778_vm13, %v1815_v57, 0.0  ;;  %v2044_v57 = vmul.f32 %v4863_v41, %v2043_v60 }
 0x26e   : > { %v1818_v22 = vadd.f32 %v1817_v6, %v1816_v12 }
 0x26f   : > { %v2045_v17 = vmul.f32 0.5, %v2044_v57 }
 0x270   : > { %1819 = vadd.xlane.f32.xlu1 %v1818_v22  ;;  %v1469_v22 = vperm.slane %v4839_v18, 3 }
 0x276   : > { %v1493_v32 = vpop.f32.mrf.mxu3 }
 0x277   : > { %v1494_v35 = vadd.f32 %v1493_v32, %v1466_v28  ;;  %v2046_v28 = vsub.f32 1.5, %v2045_v17 }
 0x278   : > { %1841 = vadd.xlane.f32.xlu1 %v1840_v45 }
 0x279   : > { %v1513_v23 = vpop.f32.mrf.mxu0 }
 0x27a   : > { %v1514_v26 = vadd.f32 %v1513_v23, %v1494_v35 }
 0x27c   : > { %v1533_v36 = vpop.f32.mrf.mxu1 }
 0x27d   : > { %v1534_v42 = vadd.f32 %v1533_v36, %v1514_v26 }
 0x27f   : > { %1780 = vst [vmem:[%s4844_s16] sm:$0xff] %v1534_v42  ;;  %v2585_v54 = vsub.f32 %v1534_v42, %v2580_v49 }
 0x281   : > { %v2590_v58 = vmul.f32 %v2585_v54, %v2585_v54 }
 0x285   : > { %v1593_v27 = vpop.f32.mrf.mxu0  ;;  %v1613_v56 = vpop.f32.mrf.mxu1 }
 0x286   : > { %v1614_v9 = vadd.f32 %v1613_v56, %v1468_v59  ;;  %v4937_v56 = vld.sshfl [vmem:[#allocation1 + $0x30] sm:$0xff pattern:$0x75316420] }
 0x28a   : > { %v1553_v43 = vpop.f32.mrf.mxu2  ;;  %v1573_v51 = vpop.f32.mrf.mxu3 }
 0x28b   : > { %v1554_v46 = vadd.f32 %v1553_v43, %v1467_v61 }
 0x28d   : > { %v1574_v21 = vadd.f32 %v1573_v51, %v1554_v46  ;;  %v1470_v46 = vperm.slane %v4839_v18, 4  ;;  %v2583_v18 = vld [vmem:[%s4852_s28 + $0x18] sm:$0xff] }
 0x28f   : > { %v1594_v19 = vadd.f32 %v1593_v27, %v1574_v21  ;;  %v4879_v21 = vmul.f32 %v4863_v41, %v2046_v28 }
 0x291   : > { %1781 = vst [vmem:[%s4844_s16 + $0x8] sm:$0xff] %v1594_v19  ;;  %v2586_v14 = vsub.f32 %v1594_v19, %v2581_v53 }
 0x293   : > { %v2591_v20 = vmul.f32 %v2586_v14, %v2586_v14 }
 0x295   : > { %v2595_v55 = vadd.f32 %v2591_v20, %v2590_v58 }
 0x2a7   : > { %v1673_v50 = vpop.f32.mrf.mxu0  ;;  %v1693_v61 = vpop.f32.mrf.mxu1 }
 0x2a8   : > { %v1674_v23 = vadd.f32 %v1673_v50, %v1469_v22 }
 0x2aa   : > { %v1694_v27 = vadd.f32 %v1693_v61, %v1674_v23  ;;  %v2584_v23 = vld [vmem:[%s4852_s28 + $0x20] sm:$0xff] }
 0x2ac   : > { %v1633_v8 = vpop.f32.mrf.mxu2  ;;  %v1653_v2 = vpop.f32.mrf.mxu3 }
 0x2ad   : > { %v1634_v39 = vadd.f32 %v1633_v8, %v1614_v9 }
 0x2af   : > { %v1654_v10 = vadd.f32 %v1653_v2, %v1634_v39 }
 0x2b1   : > { %1782 = vst [vmem:[%s4844_s16 + $0x10] sm:$0xff] %v1654_v10  ;;  %v2587_v11 = vsub.f32 %v1654_v10, %v2582_v3 }
 0x2b3   : > { %v2592_v30 = vmul.f32 %v2587_v11, %v2587_v11 }
 0x2b5   : > { %v4861_v31 = vadd.f32 %v2595_v55, %v2592_v30 }
 0x2c0   : > { %v1964_v12 = vpop.xlane.xlu1 %1963  ;;  %v1985_v13 = vpop.xlane.xlu0 %1984 }
 0x2c1   : > { %v2014_v15 = vadd.f32 1e-08, %v1964_v12  ;;  %v2017_v6 = vadd.f32 1e-08, %v1985_v13 }
 0x2c3   : > { %2940 = vrsqrt.f32 %v2014_v15  ;;  %v2006_v29 = vpop.xlane.xlu2 %2005  ;;  %vm2028_vm0 = vweird.f32 %v2014_v15  ;;  %vm2058_vm4 = vweird.f32 %v2017_v6 }
 0x2c4   : > { %2942 = vrsqrt.f32 %v2017_v6  ;;  %v4868_v44 = vadd.f32 1e-08, %v2006_v29  ;;  %v2051_v29 = vsel %vm4888_vm6, %v4863_v41, %v4879_v21 }
 0x2c6   : > { %2944 = vrsqrt.f32 %v4868_v44 }
 0x2c8   : > { %v1992_v45 = vpop.xlane.xlu1 %1991  ;;  %v1999_v32 = vpop.xlane.xlu0 %1998 }
 0x2c9   : > { %v2941_v35 = vpop.eup %2940  ;;  %v4870_v26 = vadd.f32 1e-08, %v1992_v45  ;;  %v4872_v36 = vadd.f32 1e-08, %v1999_v32  ;;  %v1753_v8 = vpop.f32.mrf.mxu0 }
 0x2ca   : > { %v2943_v42 = vpop.eup %2942  ;;  %v2023_v43 = vmul.f32 %v2941_v35, %v2014_v15  ;;  %vm2029_vm3 = vweird.f32 %v2941_v35  ;;  %v1773_v12 = vpop.f32.mrf.mxu1 }
 0x2cb   : > { %2946 = vrsqrt.f32 %v4870_v26  ;;  %v2053_v49 = vmul.f32 %v2943_v42, %v2017_v6  ;;  %vm2059_vm5 = vweird.f32 %v2943_v42  ;;  %vm4896_vm7 = vmor %vm2028_vm0, %vm2029_vm3  ;;  %vm2078_vm10 = vweird.f32 %v4872_v36 }
 0x2cc   : > { %v2024_v51 = vmul.f32 %v2941_v35, %v2023_v43  ;;  %2948 = vrsqrt.f32 %v4872_v36  ;;  %v4883_v58 = vpop.eup %2944  ;;  %vm4907_vm8 = vmor %vm2058_vm4, %vm2059_vm5  ;;  %vm2068_vm12 = vweird.f32 %v4870_v26  ;;  %vm2088_vm5 = vweird.f32 %v4868_v44 }
 0x2cd   : > { %v2054_v53 = vmul.f32 %v2943_v42, %v2053_v49  ;;  %v2083_v17 = vmul.f32 %v4883_v58, %v4868_v44  ;;  %vm2089_vm6 = vweird.f32 %v4883_v58 }
 0x2ce   : > { %v2025_v54 = vmul.f32 0.5, %v2024_v51  ;;  %v1713_v19 = vpop.f32.mrf.mxu2  ;;  %v1733_v14 = vpop.f32.mrf.mxu3  ;;  %v2978_v51 = vld [vmem:[%s3374_s20] sm:$0xff] }
 0x2cf   : > { %v1714_v20 = vadd.f32 %v1713_v19, %v1694_v27  ;;  %v1734_v55 = vadd.f32 %v1733_v14, %v1470_v46  ;;  %v2055_v59 = vmul.f32 0.5, %v2054_v53  ;;  %v2084_v49 = vmul.f32 %v4883_v58, %v2083_v17  ;;  %v2979_v27 = vld [vmem:[%s3374_s20 + $0x8] sm:$0xf]  ;;  %v4933_v19 = vld.sshfl [vmem:[#allocation1 + $0x20] sm:$0xff pattern:$0x75316420] }
 0x2d0   : > { %v2026_v9 = vsub.f32 1.5, %v2025_v54  ;;  %v2013_v39 = vpop.xlane.xlu0 %2012  ;;  %v2980_v14 = vld [vmem:[%s3374_s20 + $0x24] sm:$0xff]  ;;  %v2982_v17 = vld [vmem:[%s3374_s20 + $0x20] sm:$0xf] }
 0x2d1   : > { %v4892_v2 = vpop.eup %2946  ;;  %1783 = vst [vmem:[%s4844_s16 + $0x18] sm:$0xff] %v1714_v20  ;;  %v2588_v10 = vsub.f32 %v1714_v20, %v2583_v18  ;;  %v1754_v11 = vadd.f32 %v1753_v8, %v1734_v55  ;;  %v2056_v30 = vsub.f32 1.5, %v2055_v59  ;;  %v4901_v5 = vadd.f32 1e-08, %v2013_v39  ;;  %v2981_v55 = vld [vmem:[%s3374_s20 + $0x2c] sm:$0xf] }
 0x2d2   : > { %v2949_v60 = vpop.eup %2948  ;;  %v2027_v57 = vmul.f32 %v2941_v35, %v2026_v9  ;;  %v2063_v13 = vmul.f32 %v4892_v2, %v4870_v26  ;;  %v4939_v8 = vld.sshfl [vmem:[#allocation1 + $0x28] sm:$0xff pattern:$0x75316420]  ;;  %vm2069_vm14 = vweird.f32 %v4892_v2 }
 0x2d3   : > { %v1774_v22 = vadd.f32 %v1773_v12, %v1754_v11  ;;  %v2057_v50 = vmul.f32 %v2943_v42, %v2056_v30  ;;  %v2073_v28 = vmul.f32 %v2949_v60, %v4872_v36  ;;  %v2593_v45 = vmul.f32 %v2588_v10, %v2588_v10  ;;  %vm4953_vm0 = vmor %vm2068_vm12, %vm2069_vm14 }
 0x2d4   : > { %v2031_v6 = vsel %vm4896_vm7, %v2941_v35, %v2027_v57  ;;  %v2064_v32 = vmul.f32 %v4892_v2, %v2063_v13  ;;  %2950 = vrsqrt.f32 %v4901_v5  ;;  %vm2079_vm11 = vweird.f32 %v2949_v60 }
 0x2d5   : > { %v2113_v61 = vperm.slane %v2031_v6, %v4745_v7  ;;  %v2061_v41 = vsel %vm4907_vm8, %v2943_v42, %v2057_v50  ;;  %v2074_v43 = vmul.f32 %v2949_v60, %v2073_v28  ;;  %1785 = vst.msk [vmem:[%s4844_s16 + $0x20] sm:$0xff] %vm1784_vm9, %v1774_v22  ;;  %v2589_v42 = vsub.f32 %v1774_v22, %v2584_v23  ;;  %vm2080_vm15 = vmor %vm2078_vm10, %vm2079_vm11  ;;  %v2983_v28 = vld [vmem:[%s3374_s20 + $0x18] sm:$0xff]  ;;  %s3005_s16 = scalar_lea.hbm %s5259_s15, 120 }
 0x2d6   : > { %v2065_v35 = vmul.f32 0.5, %v2064_v32  ;;  %v2125_v46 = vperm.slane %v2061_v41, %v4745_v7  ;;  %v2597_v3 = vadd.f32 %v4861_v31, %v2593_v45  ;;  %v2121_v10 = vperm.slane %v2051_v29, %v4745_v7  ;;  %vm2090_vm8 = vmor %vm2088_vm5, %vm2089_vm6 }
 0x2d7   : > { %v2150_v21 = vmul.f32 %v2978_v51, %v2113_v61  ;;  %v2151_v53 = vmul.f32 %v2979_v27, %v2113_v61  ;;  %v2075_v54 = vmul.f32 0.5, %v2074_v43  ;;  %v2594_v39 = vmul.f32 %v2589_v42, %v2589_v42  ;;  %v2984_v42 = vld [vmem:[%s3374_s20 + $0x30] sm:$0xff]  ;;  %s2876_s20 = smul.u32 40, %s3218_s25 }
 0x2d8   : > { %v2066_v18 = vsub.f32 1.5, %v2065_v35  ;;  %v2156_v20 = vmul.f32 %v2980_v14, %v2125_v46  ;;  %v2157_v59 = vmul.f32 %v2981_v55, %v2125_v46  ;;  %v2085_v57 = vmul.f32 0.5, %v2084_v49 }
 0x2d9   : > { %2285 = vst [vmem:[#allocation1 + $0x10] ss:$2 sm:$0xff] %v2151_v53  ;;  %v2076_v9 = vsub.f32 1.5, %v2075_v54  ;;  %v2598_v12 = vsel %vm1784_vm9, %v2594_v39, 0.0  ;;  %v2155_v29 = vmul.f32 %v2982_v17, %v2121_v10  ;;  %v2154_v6 = vmul.f32 %v2983_v28, %v2121_v10  ;;  %s2662_s17 = scalar_lea.hbm %s5259_s15, %s2876_s20 }
 0x2da   : > { %2283 = vst [vmem:[#allocation1] ss:$2 sm:$0xff] %v2150_v21  ;;  %v2951_v11 = vpop.eup %2950  ;;  %v2067_v31 = vmul.f32 %v4892_v2, %v2066_v18  ;;  %v4951_v15 = vadd.f32 %v2598_v12, %v2597_v3  ;;  %v2086_v45 = vsub.f32 1.5, %v2085_v57  ;;  %vm2098_vm3 = vweird.f32 %v4901_v5  ;;  %s2666_s24 = sshll.u32 %s2662_s17, 4  ;;  %s2667_s24 = int_to_ptr.hbm [resolvable:$true] %s2666_s24 }
 0x2db   : > { %v2077_v30 = vmul.f32 %v2949_v60, %v2076_v9  ;;  %2302 = vst [vmem:[#allocation1 + $0x30] ss:$2 sm:$0xff] %v2157_v59  ;;  %v2093_v13 = vmul.f32 %v2951_v11, %v4901_v5  ;;  %vm2099_vm4 = vweird.f32 %v2951_v11  ;;  %vm2180_vm12 = vcmask 1040384   ;;  %s2999_s28 = sshra.s32 %s2667_s24, 4  ;;  %s3000_s28 = int_to_ptr.hbm [resolvable:$true] %s2999_s28 }
 0x2dc   : > { %2301 = vst [vmem:[#allocation1 + $0x20] ss:$2 sm:$0xff] %v2156_v20  ;;  %v2071_v32 = vsel %vm4953_vm0, %v4892_v2, %v2067_v31  ;;  %vm2100_vm7 = vmor %vm2098_vm3, %vm2099_vm4  ;;  %v2087_v51 = vmul.f32 %v4883_v58, %v2086_v45  ;;  %vm2182_vm14 = vcmask 1041408   ;;  %vm2184_vm0 = vcmask 1041409   ;;  %s3001_s1 = scalar_lea.hbm %s3000_s28, 40  ;;  %p3006_p1 = scmp.lt.s32.totalorder %s3000_s28, %s5259_s15 }
 0x2dd   : > { %v2081_v36 = vsel %vm2080_vm15, %v2949_v60, %v2077_v30  ;;  %v2094_v50 = vmul.f32 %v2951_v11, %v2093_v13  ;;  %v2129_v5 = vperm.slane %v2071_v32, %v4745_v7  ;;  %vm2189_vm15 = vcmask 1042434   ;;  %p3002_p12 = scmp.ne.s32.totalorder %s3000_s28, %s3001_s1  ;;  %p3007_p2 = scmp.lt.s32.totalorder %s3005_s16, %s3001_s1 }
 0x2de   : > { %v2133_v22 = vperm.slane %v2081_v36, %v4745_v7  ;;  %v2091_v14 = vsel %vm2090_vm8, %v4883_v58, %v2087_v51  ;;  %vm2194_vm3 = vcmask 1043459   ;;  %vm2191_vm6 = vcmask 1043458  }
 0x2df   : > { %v2095_v23 = vmul.f32 0.5, %v2094_v50  ;;  %v2159_v53 = vmul.f32 %v2129_v5, %v4570_v38  ;;  %v2158_v18 = vmul.f32 %v2984_v42, %v2129_v5  ;;  %v2137_v39 = vperm.slane %v2091_v14, %v4745_v7  ;;  %p3003_p13 = pnand %p3002_p12, %p3237_p5  ;;  %p3008_p3 = por %p3007_p2, %p3006_p1 }
 0x2e0   : > { %v4964_v61 = vld.sshfl [vmem:[#allocation1 + $0x10] sm:$0xff pattern:$0x75316420]  ;;  %v2161_v60 = vmul.f32 %v2133_v22, %v4616_v63  ;;  %v2160_v35 = vmul.f32 %v2133_v22, %v4593_v47  ;;  %vm2196_vm8 = vcmask 1044483  }
 0x2e1   : > { %v4967_v41 = vld.sshfl [vmem:[#allocation1] sm:$0xff pattern:$0x75316420]  ;;  %v4969_v43 = vld.sshfl [vmem:[#allocation1 + $0x8] sm:$0xff pattern:$0x75316420]  ;;  %v2163_v12 = vmul.f32 %v2137_v39, %v4590_v25  ;;  %p3004_p0 = pneg %p3003_p13 }
 0x2e2   : > { %v2096_v46 = vsub.f32 1.5, %v2095_v23  ;;  %2297 = vst [vmem:[#allocation1 + $0x10] ss:$2 sm:$0xff] %v2155_v29  ;;  %v4974_v2 = vld.sshfl [vmem:[#allocation1 + $0x30] sm:$0xff pattern:$0x75316420] }
 0x2e3   : > { %v1820_v49 = vpop.xlane.xlu1 %1819  ;;  %2296 = vst [vmem:[#allocation1] ss:$2 sm:$0xff] %v2154_v6  ;;  %v4977_v63 = vld.sshfl [vmem:[#allocation1 + $0x20] sm:$0xff pattern:$0x75316420]  ;;  %p3009_p4 = pnand %p3008_p3, %p3004_p0 }
 0x2e4   : > { %v2097_v21 = vmul.f32 %v2951_v11, %v2096_v46  ;;  %v1821_v47 = vadd.f32 1e-08, %v1820_v49  ;;  %v4980_v27 = vld.sshfl [vmem:[#allocation1 + $0x28] sm:$0xff pattern:$0x75316420] }
 0x2e5   : > { %2312 = vst [vmem:[#allocation1 + $0x30] ss:$2 sm:$0xff] %v2161_v60 }
 0x2e6   : > { %v2101_v44 = vsel %vm2100_vm7, %v2951_v11, %v2097_v21  ;;  %2952 = vrsqrt.f32 %v1821_v47  ;;  %2311 = vst [vmem:[#allocation1 + $0x20] ss:$2 sm:$0xff] %v2160_v35  ;;  %vm1828_vm10 = vweird.f32 %v1821_v47  ;;  %vm2186_vm7 = vcmask 1042433  }
 0x2e7   : > { %v2141_v54 = vperm.slane %v2101_v44, %v4745_v7 }
 0x2e9   : > { %v4986_v20 = vld.sshfl [vmem:[#allocation1 + $0x10] sm:$0xff pattern:$0x75316420]  ;;  %v2164_v55 = vmul.f32 %v2141_v54, %v4625_v0  ;;  %v2165_v3 = vmul.f32 %v2141_v54, %v4659_v37  ;;  %v2162_v37 = vmul.f32 %v2137_v39, %v4573_v48 }
 0x2ea   : > { %v4989_v59 = vld.sshfl [vmem:[#allocation1] sm:$0xff pattern:$0x75316420]  ;;  %v4991_v9 = vld.sshfl [vmem:[#allocation1 + $0x8] sm:$0xff pattern:$0x75316420] }
 0x2eb   : > { %v1842_v10 = vpop.xlane.xlu1 %1841  ;;  %2307 = vst [vmem:[#allocation1 + $0x10] ss:$2 sm:$0xff] %v2159_v53 }
 0x2ec   : > { %v2953_v38 = vpop.eup %2952  ;;  %v1843_v11 = vadd.f32 1e-08, %v1842_v10  ;;  %2306 = vst [vmem:[#allocation1] ss:$2 sm:$0xff] %v2158_v18 }
 0x2ed   : > { %v1823_v30 = vmul.f32 %v2953_v38, %v1821_v47  ;;  %v4995_v57 = vld.sshfl [vmem:[#allocation1 + $0x20] sm:$0xff pattern:$0x75316420]  ;;  %v4997_v58 = vld.sshfl [vmem:[#allocation1 + $0x28] sm:$0xff pattern:$0x75316420]  ;;  %vm1829_vm9 = vweird.f32 %v2953_v38 }
 0x2ee   : > { %2954 = vrsqrt.f32 %v1843_v11  ;;  %v4999_v0 = vld.sshfl [vmem:[#allocation1 + $0x30] sm:$0xff pattern:$0x75316420]  ;;  %2321 = vst [vmem:[#allocation1 + $0x20] ss:$2 sm:$0xff] %v2164_v55  ;;  %vm1830_vm11 = vmor %vm1828_vm10, %vm1829_vm9  ;;  %vm1850_vm4 = vweird.f32 %v1843_v11  ;;  %vm2199_vm9 = vcmask 1044484  }
 0x2ef   : > { %v1824_v31 = vmul.f32 %v2953_v38, %v1823_v30  ;;  %2322 = vst [vmem:[#allocation1 + $0x30] ss:$2 sm:$0xff] %v2165_v3 }
 0x2f1   : > { %v1825_v7 = vmul.f32 0.5, %v1824_v31 }
 0x2f2   : > { %v5003_v13 = vld.sshfl [vmem:[#allocation1 + $0x10] sm:$0xff pattern:$0x75316420] }
 0x2f3   : > { %v1826_v26 = vsub.f32 1.5, %v1825_v7  ;;  %2317 = vst [vmem:[#allocation1 + $0x10] ss:$2 sm:$0xff] %v2163_v12  ;;  %v5005_v17 = vld.sshfl [vmem:[#allocation1] sm:$0xff pattern:$0x75316420] }
 0x2f4   : > { %v2955_v36 = vpop.eup %2954  ;;  %v5007_v29 = vld.sshfl [vmem:[#allocation1 + $0x8] sm:$0xff pattern:$0x75316420] }
 0x2f5   : > { %v1827_v22 = vmul.f32 %v2953_v38, %v1826_v26  ;;  %v1845_v50 = vmul.f32 %v2955_v36, %v1843_v11  ;;  %2316 = vst [vmem:[#allocation1] ss:$2 sm:$0xff] %v2162_v37  ;;  %vm1851_vm5 = vweird.f32 %v2955_v36 }
 0x2f6   : > { %vm1852_vm10 = vmor %vm1850_vm4, %vm1851_vm5  ;;  %vm2209_vm4 = vcmask 1046534   ;;  %vm2211_vm5 = vcmask 1045504  }
 0x2f7   : > { %v1831_v25 = vsel %vm1830_vm11, %v2953_v38, %v1827_v22  ;;  %v1846_v28 = vmul.f32 %v2955_v36, %v1845_v50  ;;  %vm2201_vm11 = vcmask 1045508  }
 0x2f8   : > { %v5010_v48 = vmul.f32 %v1831_v25, %v4800_v52  ;;  %v5013_v6 = vmul.f32 %v1831_v25, %v4814_v33  ;;  %v5016_v32 = vmul.f32 %v1831_v25, %v4775_v16 }
 0x2f9   : > { %v1847_v45 = vmul.f32 0.5, %v1846_v28 }
 0x2fa   : > { %v5019_v23 = vrot.slane %v5010_v48, 7  ;;  %v5022_v60 = vrot.slane %v5013_v6, 6 }
 0x2fb   : > { %v1848_v52 = vsub.f32 1.5, %v1847_v45 }
 0x2fc   : > { %v2181_v33 = vsel %vm2180_vm12, %v5016_v32, %v5019_v23  ;;  %v2190_v16 = vsel %vm2189_vm15, %v5016_v32, %v5019_v23  ;;  %v2185_v35 = vsel %vm2184_vm0, %v5016_v32, %v5019_v23  ;;  %v2195_v46 = vsel %vm2194_vm3, %v5016_v32, %v5019_v23 }
 0x2fd   : > { %v1849_v5 = vmul.f32 %v2955_v36, %v1848_v52  ;;  %v2183_v49 = vsel %vm2182_vm14, %v2181_v33, %v5022_v60  ;;  %v2192_v51 = vsel %vm2191_vm6, %v2190_v16, %v5022_v60  ;;  %v2187_v21 = vsel %vm2186_vm7, %v2185_v35, %v5022_v60 }
 0x2fe   : > { %vm2204_vm12 = vcmask 1045509   ;;  %v2219_v47 = vperm.slane %v2183_v49, 0  ;;  %v2220_v44 = vperm.slane %v2183_v49, 1  ;;  %v2221_v53 = vperm.slane %v2183_v49, 2 }
 0x2ff   : > { %v2193_v54 = vrot.slane %v2192_v51, 2  ;;  %v5040_v42 = vsel %vm1852_vm10, %v2955_v36, %v1849_v5  ;;  %v2188_v18 = vrot.slane %v2187_v21, 1  ;;  %v2197_v14 = vsel %vm2196_vm8, %v2195_v46, %v5022_v60 }
 0x300   : > { %v2200_v55 = vsel %vm2199_vm9, %v5016_v32, %v5019_v23  ;;  %vm2206_vm14 = vcmask 1046533   ;;  %v2350_v39 = vmul.f32 %v4967_v41, %v2219_v47  ;;  %v2351_v3 = vmul.f32 %v4969_v43, %v2220_v44 }
 0x301   : > { %v2352_v10 = vmul.f32 %v4964_v61, %v2221_v53  ;;  %v2225_v38 = vperm.slane %v2193_v54, 0  ;;  %v2226_v11 = vperm.slane %v2193_v54, 1  ;;  %v2227_v30 = vperm.slane %v2193_v54, 2 }
 0x302   : > { %v2222_v12 = vperm.slane %v2188_v18, 0  ;;  %v2223_v31 = vperm.slane %v2188_v18, 1  ;;  %v2374_v37 = vsel %vm1956_vm1, %v2350_v39, 0.0  ;;  %v2375_v7 = vsel %vm1956_vm1, %v2351_v3, 0.0 }
 0x303   : > { %v2377_v26 = vsel %vm1960_vm2, %v2352_v10, 0.0  ;;  %v2356_v36 = vmul.f32 %v4989_v59, %v2225_v38  ;;  %v2376_v22 = vadd.f32 %v2375_v7, %v2374_v37  ;;  %v2357_v41 = vmul.f32 %v4991_v9, %v2226_v11 }
 0x304   : > { %v2358_v43 = vmul.f32 %v4986_v20, %v2227_v30  ;;  %v2224_v61 = vperm.slane %v2188_v18, 2  ;;  %v2353_v25 = vmul.f32 %v4933_v19, %v2222_v12  ;;  %v2354_v28 = vmul.f32 %v4939_v8, %v2223_v31 }
 0x305   : > { %v2388_v50 = vsel %vm1956_vm1, %v2356_v36, 0.0  ;;  %v2198_v45 = vrot.slane %v2197_v14, 3  ;;  %v2378_v52 = vadd.f32 %v2377_v26, %v2376_v22  ;;  %v2389_v33 = vsel %vm1956_vm1, %v2357_v41, 0.0 }
 0x306   : > { %v2391_v16 = vsel %vm1960_vm2, %v2358_v43, 0.0  ;;  %v2355_v59 = vmul.f32 %v4937_v56, %v2224_v61  ;;  %v2390_v35 = vadd.f32 %v2389_v33, %v2388_v50  ;;  %v2381_v9 = vsel %vm1956_vm1, %v2353_v25, 0.0  ;;  %v2318_v43 = vld.sshfl [vmem:[#allocation1] sm:$0xff pattern:$0x75316420] }
 0x307   : > { %v2382_v20 = vsel %vm1956_vm1, %v2354_v28, 0.0  ;;  %v2228_v46 = vperm.slane %v2198_v45, 0  ;;  %2379 = vadd.xlane.f32.xlu2 %v2378_v52  ;;  %v2229_v49 = vperm.slane %v2198_v45, 1  ;;  %v2230_v8 = vperm.slane %v2198_v45, 2 }
 0x308   : > { %v2383_v5 = vadd.f32 %v2382_v20, %v2381_v9  ;;  %v2384_v19 = vsel %vm1960_vm2, %v2355_v59, 0.0  ;;  %v2392_v51 = vadd.f32 %v2391_v16, %v2390_v35  ;;  %v2202_v47 = vsel %vm2201_vm11, %v2200_v55, %v5022_v60  ;;  %v2320_v61 = vld.sshfl [vmem:[#allocation1 + $0x10] sm:$0xff pattern:$0x75316420] }
 0x309   : > { %v2359_v21 = vmul.f32 %v4977_v63, %v2228_v46  ;;  %v2205_v56 = vsel %vm2204_vm12, %v5016_v32, %v5019_v23  ;;  %v2360_v53 = vmul.f32 %v4980_v27, %v2229_v49  ;;  %v2361_v54 = vmul.f32 %v4974_v2, %v2230_v8  ;;  %v2319_v33 = vld.sshfl [vmem:[#allocation1 + $0x8] sm:$0xff pattern:$0x75316420] }
 0x30a   : > { %v2385_v44 = vadd.f32 %v2384_v19, %v2383_v5  ;;  %v2203_v18 = vrot.slane %v2202_v47, 4  ;;  %2393 = vadd.xlane.f32.xlu1 %v2392_v51  ;;  %v2207_v39 = vsel %vm2206_vm14, %v2205_v56, %v5022_v60  ;;  %v2210_v63 = vsel %vm2209_vm4, %v5016_v32, %v5019_v23 }
 0x30b   : > { %v2395_v14 = vsel %vm1956_vm1, %v2359_v21, 0.0  ;;  %v1854_v55 = vmul.f32 %v5040_v42, %v4816_v34  ;;  %vm2214_vm6 = vcmask 1046528   ;;  %v2396_v27 = vsel %vm1956_vm1, %v2360_v53, 0.0 }
 0x30c   : > { %2386 = vadd.xlane.f32.xlu0 %v2385_v44  ;;  %v2398_v2 = vsel %vm1960_vm2, %v2361_v54, 0.0  ;;  %v2231_v3 = vperm.slane %v2203_v18, 0  ;;  %v2232_v10 = vperm.slane %v2203_v18, 1  ;;  %v2397_v38 = vadd.f32 %v2396_v27, %v2395_v14 }
 0x30d   : > { %v2233_v11 = vperm.slane %v2203_v18, 2  ;;  %v2208_v30 = vrot.slane %v2207_v39, 5  ;;  %v2212_v12 = vsel %vm2211_vm5, %v5022_v60, %v2210_v63  ;;  %v1855_v34 = vmul.f32 %v5040_v42, %v4818_v40  ;;  %v2323_v18 = vld.sshfl [vmem:[#allocation1 + $0x20] sm:$0xff pattern:$0x75316420] }
 0x30e   : > { %v2362_v31 = vmul.f32 %v5005_v17, %v2231_v3  ;;  %v2363_v37 = vmul.f32 %v5007_v29, %v2232_v10  ;;  %v2213_v7 = vrot.slane %v2212_v12, 6  ;;  %v2399_v26 = vadd.f32 %v2398_v2, %v2397_v38  ;;  %v2324_v39 = vld.sshfl [vmem:[#allocation1 + $0x28] sm:$0xff pattern:$0x75316420] }
 0x30f   : > { %v2364_v36 = vmul.f32 %v5003_v13, %v2233_v11  ;;  %v2234_v22 = vperm.slane %v2208_v30, 0  ;;  %v2235_v41 = vperm.slane %v2208_v30, 1  ;;  %v2236_v28 = vperm.slane %v2208_v30, 2  ;;  %v2325_v63 = vld.sshfl [vmem:[#allocation1 + $0x30] sm:$0xff pattern:$0x75316420] }
 0x310   : > { %v2402_v50 = vsel %vm1956_vm1, %v2362_v31, 0.0  ;;  %v2403_v25 = vsel %vm1956_vm1, %v2363_v37, 0.0  ;;  %v2237_v45 = vperm.slane %v2213_v7, 0  ;;  %2400 = vadd.xlane.f32.xlu2 %v2399_v26  ;;  %v2238_v16 = vperm.slane %v2213_v7, 1 }
 0x311   : > { %v2404_v17 = vadd.f32 %v2403_v25, %v2402_v50  ;;  %v2405_v29 = vsel %vm1960_vm2, %v2364_v36, 0.0  ;;  %v2365_v52 = vmul.f32 %v4995_v57, %v2234_v22  ;;  %v2366_v40 = vmul.f32 %v4997_v58, %v2235_v41 }
 0x312   : > { %v2367_v13 = vmul.f32 %v4999_v0, %v2236_v28  ;;  %v2239_v59 = vperm.slane %v2213_v7, 2  ;;  %v2368_v35 = vmul.f32 %v2318_v43, %v2237_v45  ;;  %v1856_v5 = vmul.f32 %v5040_v42, %v4822_v24 }
 0x313   : > { %v2406_v9 = vadd.f32 %v2405_v29, %v2404_v17  ;;  %v2409_v20 = vsel %vm1956_vm1, %v2365_v52, 0.0  ;;  %v2410_v46 = vsel %vm1956_vm1, %v2366_v40, 0.0  ;;  %v2369_v49 = vmul.f32 %v2319_v33, %v2238_v16 }
 0x314   : > { %v2411_v19 = vadd.f32 %v2410_v46, %v2409_v20  ;;  %v2370_v8 = vmul.f32 %v2320_v61, %v2239_v59  ;;  %vm2216_vm7 = vcmask 1046529   ;;  %v2412_v57 = vsel %vm1960_vm2, %v2367_v13, 0.0 }
 0x315   : > { %2407 = vadd.xlane.f32.xlu0 %v2406_v9  ;;  %v2416_v58 = vsel %vm1956_vm1, %v2368_v35, 0.0  ;;  %v2166_v0 = vmul.f32 %v1854_v55, %v5016_v32  ;;  %v2417_v21 = vsel %vm1956_vm1, %v2369_v49, 0.0  ;;  %v2167_v47 = vmul.f32 %v1855_v34, %v5010_v48 }
 0x316   : > { %v2413_v51 = vadd.f32 %v2412_v57, %v2411_v19  ;;  %v2215_v24 = vsel %vm2214_vm6, %v5019_v23, %v5016_v32  ;;  %v2418_v42 = vadd.f32 %v2417_v21, %v2416_v58  ;;  %v2168_v56 = vmul.f32 %v1856_v5, %v5013_v6 }
 0x317   : > { %v2217_v44 = vsel %vm2216_vm7, %v5022_v60, %v2215_v24  ;;  %v2419_v53 = vsel %vm1960_vm2, %v2370_v8, 0.0  ;;  %v2169_v55 = vadd.f32 %v2167_v47, %v2166_v0  ;;  %v3111_v0 = vmov 0  }
 0x318   : > { %2414 = vadd.xlane.f32.xlu1 %v2413_v51  ;;  %v2218_v54 = vrot.slane %v2217_v44, 7  ;;  %v2420_v14 = vadd.f32 %v2419_v53, %v2418_v42  ;;  %v2170_v32 = vsel %vm1778_vm13, %v2168_v56, 0.0  ;;  %2931 = vset.pattern.permute.xlu2 %v3111_v0 }
 0x319   : > { %v2171_v10 = vadd.f32 %v2170_v32, %v2169_v55  ;;  %2930 = vset.pattern.permute.xlu1 %v3111_v0  ;;  %2929 = vset.pattern.permute.xlu0 %v3111_v0  ;;  %v1787_v0 = vshrl.u32 %v769_v62, 7 }
 0x31a   : > { %v2240_v27 = vperm.slane %v2218_v54, 0  ;;  %v2241_v48 = vperm.slane %v2218_v54, 1  ;;  %v2242_v2 = vperm.slane %v2218_v54, 2  ;;  %2421 = vadd.xlane.f32.xlu2 %v2420_v14 }
 0x31c   : > { %v2371_v23 = vmul.f32 %v2323_v18, %v2240_v27  ;;  %v2372_v3 = vmul.f32 %v2324_v39, %v2241_v48  ;;  %v2373_v6 = vmul.f32 %v2325_v63, %v2242_v2 }
 0x31e   : > { %v2423_v60 = vsel %vm1956_vm1, %v2371_v23, 0.0  ;;  %v2424_v38 = vsel %vm1956_vm1, %v2372_v3, 0.0  ;;  %v2426_v30 = vsel %vm1960_vm2, %v2373_v6, 0.0  ;;  %vm2460_vm1 = vcmask 1047559  }
 0x31f   : > { %v2425_v11 = vadd.f32 %v2424_v38, %v2423_v60  ;;  %vm2463_vm2 = vcmask 31744  }
 0x320   : > { %2172 = vadd.xlane.f32.xlu1 %v2171_v10 }
 0x321   : > { %v2427_v12 = vadd.f32 %v2426_v30, %v2425_v11 }
 0x323   : > { %2428 = vadd.xlane.f32.xlu0 %v2427_v12 }
 0x37a   : > { %v2380_v31 = vpop.xlane.xlu2 %2379 }
 0x37b   : > { %v2430_v36 = vmul.f32 10.0, %v2380_v31 }
 0x37d   : > { %v2394_v7 = vpop.xlane.xlu1 %2393  ;;  %v2446_v50 = vperm.slane %v2430_v36, %v3385_v4 }
 0x37e   : > { %v2432_v22 = vmul.f32 10.0, %v2394_v7 }
 0x37f   : > { %v2387_v37 = vpop.xlane.xlu0 %2386 }
 0x380   : > { %v2431_v26 = vmul.f32 10.0, %v2387_v37  ;;  %v2448_v25 = vperm.slane %v2432_v22, %v3385_v4 }
 0x382   : > { %v2447_v41 = vperm.slane %v2431_v26, %v3385_v4 }
 0x383   : > { %v2401_v34 = vpop.xlane.xlu2 %2400 }
 0x384   : > { %v2433_v43 = vmul.f32 10.0, %v2401_v34  ;;  %v2454_v17 = vsel %vm2184_vm0, %v2447_v41, %v2446_v50 }
 0x385   : > { %v2455_v33 = vsel %vm2189_vm15, %v2448_v25, %v2454_v17 }
 0x386   : > { %v2449_v29 = vperm.slane %v2433_v43, %v3385_v4 }
 0x388   : > { %v2408_v61 = vpop.xlane.xlu0 %2407  ;;  %v2456_v59 = vsel %vm2194_vm3, %v2449_v29, %v2455_v33 }
 0x389   : > { %v2434_v45 = vmul.f32 10.0, %v2408_v61 }
 0x38b   : > { %v2415_v28 = vpop.xlane.xlu1 %2414  ;;  %v2450_v13 = vperm.slane %v2434_v45, %v3385_v4 }
 0x38c   : > { %v2435_v40 = vmul.f32 10.0, %v2415_v28 }
 0x38d   : > { %v2422_v52 = vpop.xlane.xlu2 %2421  ;;  %v2457_v9 = vsel %vm2199_vm9, %v2450_v13, %v2456_v59 }
 0x38e   : > { %v2436_v16 = vmul.f32 10.0, %v2422_v52  ;;  %v2451_v35 = vperm.slane %v2435_v40, %v3385_v4 }
 0x390   : > { %v2452_v20 = vperm.slane %v2436_v16, %v3385_v4  ;;  %v2458_v19 = vsel %vm2204_vm12, %v2451_v35, %v2457_v9 }
 0x392   : > { %v2459_v49 = vsel %vm2209_vm4, %v2452_v20, %v2458_v19 }
 0x393   : > { %v2173_v51 = vpop.xlane.xlu1 %2172 }
 0x394   : > { %v5131_v21 = vmul.f32 10.0, %v2173_v51  ;;  %v1789_v51 = vstv %s3367_s23 }
 0x396   : > { %v2429_v46 = vpop.xlane.xlu0 %2428 }
 0x397   : > { %v2437_v5 = vmul.f32 10.0, %v2429_v46 }
 0x399   : > { %v2453_v8 = vperm.slane %v2437_v5, %v3385_v4 }
 0x39b   : > { %v2461_v57 = vsel %vm2460_vm1, %v2453_v8, %v2459_v49 }
 0x39c   : > { %v2464_v58 = vsel %vm2463_vm2, %v2461_v57, -inf }
 0x39d   : > { %2465 = vmax.xlane.f32.xlu2 %v2464_v58 }
 0x410   : > { %v2466_v47 = vpop.xlane.xlu2 %2465 }
 0x411   : > { %v5134_v24 = vmax.f32 %v5131_v21, %v2466_v47  ;;  %v1790_v47 = vadd.s32 %v1789_v51, %v1787_v0 }
 0x413   : > { %v2474_v42 = vperm.slane %v5134_v24, 2  ;;  %v2473_v56 = vperm.slane %v5134_v24, 1  ;;  %v2472_v44 = vperm.slane %v5134_v24, 0  ;;  %v2475_v14 = vperm.slane %v5134_v24, 3 }
 0x414   : > { %v2476_v39 = vperm.slane %v5134_v24, 4  ;;  %v2479_v63 = vperm.slane %v5134_v24, 7  ;;  %v2477_v6 = vperm.slane %v5134_v24, 5  ;;  %v2478_v60 = vperm.slane %v5134_v24, 6 }
 0x415   : > { %v2490_v53 = vsub.f32 %v2432_v22, %v2474_v42  ;;  %v2489_v54 = vsub.f32 %v2431_v26, %v2473_v56  ;;  %v2488_v18 = vsub.f32 %v2430_v36, %v2472_v44  ;;  %v2491_v2 = vsub.f32 %v2433_v43, %v2475_v14 }
 0x416   : > { %v2492_v32 = vsub.f32 %v2434_v45, %v2476_v39  ;;  %v2495_v23 = vsub.f32 %v2437_v5, %v2479_v63  ;;  %v2493_v31 = vsub.f32 %v2435_v40, %v2477_v6  ;;  %v2494_v37 = vsub.f32 %v2436_v16, %v2478_v60 }
 0x417   : > { %v2500_v55 = vmul.f32 1.442695, %v2490_v53  ;;  %v2498_v27 = vmul.f32 1.442695, %v2489_v54  ;;  %v2496_v48 = vmul.f32 1.442695, %v2488_v18  ;;  %v2468_v54 = vsub.f32 %v5131_v21, %v5134_v24 }
 0x418   : > { %v2502_v3 = vmul.f32 1.442695, %v2491_v2  ;;  %v2504_v10 = vmul.f32 1.442695, %v2492_v32  ;;  %v2510_v11 = vmul.f32 1.442695, %v2495_v23 }
 0x419   : > { %2956 = vpow2.f32 %v2500_v55  ;;  %v2506_v7 = vmul.f32 1.442695, %v2493_v31  ;;  %v2508_v34 = vmul.f32 1.442695, %v2494_v37  ;;  %vm1791_vm13 = vcmp.lt.s32.totalorder %v1790_v47, 20 }
 0x41a   : > { %2958 = vpow2.f32 %v2498_v27  ;;  %v2857_v42 = vsel %vm1791_vm13, 1.0, %v3109_v1  ;;  %v2469_v18 = vmul.f32 1.442695, %v2468_v54 }
 0x41b   : > { %2960 = vpow2.f32 %v2496_v48 }
 0x41c   : > { %2962 = vpow2.f32 %v2502_v3 }
 0x41d   : > { %2964 = vpow2.f32 %v2504_v10 }
 0x41e   : > { %2966 = vpow2.f32 %v2510_v11 }
 0x41f   : > { %v2957_v38 = vpop.eup %2956  ;;  %2968 = vpow2.f32 %v2506_v7 }
 0x420   : > { %v2959_v30 = vpop.eup %2958  ;;  %2527 = vperm.xlu2 %2931, %v2957_v38   ;;  %2970 = vpow2.f32 %v2508_v34 }
 0x421   : > { %v2961_v12 = vpop.eup %2960  ;;  %2524 = vperm.xlu1 %2930, %v2959_v30   ;;  %2972 = vpow2.f32 %v2469_v18 }
 0x422   : > { %2521 = vperm.xlu0 %2929, %v2961_v12   ;;  %v2963_v26 = vpop.eup %2962 }
 0x423   : > { %v2965_v36 = vpop.eup %2964 }
 0x424   : > { %v2967_v22 = vpop.eup %2966 }
 0x425   : > { %v2969_v41 = vpop.eup %2968 }
 0x426   : > { %v2971_v43 = vpop.eup %2970 }
 0x427   : > { %v2973_v62 = vpop.eup %2972 }
 0x428   : > { %2530 = vperm.xlu2 %2931, %v2963_v26  }
 0x429   : > { %2533 = vperm.xlu1 %2930, %v2965_v36  }
 0x42a   : > { %2542 = vperm.xlu0 %2929, %v2967_v22  }
 0x430   : > { %2536 = vperm.xlu2 %2931, %v2969_v41  }
 0x431   : > { %2539 = vperm.xlu1 %2930, %v2971_v43  }
 0x45b   : > { %2600 = vadd.xlane.f32.xlu1 %v4951_v15 }
 0x47a   : > { %v2528_v61 = vpop.permute.xlu2 %2527 }
 0x47b   : > { %v2546_v40 = vperm.slane %v2528_v61, %v3385_v4 }
 0x482   : > { %v2531_v28 = vpop.permute.xlu2 %2530 }
 0x483   : > { %v2547_v15 = vperm.slane %v2531_v28, %v3385_v4 }
 0x48a   : > { %v2537_v16 = vpop.permute.xlu2 %2536 }
 0x48b   : > { %v2549_v20 = vperm.slane %v2537_v16, %v3385_v4 }
 0x493   : > { %v2525_v50 = vpop.permute.xlu1 %2524 }
 0x494   : > { %v2522_v25 = vpop.permute.xlu0 %2521  ;;  %v2545_v45 = vperm.slane %v2525_v50, %v3385_v4 }
 0x495   : > { %v2544_v17 = vperm.slane %v2522_v25, %v3385_v4 }
 0x497   : > { %v2552_v29 = vsel %vm2184_vm0, %v2545_v45, %v2544_v17 }
 0x498   : > { %v2553_v33 = vsel %vm2189_vm15, %v2546_v40, %v2552_v29  ;;  %vm2569_vm15 = vcmask 7168  }
 0x499   : > { %v2554_v59 = vsel %vm2194_vm3, %v2547_v15, %v2553_v33 }
 0x49b   : > { %v2534_v52 = vpop.permute.xlu1 %2533 }
 0x49c   : > { %v2548_v13 = vperm.slane %v2534_v52, %v3385_v4  ;;  %v2543_v9 = vpop.permute.xlu0 %2542 }
 0x49d   : > { %v2551_v19 = vperm.slane %v2543_v9, %v3385_v4 }
 0x49e   : > { %v2555_v35 = vsel %vm2199_vm9, %v2548_v13, %v2554_v59 }
 0x49f   : > { %v2556_v49 = vsel %vm2204_vm12, %v2549_v20, %v2555_v35 }
 0x4a3   : > { %v2540_v46 = vpop.permute.xlu1 %2539 }
 0x4a4   : > { %v2550_v5 = vperm.slane %v2540_v46, %v3385_v4 }
 0x4a6   : > { %v2557_v8 = vsel %vm2209_vm4, %v2550_v5, %v2556_v49 }
 0x4a7   : > { %v2558_v57 = vsel %vm2460_vm1, %v2551_v19, %v2557_v8 }
 0x4a8   : > { %v2560_v58 = vsel %vm2463_vm2, %v2558_v57, 0.0 }
 0x4a9   : > { %2561 = vadd.xlane.f32.xlu2 %v2560_v58 }
 0x4ce   : > { %v2601_v56 = vpop.xlane.xlu1 %2600 }
 0x4cf   : > { %v2602_v44 = vmul.f32 %v2857_v42, %v2601_v56 }
 0x4d1   : > { %v2603_v53 = vsel %vm2569_vm15, %v2602_v44, 0.0 }
 0x4d2   : > { %2604 = vadd.xlane.f32.xlu2 %v2603_v53 }
 0x51c   : > { %v2562_v14 = vpop.xlane.xlu2 %2561 }
 0x51d   : > { %v2563_v39 = vadd.f32 %v2973_v62, %v2562_v14 }
 0x51f   : > { %2974 = vlog2.f32 %v2563_v39 }
 0x525   : > { %v2975_v63 = vpop.eup %2974 }
 0x526   : > { %v2565_v55 = vmul.f32 0.6931472, %v2975_v63 }
 0x528   : > { %v2566_v27 = vadd.f32 %v2565_v55, %v5134_v24 }
 0x52a   : > { %v2567_v48 = vsub.f32 %v2566_v27, %v5131_v21 }
 0x52c   : > { %v2568_v2 = vmul.f32 %v2857_v42, %v2567_v48 }
 0x52e   : > { %v2570_v32 = vsel %vm2569_vm15, %v2568_v2, 0.0 }
 0x52f   : > { %2571 = vadd.xlane.f32.xlu0 %v2570_v32 }
 0x530   : > { %3012 = shalt.err (!%p3009_p4)
}
 0x531   : > { %2878 = dma.vmem_to_hbm [thread:$0]  (%p3237_p5), %s2665_s21, 640, %s2667_s24, %s5177_s18  }
 0x532   : > { %s5301_s20 = sld [smem:[#allocation20_spill]]  ;;  %s2649_s3 = sshll.u32 %s4787_s14, 4  ;;  %s2650_s3 = int_to_ptr.vmem [resolvable:$true] %s2649_s3 }
 0x533   : > { %s2626_s4 = scalar_lea.sflag [#allocation3], %s4719_s19 }
 0x538   : > { %s2647_s2 = scalar_lea.hbm %s5301_s20, %s2875_s30  ;;  %s3033_s21 = scalar_lea.hbm %s5301_s20, 72 }
 0x539   : > { %s2651_s27 = sshll.u32 %s2647_s2, 4  ;;  %s2652_s27 = int_to_ptr.hbm [resolvable:$true] %s2651_s27 }
 0x53a   : > { %s3027_s1 = sshra.s32 %s2652_s27, 4  ;;  %s3028_s1 = int_to_ptr.hbm [resolvable:$true] %s3027_s1 }
 0x53b   : > { %s3029_s17 = scalar_lea.hbm %s3028_s1, 24  ;;  %p3034_p10 = scmp.lt.s32.totalorder %s3028_s1, %s5301_s20 }
 0x53c   : > { %p3030_p7 = scmp.ne.s32.totalorder %s3028_s1, %s3029_s17  ;;  %p3035_p11 = scmp.lt.s32.totalorder %s3033_s21, %s3029_s17 }
 0x53e   : > { %p3031_p8 = pnand %p3030_p7, %p3237_p5  ;;  %p3036_p12 = por %p3035_p11, %p3034_p10 }
 0x540   : > { %p3032_p9 = pneg %p3031_p8 }
 0x542   : > { %p3037_p13 = pnand %p3036_p12, %p3032_p9 }
 0x544   : > { %3040 = shalt.err (!%p3037_p13)
}
 0x545   : > { %2877 = dma.vmem_to_hbm [thread:$0]  (%p3237_p5), %s2650_s3, 384, %s2652_s27, %s2626_s4   ;;  %v2605_v21 = vpop.xlane.xlu2 %2604  ;;  %vm2613_vm0 = vcmp.eq.s32.totalorder %v3385_v4, 0  ;;  %vm2618_vm3 = vcmp.eq.s32.totalorder %v3385_v4, 1 }
 0x546   : > { %v2606_v24 = vrot.slane %v2605_v21, 4  ;;  %s2843_s14 = sshll.u32 %s4719_s19, 3  ;;  %v2858_v34 = vsel %vm2613_vm0, 1.0, %v3109_v1  ;;  %s5302_s26 = sld [smem:[#allocation21_spill]]  ;;  %v2859_v26 = vsel %vm2618_vm3, 1.0, %v3109_v1 }
 0x547   : > { %s578_s4 = scalar_lea.vmem [#allocation6], %s2843_s14 }
 0x548   : > { %v2607_v23 = vadd.f32 %v2606_v24, %v2605_v21  ;;  %s2678_s1 = sshll.u32 %s578_s4, 4  ;;  %s2679_s1 = int_to_ptr.vmem [resolvable:$true] %s2678_s1 }
 0x54a   : > { %v2608_v3 = vrot.slane %v2607_v23, 2 }
 0x54c   : > { %v2609_v38 = vadd.f32 %v2608_v3, %v2607_v23  ;;  %s2676_s2 = scalar_lea.hbm %s5302_s26, %s3367_s23  ;;  %s3061_s21 = scalar_lea.hbm %s5302_s26, 24 }
 0x54d   : > { %s2680_s17 = sshll.u32 %s2676_s2, 4  ;;  %s2681_s17 = int_to_ptr.hbm [resolvable:$true] %s2680_s17 }
 0x54e   : > { %v2610_v12 = vrot.slane %v2609_v38, 1  ;;  %s3055_s19 = sshra.s32 %s2681_s17, 4  ;;  %s3056_s19 = int_to_ptr.hbm [resolvable:$true] %s3055_s19 }
 0x54f   : > { %s3057_s28 = scalar_lea.hbm %s3056_s19, 8  ;;  %p3062_p3 = scmp.lt.s32.totalorder %s3056_s19, %s5302_s26 }
 0x550   : > { %v2611_v7 = vadd.f32 %v2610_v12, %v2609_v38  ;;  %p3058_p0 = scmp.ne.s32.totalorder %s3056_s19, %s3057_s28  ;;  %p3063_p4 = scmp.lt.s32.totalorder %s3061_s21, %s3057_s28 }
 0x552   : > { %p3059_p1 = pnand %p3058_p0, %p3237_p5  ;;  %p3064_p7 = por %p3063_p4, %p3062_p3 }
 0x554   : > { %p3060_p2 = pneg %p3059_p1 }
 0x556   : > { %p3065_p8 = pnand %p3064_p7, %p3060_p2 }
 0x5a2   : > { %v2572_v6 = vpop.xlane.xlu0 %2571 }
 0x5a3   : > { %v2573_v10 = vrot.slane %v2572_v6, 4 }
 0x5a5   : > { %v2574_v60 = vadd.f32 %v2573_v10, %v2572_v6 }
 0x5a7   : > { %v2575_v11 = vrot.slane %v2574_v60, 2 }
 0x5a9   : > { %v2576_v30 = vadd.f32 %v2575_v11, %v2574_v60 }
 0x5ab   : > { %v2577_v31 = vrot.slane %v2576_v30, 1 }
 0x5ad   : > { %v2578_v37 = vadd.f32 %v2577_v31, %v2576_v30 }
 0x5af   : > { %2871 = vpush %v2578_v37 }
 0x5b0   : > { %2873 = vpush %v2611_v7 }
 0x5e0   : > { %s2872_s3 = spop %2871 }
 0x5e1   : > { %v2616_v36 = vstv %s2872_s3  ;;  %s2874_s27 = spop %2873 }
 0x5e2   : > { %v2617_v22 = vmul.f32 %v2858_v34, %v2616_v36  ;;  %v2621_v41 = vstv %s2874_s27 }
 0x5e3   : > { %v2622_v43 = vmul.f32 %v2859_v26, %v2621_v41 }
 0x5e5   : > { %v2623_v61 = vadd.f32 %v2622_v43, %v2617_v22 }
 0x5e7   : > { %2624 = vst [vmem:[%s578_s4] sm:$0xff] %v2623_v61 }
 0x5e8   : > { %3068 = shalt.err (!%p3065_p8)
}
 0x5e9   : > { %2879 = dma.vmem_to_hbm [thread:$0]  (%p3237_p5), %s2679_s1, 128, %s2681_s17, %s5177_s18  }
 0x5ea PF: > { %s5303_s14 = sld [smem:[#allocation11_spill]] }
 0x5eb   : > { %s5304_s30 = sld [smem:[#allocation9_spill]] }
 0x5f0   : > { %p2893_p9 = scmp.ge.s32.totalorder %s5303_s14, 2 }
 0x5f1   : > { %s2692_s2 = sand.u32 1, %s5304_s30  }
 0x5f2   : > { %p2884_p10 = pnand %p2893_p9, %p3241_p6  ;;  %s2693_s3 = scalar_lea.sflag [#allocation3], %s2692_s2 }
 0x5f4   : > { %p2885_p11 = pneg %p2884_p10 }
 0x5f6   : > { %3086 = dma.done.wait (%p2885_p11), %s2693_s3, 384  }
 0x5f7   : > { %3088 = vsyncadd (%p2885_p11), %s2693_s3, 4294966912  ;;  %s5306_s27 = sadd.s32 4294967294, %s5303_s14  }
 0x5f8   : > { %s2702_s4 = sand.u32 1, %s5306_s27  }
 0x5f9   : > { %s2703_s19 = scalar_lea.sflag [#allocation5], %s2702_s4 }
 0x5fa   : > { %3090 = dma.done.wait (%p2885_p11), %s2703_s19, 768  }
 0x5fb   : > { %3092 = vsyncadd (%p2885_p11), %s2703_s19, 4294966528  ;;  %s5307_s24 = sld [smem:[#allocation12_spill]]  ;;  %s5310_s21 = smov %s3099_s22 }
 0x5fc   : > { %s5308_s0 = sld [smem:[#allocation10_spill]] }
 0x5fd   : > { %s5309_s23 = sld [smem:[#allocation13_spill]] }
 0x601   : > { %p30_p5 = scmp.ge.s32.totalorder %s5307_s24, 5  }
 0x602   : > { %s5311_s22 = smov %s5308_s0 }
 0x603   :  { %32 = sbr.rel (!%p30_p5) target bundleno = 13 (0xd), region = 158 }
 0x608   :  { %2719 = vsyncpa [#allocation3], 1 }
 0x609   :  { %2721 = vsyncpa [#allocation3 + $0x1], 1 }
 0x60a   :  { %2722 = vsyncpa [#allocation5], 1 }
 0x60b   :  { %2724 = vsyncpa [#allocation5 + $0x1], 1 }

</bundles_post_ra>
